<compile_context>
chip_gen: v7x
topology: tpu7x:2x2x1
jax: 0.10.0
libtpu: 0.0.40
codegen_flags: <defaults>
</compile_context>

<pallas_src>
import functools

import jax
import jax.numpy as jnp
from jax.experimental import pallas as pl
from jax.experimental.pallas import tpu as pltpu

_NEG_LARGE = -1e30  # bias for padded class columns; can never win the argmax


def _round_up(v, m):
    return ((v + m - 1) // m) * m


# ----------------------------------------------------------------------------
# shared in-kernel helpers
# ----------------------------------------------------------------------------
def _first_argmax(logits):
    """First index attaining the row max (matches torch.argmax ties), kept 2-D."""
    tb, kp = logits.shape
    col_ids = jax.lax.broadcasted_iota(jnp.int32, (tb, kp), 1)
    max_val = jnp.max(logits, axis=1, keepdims=True)
    return jnp.min(jnp.where(logits == max_val, col_ids, kp),
                   axis=1, keepdims=True)


def _decide(logits, labels, distances, best_dist, found_i32, targeted):
    adv_labels = _first_argmax(logits)                       # [TB, 1] int32
    eq = adv_labels == labels
    successful = eq if targeted else jnp.logical_not(eq)
    found = found_i32 != 0
    better = distances < best_dist
    replace = successful & (better | jnp.logical_not(found))
    new_dist = jnp.where(replace, distances, best_dist)
    new_found = (found | replace).astype(jnp.int32)
    return replace, new_dist, new_found


# ----------------------------------------------------------------------------
# kernel A: weight fully resident in VMEM, 1-D grid over the batch
# ----------------------------------------------------------------------------
def _kernel_resident(x_ref, gen_ref, best_ref, w_ref, b_ref,
                     lab_ref, bd_ref, fa_ref,
                     out_ref, nbest_ref, ndist_ref, nfound_ref,
                     *, targeted):
    x = x_ref[...].astype(jnp.float32)                        # [TB, D]

    # model(x): linear classifier on the MXU, f32-exact accumulation.
    logits = jnp.dot(x, w_ref[...].astype(jnp.float32),
                     preferred_element_type=jnp.float32,
                     precision=jax.lax.Precision.HIGHEST) + b_ref[...]
    out_ref[...] = logits                                     # lane-dense [TB, KP]

    # adversarial_distance(genuines, x, p=2): VPU square + cross-lane reduce
    # (keeps the vector-extended slot free for the classifier matmul).
    diff = gen_ref[...].astype(jnp.float32) - x
    distances = jnp.sqrt(jnp.sum(diff * diff, axis=1, keepdims=True))

    replace, new_dist, new_found = _decide(
        logits, lab_ref[...], distances, bd_ref[...], fa_ref[...], targeted)

    ndist_ref[...] = new_dist
    nfound_ref[...] = new_found
    # best replacement: old rows arrive via the auto-pipeline, the writeback
    # overlaps the next tile's compute (no manual DMA / no stall).
    nbest_ref[...] = jnp.where(replace, x,
                               best_ref[...].astype(jnp.float32)
                               ).astype(nbest_ref.dtype)


# ----------------------------------------------------------------------------
# kernel B: feature (D) axis tiled; logits / sum-of-squares accumulated in VMEM
# ----------------------------------------------------------------------------
def _kernel_dtiled(x_ref, gen_ref, w_ref, b_ref, lab_ref, bd_ref, fa_ref,
                   out_ref, rep_ref, ndist_ref, nfound_ref,
                   logit_acc, sq_acc, *, targeted):
    k = pl.program_id(1)

    @pl.when(k == 0)
    def _():
        logit_acc[...] = jnp.zeros_like(logit_acc)
        sq_acc[...] = jnp.zeros_like(sq_acc)

    x = x_ref[...].astype(jnp.float32)                        # [TB, TD]
    logit_acc[...] += jnp.dot(x, w_ref[...].astype(jnp.float32),
                              preferred_element_type=jnp.float32,
                              precision=jax.lax.Precision.HIGHEST)
    diff = gen_ref[...].astype(jnp.float32) - x
    sq_acc[...] += jnp.sum(diff * diff, axis=1, keepdims=True)

    @pl.when(k == pl.num_programs(1) - 1)
    def _():
        logits = logit_acc[...] + b_ref[...]
        out_ref[...] = logits
        distances = jnp.sqrt(sq_acc[...])
        replace, new_dist, new_found = _decide(
            logits, lab_ref[...], distances, bd_ref[...], fa_ref[...], targeted)
        rep_ref[...] = replace.astype(jnp.int32)
        ndist_ref[...] = new_dist
        nfound_ref[...] = new_found


# ----------------------------------------------------------------------------
# host-side tiling / wrapper
# ----------------------------------------------------------------------------
def _vmem_budget():
    try:
        cap = int(pltpu.get_tpu_info().vmem_capacity_bytes)
    except Exception:
        cap = 64 * 1024 * 1024          # conservative default (v7x per-TC VMEM)
    # ~70% of physical VMEM for the tile working set, ~85% as the Mosaic scoped
    # limit -> headroom for internal scratch on v7x, large tiles on v5e/v6e.
    return int(cap * 0.70), int(cap * 0.85)


def _pick_batch_tile(batch, bytes_per_row, resident_bytes, budget, max_tile=2048):
    avail = max(budget - resident_bytes, 8 * bytes_per_row)
    max_rows = max(8, min(max_tile, avail // max(bytes_per_row, 1)))
    # Prefer a multiple-of-8 divisor of `batch`: no wrapper-side pad copies.
    t = (min(max_rows, batch) // 8) * 8
    while t >= 8:
        if batch % t == 0:
            return t, batch
        t -= 8
    if batch <= max_rows:               # whole batch in one tile (full-dim block)
        return batch, batch
    tb = max(8, (max_rows // 8) * 8)    # fall back to padding the batch
    return tb, _round_up(batch, tb)


def _pad_rows(a, pb):
    b = a.shape[0]
    if pb == b:
        return a
    return jnp.pad(a, ((0, pb - b),) + ((0, 0),) * (a.ndim - 1))


def best_sample_forward(x, genuines, weight, bias, labels,
                        best, best_distances, found_adversarial,
                        *, targeted=False, p=2, feature_tile=None):
    """BestSampleWrapper.forward with active_mask=None, filter_=None.

    Returns (outputs, new_best, new_best_distances, new_found_adversarial).
    """
    if p != 2:
        # TODO(synk): only tracker.p == 2 (L2) is implemented in-kernel.
        raise NotImplementedError("only p == 2 is implemented")

    B = int(x.shape[0])
    D = 1
    for s in x.shape[1:]:
        D *= int(s)
    K = int(weight.shape[1])
    KP = _round_up(max(K, 1), 128)      # lane-dense class dimension

    stream_dtype = x.dtype              # stream x/genuines/best as-is (bf16 OK)
    esz = jnp.dtype(stream_dtype).itemsize
    f32 = jnp.float32

    budget, vmem_limit = _vmem_budget()

    x_flat = x.reshape(B, D)
    gen_flat = genuines.reshape(B, D).astype(stream_dtype)
    best_flat = best.reshape(B, D).astype(stream_dtype)
    labels2d = labels.reshape(B, 1).astype(jnp.int32)
    bestdist2d = best_distances.reshape(B, 1).astype(f32)
    found2d = found_adversarial.reshape(B, 1).astype(jnp.int32)

    w_pad = jnp.pad(weight.astype(f32), ((0, 0), (0, KP - K)))
    b_pad = jnp.pad(bias.reshape(1, K).astype(f32), ((0, 0), (0, KP - K)),
                    constant_values=_NEG_LARGE)

    resident_w = 2 * (D * KP + KP) * 4  # weight+bias (constant index map, 2 bufs)
    use_d_tiling = (feature_tile is not None) or (resident_w > budget // 3)

    if not use_d_tiling:
        # -------------------- weight-resident path --------------------------
        per_row = 8 * D * esz + 2 * KP * 4 + 256
        TB, PB = _pick_batch_tile(B, per_row, resident_w, budget)

        x_p = _pad_rows(x_flat, PB)
        gen_p = _pad_rows(gen_flat, PB)
        best_p = _pad_rows(best_flat, PB)
        lab_p = _pad_rows(labels2d, PB)
        bd_p = _pad_rows(bestdist2d, PB)
        fa_p = _pad_rows(found2d, PB)

        row_big = pl.BlockSpec((TB, D), lambda i: (i, 0))
        row_small = pl.BlockSpec((TB, 1), lambda i: (i, 0))

        outputs, new_best, new_dist, new_found = pl.pallas_call(
            functools.partial(_kernel_resident, targeted=targeted),
            grid=(PB // TB,),
            in_specs=[row_big, row_big, row_big,
                      pl.BlockSpec((D, KP), lambda i: (0, 0)),   # weight (resident)
                      pl.BlockSpec((1, KP), lambda i: (0, 0)),   # bias   (resident)
                      row_small, row_small, row_small],
            out_specs=(pl.BlockSpec((TB, KP), lambda i: (i, 0)),  # logits
                       row_big,                                   # new_best
                       row_small, row_small),
            out_shape=(jax.ShapeDtypeStruct((PB, KP), f32),
                       jax.ShapeDtypeStruct((PB, D), stream_dtype),
                       jax.ShapeDtypeStruct((PB, 1), f32),
                       jax.ShapeDtypeStruct((PB, 1), jnp.int32)),
            compiler_params=pltpu.CompilerParams(
                dimension_semantics=("parallel",),
                vmem_limit_bytes=vmem_limit),
        )(x_p, gen_p, best_p, w_pad, b_pad, lab_p, bd_p, fa_p)

        new_best_full = new_best[:B].reshape(x.shape)

    else:
        # -------------------- D-tiled path (large feature counts) ------------
        Dp = _round_up(D, 128)
        td_cap = feature_tile if feature_tile is not None else 2048
        TD = min(Dp, max(128, _round_up(int(td_cap), 128)))
        while TD > 128 and Dp % TD != 0:
            TD -= 128
        nd = Dp // TD

        x_f = x_flat if Dp == D else jnp.pad(x_flat, ((0, 0), (0, Dp - D)))
        gen_f = gen_flat if Dp == D else jnp.pad(gen_flat, ((0, 0), (0, Dp - D)))
        w_p = w_pad if Dp == D else jnp.pad(w_pad, ((0, Dp - D), (0, 0)))

        resident_b = 2 * TD * KP * 4 + 2 * KP * 4
        per_row = 4 * TD * esz + 3 * KP * 4 + 256
        TB, PB = _pick_batch_tile(B, per_row, resident_b, budget)

        x_p = _pad_rows(x_f, PB)
        gen_p = _pad_rows(gen_f, PB)
        lab_p = _pad_rows(labels2d, PB)
        bd_p = _pad_rows(bestdist2d, PB)
        fa_p = _pad_rows(found2d, PB)

        small = pl.BlockSpec((TB, 1), lambda i, k: (i, 0))

        outputs, rep, new_dist, new_found = pl.pallas_call(
            functools.partial(_kernel_dtiled, targeted=targeted),
            grid=(PB // TB, nd),
            in_specs=[pl.BlockSpec((TB, TD), lambda i, k: (i, k)),   # x
                      pl.BlockSpec((TB, TD), lambda i, k: (i, k)),   # genuines
                      pl.BlockSpec((TD, KP), lambda i, k: (k, 0)),   # weight chunk
                      pl.BlockSpec((1, KP), lambda i, k: (0, 0)),    # bias
                      small, small, small],
            out_specs=(pl.BlockSpec((TB, KP), lambda i, k: (i, 0)),  # logits
                       small, small, small),
            out_shape=(jax.ShapeDtypeStruct((PB, KP), f32),
                       jax.ShapeDtypeStruct((PB, 1), jnp.int32),     # replace mask
                       jax.ShapeDtypeStruct((PB, 1), f32),
                       jax.ShapeDtypeStruct((PB, 1), jnp.int32)),
            scratch_shapes=[pltpu.VMEM((TB, KP), f32),               # logits acc
                            pltpu.VMEM((TB, 1), f32)],               # sum-sq acc
            compiler_params=pltpu.CompilerParams(
                dimension_semantics=("parallel", "arbitrary"),
                vmem_limit_bytes=vmem_limit),
        )(x_p, gen_p, w_p, b_pad, lab_p, bd_p, fa_p)

        # TODO(synk): in the D-tiled path the best-sample select runs as a fused
        # XLA where() outside the kernel (an in-kernel writeback would need a
        # second pass over x/best, doubling HBM reads).
        sel = rep[:B, 0].astype(bool).reshape((B,) + (1,) * (x.ndim - 1))
        new_best_full = jnp.where(sel, x, best.astype(x.dtype))

    return (outputs[:B, :K],
            new_best_full,
            new_dist[:B, 0],
            new_found[:B, 0].astype(bool))


# ----------------------------------------------------------------------------
# pure-JAX reference (mirrors the PyTorch forward) + demo
# ----------------------------------------------------------------------------
def _reference_forward(x, genuines, weight, bias, labels, best,
                       best_distances, found_adversarial, *, targeted=False):
    B = x.shape[0]
    xf = x.reshape(B, -1).astype(jnp.float32)
    gf = genuines.reshape(B, -1).astype(jnp.float32)
    logits = jnp.dot(xf, weight.astype(jnp.float32),
                     precision=jax.lax.Precision.HIGHEST) + bias.astype(jnp.float32)
    adv = jnp.argmax(logits, axis=1).astype(jnp.int32)
    eq = adv == labels.astype(jnp.int32)
    successful = eq if targeted else ~eq
    distances = jnp.sqrt(jnp.sum((gf - xf) ** 2, axis=1))
    found = found_adversarial.astype(bool)
    better = distances < best_distances.astype(jnp.float32)
    replace = successful & (better | ~found)
    sel = replace.reshape((B,) + (1,) * (x.ndim - 1))
    new_best = jnp.where(sel, x, best.astype(x.dtype))
    new_dist = jnp.where(replace, distances, best_distances.astype(jnp.float32))
    new_found = found | replace
    return logits, new_best, new_dist, new_found


if __name__ == "__main__":
    import numpy as np

    B, C, H, W = 2, 4, 16, 16
    K = 8
    D = C * H * W

    key = jax.random.PRNGKey(0)
    k1, k2, k3, k4, k5, k6 = jax.random.split(key, 6)

    genuines = jax.random.normal(k1, (B, C, H, W), jnp.float32)
    x = genuines + 0.1 * jax.random.normal(k2, (B, C, H, W), jnp.float32)
    weight = 0.05 * jax.random.normal(k3, (D, K), jnp.float32)
    bias = 0.05 * jax.random.normal(k4, (K,), jnp.float32)
    labels = jax.random.randint(k5, (B,), 0, K, dtype=jnp.int32)

    best = jnp.array(genuines)
    best_distances = jnp.full((B,), jnp.inf, jnp.float32)
    found = jnp.zeros((B,), jnp.bool_)

    def check(got, want, what, rtol=1e-4, atol=1e-5):
        np.testing.assert_allclose(np.asarray(jnp.asarray(got, jnp.float32)),
                                   np.asarray(jnp.asarray(want, jnp.float32)),
                                   rtol=rtol, atol=atol, err_msg=what)

    # --- call 1: weight-resident path (nothing found yet) --------------------
    out = best_sample_forward(x, genuines, weight, bias, labels,
                              best, best_distances, found, targeted=False)
    jax.block_until_ready(out)
    ref = _reference_forward(x, genuines, weight, bias, labels,
                             best, best_distances, found, targeted=False)
    check(out[0], ref[0], "logits")
    check(out[1], ref[1], "new_best", rtol=0, atol=0)
    check(out[2], ref[2], "new_best_distances")
    assert bool(jnp.all(out[3] == ref[3])), "found_adversarial mismatch"

    # --- call 2: attack-loop step consuming the updated tracker state --------
    x2 = genuines + 0.25 * jax.random.normal(k6, (B, C, H, W), jnp.float32)
    out2 = best_sample_forward(x2, genuines, weight, bias, labels,
                               out[1], out[2], out[3], targeted=False)
    jax.block_until_ready(out2)
    ref2 = _reference_forward(x2, genuines, weight, bias, labels,
                              ref[1], ref[2], ref[3], targeted=False)
    check(out2[0], ref2[0], "logits (call 2)")
    check(out2[1], ref2[1], "new_best (call 2)")
    check(out2[2], ref2[2], "new_best_distances (call 2)")
    assert bool(jnp.all(out2[3] == ref2[3])), "found mismatch (call 2)"

    # --- D-tiled path (forced feature tiling, as used for large D on v7x) ----
    out3 = best_sample_forward(x, genuines, weight, bias, labels,
                               best, best_distances, found,
                               targeted=False, feature_tile=256)
    jax.block_until_ready(out3)
    check(out3[0], ref[0], "logits (D-tiled)")
    check(out3[1], ref[1], "new_best (D-tiled)", rtol=0, atol=0)
    check(out3[2], ref[2], "new_best_distances (D-tiled)")
    assert bool(jnp.all(out3[3] == ref[3])), "found mismatch (D-tiled)"

    # --- bf16 streaming smoke test (halves HBM bytes for x/genuines/best) ----
    xb, gb, bb = (a.astype(jnp.bfloat16) for a in (x, genuines, best))
    outb = best_sample_forward(xb, gb, weight, bias, labels,
                               bb, best_distances, found, targeted=False)
    jax.block_until_ready(outb)
    refb = _reference_forward(xb, gb, weight, bias, labels, bb,
                              best_distances, found, targeted=False)
    check(outb[0], refb[0], "logits (bf16 streams)", rtol=2e-3, atol=2e-3)
    check(outb[2], refb[2], "distances (bf16 streams)", rtol=2e-3, atol=2e-3)

    print("KERNEL_OK")
</pallas_src>

<mosaic_0001>
module attributes {stable_mosaic.version = 11 : i64} {
  func.func @_kernel_resident(%arg0: i32, %arg1: memref<2x1024xf32, #tpu.memory_space<vmem>>, %arg2: memref<2x1024xf32, #tpu.memory_space<vmem>>, %arg3: memref<2x1024xf32, #tpu.memory_space<vmem>>, %arg4: memref<1024x128xf32, #tpu.memory_space<vmem>>, %arg5: memref<1x128xf32, #tpu.memory_space<vmem>>, %arg6: memref<2x1xi32, #tpu.memory_space<vmem>>, %arg7: memref<2x1xf32, #tpu.memory_space<vmem>>, %arg8: memref<2x1xi32, #tpu.memory_space<vmem>>, %arg9: memref<2x128xf32, #tpu.memory_space<vmem>>, %arg10: memref<2x1024xf32, #tpu.memory_space<vmem>>, %arg11: memref<2x1xf32, #tpu.memory_space<vmem>>, %arg12: memref<2x1xi32, #tpu.memory_space<vmem>>) attributes {dimension_semantics = [#tpu.dimension_semantics<parallel>], iteration_bounds = array<i64: 1>, scalar_prefetch = 0 : i64, scratch_operands = 0 : i64, tpu.core_type = #tpu.core_type<tc>, window_params = [{transform_indices = @transform_0, window_bounds = array<i64: 2, 1024>}, {transform_indices = @transform_1, window_bounds = array<i64: 2, 1024>}, {transform_indices = @transform_2, window_bounds = array<i64: 2, 1024>}, {pipeline_mode = #tpu.pipeline_mode<synchronous>, transform_indices = @transform_3, window_bounds = array<i64: 1024, 128>}, {pipeline_mode = #tpu.pipeline_mode<synchronous>, transform_indices = @transform_4, window_bounds = array<i64: 1, 128>}, {transform_indices = @transform_5, window_bounds = array<i64: 2, 1>}, {transform_indices = @transform_6, window_bounds = array<i64: 2, 1>}, {transform_indices = @transform_7, window_bounds = array<i64: 2, 1>}, {transform_indices = @transform_8, window_bounds = array<i64: 2, 128>}, {transform_indices = @transform_9, window_bounds = array<i64: 2, 1024>}, {transform_indices = @transform_10, window_bounds = array<i64: 2, 1>}, {transform_indices = @transform_11, window_bounds = array<i64: 2, 1>}]} {
    %c0 = arith.constant 0 : index
    %c0_0 = arith.constant 0 : index
    %0 = vector.load %arg1[%c0, %c0_0] : memref<2x1024xf32, #tpu.memory_space<vmem>>, vector<2x1024xf32>
    %c0_1 = arith.constant 0 : index
    %c0_2 = arith.constant 0 : index
    %1 = vector.load %arg4[%c0_1, %c0_2] : memref<1024x128xf32, #tpu.memory_space<vmem>>, vector<1024x128xf32>
    %cst = arith.constant dense<0.000000e+00> : vector<2x128xf32>
    %2 = tpu.matmul %0, %1, %cst {dimension_numbers = #tpu.dot_dimension_numbers<[1], [0], [0], [1], [0, 0, 1, 1], [], []>, precision = #tpu.contract_precision<fp32>} : vector<2x1024xf32>, vector<1024x128xf32>, vector<2x128xf32> -> vector<2x128xf32>
    %c0_3 = arith.constant 0 : index
    %c0_4 = arith.constant 0 : index
    %3 = vector.load %arg5[%c0_3, %c0_4] : memref<1x128xf32, #tpu.memory_space<vmem>>, vector<1x128xf32>
    %4 = vector.broadcast %3 : vector<1x128xf32> to vector<2x128xf32>
    %5 = arith.addf %2, %4 : vector<2x128xf32>
    %c0_5 = arith.constant 0 : index
    %c0_6 = arith.constant 0 : index
    %6 = vector.load %arg9[%c0_5, %c0_6] : memref<2x128xf32, #tpu.memory_space<vmem>>, vector<2x128xf32>
    tpu.vector_store %arg9[%c0_5, %c0_6], %5 {strides = array<i32>} : memref<2x128xf32, #tpu.memory_space<vmem>>, vector<2x128xf32>,
    %c0_7 = arith.constant 0 : index
    %c0_8 = arith.constant 0 : index
    %7 = vector.load %arg2[%c0_7, %c0_8] : memref<2x1024xf32, #tpu.memory_space<vmem>>, vector<2x1024xf32>
    %8 = arith.subf %7, %0 : vector<2x1024xf32>
    %9 = arith.mulf %8, %8 : vector<2x1024xf32>
    %cst_9 = arith.constant dense<0.000000e+00> : vector<2xf32>
    %10 = vector.multi_reduction <add>, %9, %cst_9 [1] : vector<2x1024xf32> to vector<2xf32>
    %11 = vector.shape_cast %10 : vector<2xf32> to vector<2x1xf32>
    %12 = math.sqrt %11 : vector<2x1xf32>
    %c0_10 = arith.constant 0 : index
    %c0_11 = arith.constant 0 : index
    %13 = vector.load %arg6[%c0_10, %c0_11] : memref<2x1xi32, #tpu.memory_space<vmem>>, vector<2x1xi32>
    %c0_12 = arith.constant 0 : index
    %c0_13 = arith.constant 0 : index
    %14 = vector.load %arg7[%c0_12, %c0_13] : memref<2x1xf32, #tpu.memory_space<vmem>>, vector<2x1xf32>
    %c0_14 = arith.constant 0 : index
    %c0_15 = arith.constant 0 : index
    %15 = vector.load %arg8[%c0_14, %c0_15] : memref<2x1xi32, #tpu.memory_space<vmem>>, vector<2x1xi32>
    %16 = tpu.iota {dimensions = array<i32: 1>} : vector<2x128xi32>
    %cst_16 = arith.constant dense<0xFF800000> : vector<2xf32>
    %17 = vector.multi_reduction <maximumf>, %5, %cst_16 [1] : vector<2x128xf32> to vector<2xf32>
    %18 = vector.shape_cast %17 : vector<2xf32> to vector<2x1xf32>
    %19 = vector.broadcast %18 : vector<2x1xf32> to vector<2x128xf32>
    %20 = arith.cmpf oeq, %5, %19 : vector<2x128xf32>
    %c128_i32 = arith.constant 128 : i32
    %21 = vector.broadcast %c128_i32 : i32 to vector<2x128xi32>
    %22 = arith.select %20, %16, %21 : vector<2x128xi1>, vector<2x128xi32>
    %cst_17 = arith.constant dense<2147483647> : vector<2xi32>
    %23 = vector.multi_reduction <minsi>, %22, %cst_17 [1] : vector<2x128xi32> to vector<2xi32>
    %24 = vector.shape_cast %23 : vector<2xi32> to vector<2x1xi32>
    %25 = arith.cmpi eq, %24, %13 : vector<2x1xi32>
    %cst_18 = arith.constant dense<true> : vector<2x1xi1>
    %26 = arith.xori %25, %cst_18 : vector<2x1xi1>
    %c0_i32 = arith.constant 0 : i32
    %27 = vector.broadcast %c0_i32 : i32 to vector<2x1xi32>
    %28 = arith.cmpi ne, %15, %27 : vector<2x1xi32>
    %29 = arith.cmpf olt, %12, %14 : vector<2x1xf32>
    %cst_19 = arith.constant dense<true> : vector<2x1xi1>
    %30 = arith.xori %28, %cst_19 : vector<2x1xi1>
    %31 = arith.ori %29, %30 : vector<2x1xi1>
    %32 = arith.andi %26, %31 : vector<2x1xi1>
    %33 = arith.select %32, %12, %14 : vector<2x1xi1>, vector<2x1xf32>
    %34 = arith.ori %28, %32 : vector<2x1xi1>
    %35 = arith.extui %34 : vector<2x1xi1> to vector<2x1xi32>
    %c0_20 = arith.constant 0 : index
    %c0_21 = arith.constant 0 : index
    %36 = vector.load %arg11[%c0_20, %c0_21] : memref<2x1xf32, #tpu.memory_space<vmem>>, vector<2x1xf32>
    tpu.vector_store %arg11[%c0_20, %c0_21], %33 {strides = array<i32>} : memref<2x1xf32, #tpu.memory_space<vmem>>, vector<2x1xf32>,
    %c0_22 = arith.constant 0 : index
    %c0_23 = arith.constant 0 : index
    %37 = vector.load %arg12[%c0_22, %c0_23] : memref<2x1xi32, #tpu.memory_space<vmem>>, vector<2x1xi32>
    tpu.vector_store %arg12[%c0_22, %c0_23], %35 {strides = array<i32>} : memref<2x1xi32, #tpu.memory_space<vmem>>, vector<2x1xi32>,
    %c0_24 = arith.constant 0 : index
    %c0_25 = arith.constant 0 : index
    %38 = vector.load %arg3[%c0_24, %c0_25] : memref<2x1024xf32, #tpu.memory_space<vmem>>, vector<2x1024xf32>
    %39 = vector.shape_cast %32 : vector<2x1xi1> to vector<2x1xi1>
    %40 = vector.broadcast %39 : vector<2x1xi1> to vector<2x1024xi1>
    %41 = arith.select %40, %0, %38 : vector<2x1024xi1>, vector<2x1024xf32>
    %c0_26 = arith.constant 0 : index
    %c0_27 = arith.constant 0 : index
    %42 = vector.load %arg10[%c0_26, %c0_27] : memref<2x1024xf32, #tpu.memory_space<vmem>>, vector<2x1024xf32>
    tpu.vector_store %arg10[%c0_26, %c0_27], %41 {strides = array<i32>} : memref<2x1024xf32, #tpu.memory_space<vmem>>, vector<2x1024xf32>,
    return
  }
  func.func @transform_0(%arg0: i32) -> (i32, i32) {
    %c0_i32 = arith.constant 0 : i32
    %c0_i32_0 = arith.constant 0 : i32
    return %arg0, %c0_i32 : i32, i32
  }
  func.func @transform_1(%arg0: i32) -> (i32, i32) {
    %c0_i32 = arith.constant 0 : i32
    %c0_i32_0 = arith.constant 0 : i32
    return %arg0, %c0_i32 : i32, i32
  }
  func.func @transform_2(%arg0: i32) -> (i32, i32) {
    %c0_i32 = arith.constant 0 : i32
    %c0_i32_0 = arith.constant 0 : i32
    return %arg0, %c0_i32 : i32, i32
  }
  func.func @transform_3(%arg0: i32) -> (i32, i32) {
    %c0_i32 = arith.constant 0 : i32
    %c0_i32_0 = arith.constant 0 : i32
    %c0_i32_1 = arith.constant 0 : i32
    return %c0_i32, %c0_i32_0 : i32, i32
  }
  func.func @transform_4(%arg0: i32) -> (i32, i32) {
    %c0_i32 = arith.constant 0 : i32
    %c0_i32_0 = arith.constant 0 : i32
    %c0_i32_1 = arith.constant 0 : i32
    return %c0_i32, %c0_i32_0 : i32, i32
  }
  func.func @transform_5(%arg0: i32) -> (i32, i32) {
    %c0_i32 = arith.constant 0 : i32
    %c0_i32_0 = arith.constant 0 : i32
    return %arg0, %c0_i32 : i32, i32
  }
  func.func @transform_6(%arg0: i32) -> (i32, i32) {
    %c0_i32 = arith.constant 0 : i32
    %c0_i32_0 = arith.constant 0 : i32
    return %arg0, %c0_i32 : i32, i32
  }
  func.func @transform_7(%arg0: i32) -> (i32, i32) {
    %c0_i32 = arith.constant 0 : i32
    %c0_i32_0 = arith.constant 0 : i32
    return %arg0, %c0_i32 : i32, i32
  }
  func.func @transform_8(%arg0: i32) -> (i32, i32) {
    %c0_i32 = arith.constant 0 : i32
    %c0_i32_0 = arith.constant 0 : i32
    return %arg0, %c0_i32 : i32, i32
  }
  func.func @transform_9(%arg0: i32) -> (i32, i32) {
    %c0_i32 = arith.constant 0 : i32
    %c0_i32_0 = arith.constant 0 : i32
    return %arg0, %c0_i32 : i32, i32
  }
  func.func @transform_10(%arg0: i32) -> (i32, i32) {
    %c0_i32 = arith.constant 0 : i32
    %c0_i32_0 = arith.constant 0 : i32
    return %arg0, %c0_i32 : i32, i32
  }
  func.func @transform_11(%arg0: i32) -> (i32, i32) {
    %c0_i32 = arith.constant 0 : i32
    %c0_i32_0 = arith.constant 0 : i32
    return %arg0, %c0_i32 : i32, i32
  }
}

</mosaic_0001>

<bundles_post_ra>
// kernel: tpu_custom_call.1
= control target key start
LH: loop header
LB: loop body
LE: loop exit
PB: predicated region body
PF: predicated region fallthrough
CT: control target
= control target key end

     0   :  { %17 = vsyncpa [#allocation3], 0  ;;  %s8524_s0 = inlined_call_operand.hbm [shape: f32[2,1024], index: 0, kind: input, shape index: {}]   ;;  %s8525_s1 = inlined_call_operand.hbm [shape: f32[2,1024], index: 1, kind: input, shape index: {}]   ;;  %s8526_s2 = inlined_call_operand.vmem [shape: f32[2,1024], index: 2, kind: input, shape index: {}]   ;;  %s8527_s3 = inlined_call_operand.hbm [shape: f32[1024,128], index: 3, kind: input, shape index: {}]   ;;  %s8528_s4 = inlined_call_operand.vmem [shape: f32[1,128], index: 4, kind: input, shape index: {}]   ;;  %s8529_s5 = inlined_call_operand.vmem [shape: s32[2,1], index: 5, kind: input, shape index: {}]   ;;  %s8530_s6 = inlined_call_operand.vmem [shape: f32[2,1], index: 6, kind: input, shape index: {}]   ;;  %s8531_s7 = inlined_call_operand.vmem [shape: s32[2,1], index: 7, kind: input, shape index: {}]   ;;  %s8532_s8 = inlined_call_operand.hbm [shape: f32[2,128], index: 8, kind: output, shape index: {0}]   ;;  %s8533_s9 = inlined_call_operand.hbm [shape: f32[2,1024], index: 9, kind: output, shape index: {1}]   ;;  %s8534_s10 = inlined_call_operand.vmem [shape: f32[2,1], index: 10, kind: output, shape index: {2}]   ;;  %s8535_s11 = inlined_call_operand.vmem [shape: s32[2,1], index: 11, kind: output, shape index: {3}]  }
   0x1   :  { %18 = vsyncpa [#allocation6], 0 }
   0x2   :  { %19 = vsyncpa [#allocation4], 0 }
   0x3   :  { %20 = vsyncpa [#allocation10], 0  ;;  %s5704_s17 = smov [#allocation5]   ;;  %s5705_s19 = smov [#allocation2]  }
   0x4   :  { %s37_s18 = sshll.u32 %s5704_s17, 4  ;;  %s27_s20 = sshll.u32 %s5705_s19, 4  ;;  %s38_s18 = int_to_ptr.vmem [resolvable:$true] %s37_s18  ;;  %s28_s20 = int_to_ptr.vmem [resolvable:$true] %s27_s20 }
   0x5   :  { %s5586_s23 = scalar_lea.hbm %s8525_s1, 256 }
   0x6   :  { %p5587_p0 = scmp.ne.s32.totalorder %s8525_s1, %s5586_s23  ;;  %p5590_p1 = scmp.lt.u32.totalorder %s5586_s23, %s8525_s1 }
   0x8   :  { %p5592_p2 = pnand %p5590_p1, %p5587_p0 }
   0xa   :  { %5595 = shalt.err (!%p5592_p2)
}
   0xb   :  { %s5596_s28 = scalar_lea.vmem %s38_s18, 256  ;;  %p5601_p4 = scmp.lt.s32.totalorder %s38_s18, %s38_s18 }
   0xc   :  { %p5597_p3 = scmp.ne.s32.totalorder %s38_s18, %s5596_s28  ;;  %p5602_p5 = scmp.lt.s32.totalorder %s5596_s28, %s5596_s28 }
   0xe   :  { %p5603_p6 = por %p5602_p5, %p5601_p4 }
  0x10   :  { %p5604_p7 = pnand %p5603_p6, %p5597_p3 }
  0x12   :  { %5607 = shalt.err (!%p5604_p7)
}
  0x13   :  { %40 = dma.hbm_to_vmem [thread:$0]  %s8525_s1, 256, %s38_s18, [#allocation6]  }
  0x14   :  { %s5608_s14 = scalar_lea.hbm %s8524_s0, 256 }
  0x15   :  { %p5609_p8 = scmp.ne.s32.totalorder %s8524_s0, %s5608_s14  ;;  %p5612_p9 = scmp.lt.u32.totalorder %s5608_s14, %s8524_s0 }
  0x17   :  { %p5614_p10 = pnand %p5612_p9, %p5609_p8 }
  0x19   :  { %5617 = shalt.err (!%p5614_p10)
}
  0x1a   :  { %s5618_s21 = scalar_lea.vmem %s28_s20, 256  ;;  %p5623_p12 = scmp.lt.s32.totalorder %s28_s20, %s28_s20 }
  0x1b   :  { %p5619_p11 = scmp.ne.s32.totalorder %s28_s20, %s5618_s21  ;;  %p5624_p13 = scmp.lt.s32.totalorder %s5618_s21, %s5618_s21 }
  0x1d   :  { %p5625_p0 = por %p5624_p13, %p5623_p12 }
  0x1f   :  { %p5626_p1 = pnand %p5625_p0, %p5619_p11 }
  0x21   :  { %5629 = shalt.err (!%p5626_p1)
}
  0x22   :  { %30 = dma.hbm_to_vmem [thread:$0]  %s8524_s0, 256, %s28_s20, [#allocation3]  }
  0x23   :  { %s5706_s22 = smov [#allocation7]   ;;  %s5630_s26 = scalar_lea.hbm %s8527_s3, 16384 }
  0x24   :  { %s48_s23 = sshll.u32 %s5706_s22, 4  ;;  %p5631_p2 = scmp.ne.s32.totalorder %s8527_s3, %s5630_s26  ;;  %s49_s23 = int_to_ptr.vmem [resolvable:$true] %s48_s23 }
  0x25   :  { %p5634_p3 = scmp.lt.u32.totalorder %s5630_s26, %s8527_s3 }
  0x27   :  { %p5636_p4 = pnand %p5634_p3, %p5631_p2 }
  0x29   :  { %5639 = shalt.err (!%p5636_p4)
}
  0x2a   :  { %s5640_s12 = scalar_lea.vmem %s49_s23, 16384  ;;  %p5645_p6 = scmp.lt.s32.totalorder %s49_s23, %s49_s23 }
  0x2b   :  { %p5641_p5 = scmp.ne.s32.totalorder %s49_s23, %s5640_s12  ;;  %p5646_p7 = scmp.lt.s32.totalorder %s5640_s12, %s5640_s12 }
  0x2d   :  { %p5647_p8 = por %p5646_p7, %p5645_p6 }
  0x2f   :  { %p5648_p9 = pnand %p5647_p8, %p5641_p5 }
  0x31   :  { %5651 = shalt.err (!%p5648_p9)
}
  0x32   :  { %s5707_s0 = smov 128   ;;  %s5708_s20 = smov 8  }
  0x33   :  { %54 = dma.hbm_to_vmem [thread:$0]  %s8527_s3, 16384, %s49_s23, [#allocation6], %s5707_s0, %s5707_s0, %s5708_s20  }
  0x34   :  { %5696 = dma.done.wait [#allocation3], 256  }
  0x35   :  { %5697 = vsyncadd [#allocation3], 4294967040 }
  0x36   :  { %5698 = dma.done.wait [#allocation6], 16640  }
  0x37   :  { %5699 = vsyncadd [#allocation6], 4294950656  ;;  %v8536_v0 = vlaneseq  ;;  %v5709_v1 = vmov 1983009808   ;;  %v90_v3 = vld [vmem:[#allocation7 + $0x80] sm:$0xff]  ;;  %v91_v4 = vld [vmem:[#allocation7 + $0x88] sm:$0xff] }
  0x38   :  { %v213_v2 = vunpack.c.l.s4 %v5709_v1  ;;  %v74_v5 = vld [vmem:[#allocation7] sm:$0xff]  ;;  %v302_v7 = vand.u32 4294901760, %v90_v3  ;;  %v305_v8 = vand.u32 4294901760, %v91_v4  ;;  %v75_v9 = vld [vmem:[#allocation7 + $0x8] sm:$0xff]  ;;  %v92_v11 = vld [vmem:[#allocation7 + $0x90] sm:$0xff]  ;;  %vm3752_vm0 = vcmask 1041408  }
  0x39   :  { %v216_v6 = vshrl.u32 %v8536_v0, 7  ;;  %v254_v10 = vand.u32 4294901760, %v74_v5  ;;  %v93_v12 = vld [vmem:[#allocation7 + $0x98] sm:$0xff]  ;;  %v257_v14 = vand.u32 4294901760, %v75_v9  ;;  %v308_v15 = vand.u32 4294901760, %v92_v11  ;;  %v76_v17 = vld [vmem:[#allocation7 + $0x10] sm:$0xff] }
  0x3a   :  { %v214_v13 = vunpack.c.0.s8 %v213_v2  ;;  %v311_v16 = vand.u32 4294901760, %v93_v12  ;;  %v77_v18 = vld [vmem:[#allocation7 + $0x18] sm:$0xff]  ;;  %v5811_v19 = vpack.c.bf16 %v305_v8, %v302_v7  ;;  %v260_v21 = vand.u32 4294901760, %v76_v17  ;;  %v94_v23 = vld [vmem:[#allocation7 + $0xa0] sm:$0xff]  ;;  %v95_v24 = vld [vmem:[#allocation7 + $0xa8] sm:$0xff]  ;;  %s5712_s22 = smov [#allocation8]  }
  0x3b   :  { %v5813_v20 = vsub.f32 %v74_v5, %v254_v10  ;;  %v263_v22 = vand.u32 4294901760, %v77_v18  ;;  %v5815_v25 = vpack.c.bf16 %v257_v14, %v254_v10  ;;  %v5817_v26 = vsub.f32 %v75_v9, %v257_v14  ;;  %v78_v28 = vld [vmem:[#allocation7 + $0x20] sm:$0xff]  ;;  %v79_v29 = vld [vmem:[#allocation7 + $0x28] sm:$0xff]  ;;  %v96_v42 = vld [vmem:[#allocation7 + $0xb0] sm:$0xff]  ;;  %s3926_s23 = sshll.u32 %s5712_s22, 4  ;;  %s3927_s23 = int_to_ptr.vmem [resolvable:$true] %s3926_s23 }
  0x3c   :  { %v5819_v27 = vpack.c.bf16 %v311_v16, %v308_v15  ;;  %4800 = vmatprep.subr.bf16.mxu0 %v5811_v19  ;;  %v5822_v30 = vsub.f32 %v92_v11, %v308_v15  ;;  %v5824_v31 = vsub.f32 %v93_v12, %v311_v16  ;;  %v5828_v33 = vsub.s32 %v214_v13, %v216_v6  ;;  %v97_v47 = vld [vmem:[#allocation7 + $0xb8] sm:$0xff]  ;;  %v80_v60 = vld [vmem:[#allocation7 + $0x30] sm:$0xff]  ;;  %v98_v11 = vld [vmem:[#allocation7 + $0xc0] sm:$0xff]  ;;  %s5652_s24 = scalar_lea.vmem %s3927_s23, 32  ;;  %p5657_p11 = scmp.lt.s32.totalorder %s3927_s23, %s3927_s23 }
  0x3d   :  { %v5826_v32 = vpack.c.bf16 %v263_v22, %v260_v21  ;;  %4802 = vmatpush3.bf16.msra.mxu0 %v5815_v25  ;;  %v314_v34 = vand.u32 4294901760, %v94_v23  ;;  %v317_v35 = vand.u32 4294901760, %v95_v24  ;;  %v5831_v36 = vsub.f32 %v90_v3, %v302_v7  ;;  %v81_v61 = vld [vmem:[#allocation7 + $0x38] sm:$0xff]  ;;  %v99_v12 = vld [vmem:[#allocation7 + $0xc8] sm:$0xff]  ;;  %p5653_p10 = scmp.ne.s32.totalorder %s3927_s23, %s5652_s24  ;;  %p5658_p12 = scmp.lt.s32.totalorder %s5652_s24, %s5652_s24 }
  0x3e   :  { %8806 = vst [vmem:[#allocation15_spill] sm:$0xff] %v5828_v33  ;;  %v5833_v37 = vsub.f32 %v91_v4, %v305_v8  ;;  %4804 = vmatprep.subr.bf16.mxu0 %v5819_v27  ;;  %v266_v38 = vand.u32 4294901760, %v78_v28  ;;  %v269_v39 = vand.u32 4294901760, %v79_v29  ;;  %v8551_v40 = vand.u32 4294901760, %v5813_v20 }
  0x3f   :  { %v8549_v41 = vand.u32 4294901760, %v5817_v26  ;;  %v5838_v43 = vsub.f32 %v76_v17, %v260_v21  ;;  %v5840_v44 = vsub.f32 %v77_v18, %v263_v22  ;;  %v5842_v45 = vpack.c.bf16 %v317_v35, %v314_v34  ;;  %v82_v17 = vld [vmem:[#allocation7 + $0x40] sm:$0xff]  ;;  %p5659_p13 = por %p5658_p12, %p5657_p11 }
  0x40   :  { %v8554_v46 = vand.u32 4294901760, %v5831_v36  ;;  %v5845_v48 = vsub.f32 %v94_v23, %v314_v34  ;;  %v5847_v49 = vsub.f32 %v95_v24, %v317_v35  ;;  %v8553_v50 = vand.u32 4294901760, %v5833_v37  ;;  %v83_v35 = vld [vmem:[#allocation7 + $0x48] sm:$0xff] }
  0x41   :  { %v5850_v51 = vpack.c.bf16 %v269_v39, %v266_v38  ;;  %4806 = vmatpush3.bf16.msra.mxu0 %v5826_v32  ;;  %v369_v53 = vsub.f32 %v5813_v20, %v8551_v40  ;;  %v376_v54 = vsub.f32 %v5817_v26, %v8549_v41  ;;  %v320_v55 = vand.u32 4294901760, %v96_v42  ;;  %v105_v41 = vld [vmem:[#allocation7 + $0xf8] sm:$0xff]  ;;  %p5660_p0 = pnand %p5659_p13, %p5653_p10 }
  0x42   :  { %v481_v52 = vsub.f32 %v5831_v36, %v8554_v46  ;;  %4808 = vmatprep.subr.bf16.mxu0 %v5842_v45  ;;  %v488_v56 = vsub.f32 %v5833_v37, %v8553_v50  ;;  %v323_v57 = vand.u32 4294901760, %v97_v47  ;;  %v8548_v58 = vand.u32 4294901760, %v5822_v30 }
  0x43   :  { %v8546_v59 = vand.u32 4294901760, %v5824_v31  ;;  %v5868_v63 = vsub.f32 %v78_v28, %v266_v38  ;;  %v370_v1 = vand.u32 4294901760, %v369_v53  ;;  %v377_v2 = vand.u32 4294901760, %v376_v54 }
  0x44   :  { %v482_v62 = vand.u32 4294901760, %v481_v52  ;;  %v489_v3 = vand.u32 4294901760, %v488_v56  ;;  %v5870_v4 = vsub.f32 %v79_v29, %v269_v39  ;;  %v5872_v5 = vpack.c.bf16 %v323_v57, %v320_v55 }
  0x45   :  { %v495_v6 = vsub.f32 %v5822_v30, %v8548_v58  ;;  %4810 = vmatpush3.bf16.msra.mxu0 %v5850_v51  ;;  %v4833_v7 = vpack.c.bf16 %v377_v2, %v370_v1  ;;  %v502_v8 = vsub.f32 %v5824_v31, %v8546_v59  ;;  %v272_v9 = vand.u32 4294901760, %v80_v60  ;;  %v100_v2 = vld [vmem:[#allocation7 + $0xd0] sm:$0xff] }
  0x46   :  { %v275_v10 = vand.u32 4294901760, %v81_v61  ;;  %v4831_v13 = vpack.c.bf16 %v489_v3, %v482_v62  ;;  %4812 = vmatprep.subr.bf16.mxu0 %v5872_v5  ;;  %v8544_v15 = vand.u32 4294901760, %v5838_v43  ;;  %v8543_v16 = vand.u32 4294901760, %v5840_v44  ;;  %v101_v3 = vld [vmem:[#allocation7 + $0xd8] sm:$0xff]  ;;  %v104_v58 = vld [vmem:[#allocation7 + $0xf0] sm:$0xff] }
  0x47   :  { %v496_v14 = vand.u32 4294901760, %v495_v6  ;;  %v5884_v18 = vsub.f32 %v96_v42, %v320_v55  ;;  %v5886_v21 = vsub.f32 %v97_v47, %v323_v57  ;;  %v503_v22 = vand.u32 4294901760, %v502_v8  ;;  %v84_v8 = vld [vmem:[#allocation7 + $0x50] sm:$0xff] }
  0x48   :  { %v5888_v23 = vpack.c.bf16 %v275_v10, %v272_v9  ;;  %4832 = vmatprep.subr.bf16.mxu1 %v4831_v13  ;;  %v383_v24 = vsub.f32 %v5838_v43, %v8544_v15  ;;  %v390_v28 = vsub.f32 %v5840_v44, %v8543_v16  ;;  %v326_v29 = vand.u32 4294901760, %v98_v11 }
  0x49   :  { %v329_v34 = vand.u32 4294901760, %v99_v12  ;;  %4834 = vmatpush3.bf16.msra.mxu1 %v4833_v7  ;;  %v4835_v38 = vpack.c.bf16 %v503_v22, %v496_v14  ;;  %v8541_v39 = vand.u32 4294901760, %v5845_v48  ;;  %v8539_v42 = vand.u32 4294901760, %v5847_v49 }
  0x4a   :  { %4814 = vmatpush3.bf16.msra.mxu0 %v5888_v23  ;;  %v278_v47 = vand.u32 4294901760, %v82_v17  ;;  %v5899_v52 = vsub.f32 %v80_v60, %v272_v9  ;;  %v384_v53 = vand.u32 4294901760, %v383_v24  ;;  %v391_v54 = vand.u32 4294901760, %v390_v28 }
  0x4b   :  { %v5901_v55 = vpack.c.bf16 %v329_v34, %v326_v29  ;;  %4836 = vmatprep.subr.bf16.mxu1 %v4835_v38  ;;  %v5903_v56 = vsub.f32 %v81_v61, %v275_v10  ;;  %v509_v57 = vsub.f32 %v5845_v48, %v8541_v39  ;;  %v516_v62 = vsub.f32 %v5847_v49, %v8539_v42  ;;  %v103_v42 = vld [vmem:[#allocation7 + $0xe8] sm:$0xff] }
  0x4c   :  { %v281_v1 = vand.u32 4294901760, %v83_v35  ;;  %v4837_v60 = vpack.c.bf16 %v391_v54, %v384_v53  ;;  %v5912_v6 = vsub.f32 %v98_v11, %v326_v29  ;;  %v8538_v7 = vand.u32 4294901760, %v5868_v63  ;;  %v85_v29 = vld [vmem:[#allocation7 + $0x58] sm:$0xff] }
  0x4d   :  { %4816 = vmatprep.subr.bf16.mxu0 %v5901_v55  ;;  %v8537_v61 = vand.u32 4294901760, %v5870_v4  ;;  %v5916_v9 = vsub.f32 %v99_v12, %v329_v34  ;;  %v510_v10 = vand.u32 4294901760, %v509_v57  ;;  %v517_v13 = vand.u32 4294901760, %v516_v62 }
  0x4e   :  { %v5918_v14 = vpack.c.bf16 %v281_v1, %v278_v47  ;;  %4838 = vmatpush3.bf16.msra.mxu1 %v4837_v60  ;;  %v397_v22 = vsub.f32 %v5868_v63, %v8538_v7  ;;  %v332_v24 = vand.u32 4294901760, %v100_v2  ;;  %v335_v28 = vand.u32 4294901760, %v101_v3  ;;  %v102_v7 = vld [vmem:[#allocation7 + $0xe0] sm:$0xff] }
  0x4f   :  { %v404_v11 = vsub.f32 %v5870_v4, %v8537_v61  ;;  %v4839_v38 = vpack.c.bf16 %v517_v13, %v510_v10  ;;  %v8540_v12 = vand.u32 4294901760, %v5884_v18  ;;  %v8542_v34 = vand.u32 4294901760, %v5886_v21 }
  0x50   :  { %4818 = vmatpush3.bf16.msra.mxu0 %v5918_v14  ;;  %v284_v53 = vand.u32 4294901760, %v84_v8  ;;  %v5929_v54 = vsub.f32 %v82_v17, %v278_v47  ;;  %v398_v57 = vand.u32 4294901760, %v397_v22  ;;  %v5931_v60 = vpack.c.bf16 %v335_v28, %v332_v24 }
  0x51   :  { %v405_v62 = vand.u32 4294901760, %v404_v11  ;;  %4840 = vmatprep.subr.bf16.mxu1 %v4839_v38  ;;  %v5933_v0 = vsub.f32 %v83_v35, %v281_v1  ;;  %v523_v10 = vsub.f32 %v5884_v18, %v8540_v12  ;;  %v530_v13 = vsub.f32 %v5886_v21, %v8542_v34  ;;  %v86_v1 = vld [vmem:[#allocation7 + $0x60] sm:$0xff]  ;;  %v87_v34 = vld [vmem:[#allocation7 + $0x68] sm:$0xff] }
  0x52   :  { %8807 = vst [vmem:[#allocation16_spill] sm:$0xff] %v5931_v60  ;;  %v287_v61 = vand.u32 4294901760, %v85_v29  ;;  %4820 = vmatprep.subr.bf16.mxu0 %v5931_v60  ;;  %v5942_v47 = vsub.f32 %v100_v2, %v332_v24  ;;  %v8545_v22 = vand.u32 4294901760, %v5899_v52  ;;  %v8547_v35 = vand.u32 4294901760, %v5903_v56 }
  0x53   :  { %v4841_v17 = vpack.c.bf16 %v405_v62, %v398_v57  ;;  %v5946_v11 = vsub.f32 %v101_v3, %v335_v28  ;;  %v524_v38 = vand.u32 4294901760, %v523_v10  ;;  %v531_v12 = vand.u32 4294901760, %v530_v13 }
  0x54   :  { %v5948_v39 = vpack.c.bf16 %v287_v61, %v284_v53  ;;  %v411_v57 = vsub.f32 %v5899_v52, %v8545_v22  ;;  %v418_v2 = vsub.f32 %v5903_v56, %v8547_v35  ;;  %v338_v24 = vand.u32 4294901760, %v102_v7 }
  0x55   :  { %4842 = vmatpush3.bf16.msra.mxu1 %v4841_v17  ;;  %v341_v62 = vand.u32 4294901760, %v103_v42  ;;  %v4843_v16 = vpack.c.bf16 %v531_v12, %v524_v38  ;;  %v8550_v3 = vand.u32 4294901760, %v5912_v6  ;;  %v8552_v28 = vand.u32 4294901760, %v5916_v9 }
  0x56   :  { %8808 = vst [vmem:[#allocation17_spill] sm:$0xff] %v5948_v39  ;;  %4822 = vmatpush3.bf16.msra.mxu0 %v5948_v39  ;;  %v290_v10 = vand.u32 4294901760, %v86_v1  ;;  %v5959_v13 = vsub.f32 %v84_v8, %v284_v53  ;;  %v412_v17 = vand.u32 4294901760, %v411_v57  ;;  %v419_v15 = vand.u32 4294901760, %v418_v2 }
  0x57   :  { %v5961_v22 = vpack.c.bf16 %v341_v62, %v338_v24  ;;  %4844 = vmatprep.subr.bf16.mxu1 %v4843_v16  ;;  %v5963_v59 = vsub.f32 %v85_v29, %v287_v61  ;;  %v537_v12 = vsub.f32 %v5912_v6, %v8550_v3  ;;  %v544_v38 = vsub.f32 %v5916_v9, %v8552_v28  ;;  %v88_v29 = vld [vmem:[#allocation7 + $0x70] sm:$0xff]  ;;  %v89_v28 = vld [vmem:[#allocation7 + $0x78] sm:$0xff] }
  0x58   :  { %v293_v35 = vand.u32 4294901760, %v87_v34  ;;  %v4845_v8 = vpack.c.bf16 %v419_v15, %v412_v17  ;;  %v5972_v53 = vsub.f32 %v102_v7, %v338_v24  ;;  %v8555_v16 = vand.u32 4294901760, %v5929_v54 }
  0x59   :  { %8809 = vst [vmem:[#allocation18_spill] sm:$0xff] %v5961_v22  ;;  %4824 = vmatprep.subr.bf16.mxu0 %v5961_v22  ;;  %v8558_v61 = vand.u32 4294901760, %v5933_v0  ;;  %v5976_v57 = vsub.f32 %v103_v42, %v341_v62  ;;  %v538_v2 = vand.u32 4294901760, %v537_v12  ;;  %v545_v3 = vand.u32 4294901760, %v544_v38 }
  0x5a   :  { %v5978_v40 = vpack.c.bf16 %v293_v35, %v290_v10  ;;  %4846 = vmatpush3.bf16.msra.mxu1 %v4845_v8  ;;  %v425_v15 = vsub.f32 %v5929_v54, %v8555_v16  ;;  %v344_v24 = vand.u32 4294901760, %v104_v58  ;;  %v347_v17 = vand.u32 4294901760, %v105_v41 }
  0x5b   :  { %v432_v7 = vsub.f32 %v5933_v0, %v8558_v61  ;;  %v4847_v50 = vpack.c.bf16 %v545_v3, %v538_v2  ;;  %v8561_v42 = vand.u32 4294901760, %v5942_v47  ;;  %v8562_v62 = vand.u32 4294901760, %v5946_v11 }
  0x5c   :  { %8810 = vst [vmem:[#allocation19_spill] sm:$0xff] %v5978_v40  ;;  %4826 = vmatpush3.bf16.msra.mxu0 %v5978_v40  ;;  %v296_v12 = vand.u32 4294901760, %v88_v29  ;;  %v5989_v38 = vsub.f32 %v86_v1, %v290_v10  ;;  %v426_v8 = vand.u32 4294901760, %v425_v15  ;;  %v5991_v16 = vpack.c.bf16 %v347_v17, %v344_v24  ;;  %v6001_v40 = vld [vmem:[#allocation2] sm:$0xff] }
  0x5d   :  { %v433_v46 = vand.u32 4294901760, %v432_v7  ;;  %4848 = vmatprep.subr.bf16.mxu1 %v4847_v50  ;;  %v5993_v22 = vsub.f32 %v87_v34, %v293_v35  ;;  %v551_v3 = vsub.f32 %v5942_v47, %v8561_v42  ;;  %v558_v2 = vsub.f32 %v5946_v11, %v8562_v62  ;;  %8812 = vst [vmem:[#allocation21_spill] sm:$0xff] %v6001_v40 }
  0x5e   :  { %8811 = vst [vmem:[#allocation20_spill] sm:$0xff] %v5991_v16  ;;  %v299_v61 = vand.u32 4294901760, %v89_v28  ;;  %4828 = vmatprep.subr.bf16.mxu0 %v5991_v16  ;;  %v6004_v10 = vsub.f32 %v104_v58, %v344_v24  ;;  %v8564_v50 = vand.u32 4294901760, %v5959_v13  ;;  %v8563_v34 = vand.u32 4294901760, %v5963_v59 }
  0x5f   :  { %v4849_v1 = vpack.c.bf16 %v433_v46, %v426_v8  ;;  %v6008_v35 = vsub.f32 %v105_v41, %v347_v17  ;;  %v552_v15 = vand.u32 4294901760, %v551_v3  ;;  %v559_v7 = vand.u32 4294901760, %v558_v2 }
  0x60   :  { %v6010_v42 = vpack.c.bf16 %v299_v61, %v296_v12  ;;  %v6012_v62 = vsub.f32 %v88_v29, %v296_v12  ;;  %v439_v46 = vsub.f32 %v5959_v13, %v8564_v50  ;;  %v446_v58 = vsub.f32 %v5963_v59, %v8563_v34 }
  0x61   :  { %8813 = vst [vmem:[#allocation22_spill] sm:$0xff] %v6008_v35  ;;  %4850 = vmatpush3.bf16.msra.mxu1 %v4849_v1  ;;  %v6022_v24 = vrot.slane %v6001_v40, %v5828_v33  ;;  %v4851_v41 = vpack.c.bf16 %v559_v7, %v552_v15  ;;  %v8567_v17 = vand.u32 4294901760, %v5972_v53  ;;  %v8570_v29 = vand.u32 4294901760, %v5976_v57 }
  0x62   :  { %8814 = vst [vmem:[#allocation23_spill] sm:$0xff] %v6010_v42  ;;  %4830 = vmatpush3.bf16.msra.mxu0 %v6010_v42  ;;  %v4863_v12 = vpack.c.bf16 %v5833_v37, %v5831_v36  ;;  %v440_v8 = vand.u32 4294901760, %v439_v46  ;;  %v447_v3 = vand.u32 4294901760, %v446_v58  ;;  %v8571_v46 = vand.u32 4294901760, %v5989_v38 }
  0x63   :  { %8815 = vst [vmem:[#allocation24_spill] sm:$0xff] %v6022_v24  ;;  %v6031_v2 = vcombine.high %v6022_v24, %v6022_v24  ;;  %v6034_v1 = vand.u32 4294901760, %v6022_v24  ;;  %4852 = vmatprep.subr.bf16.mxu1 %v4851_v41  ;;  %v565_v15 = vsub.f32 %v5972_v53, %v8567_v17  ;;  %v572_v7 = vsub.f32 %v5976_v57, %v8570_v29 }
  0x64   :  { %4864 = vmatprep.subr.bf16.mxu0 %v4863_v12  ;;  %v8573_v58 = vand.u32 4294901760, %v5993_v22  ;;  %v6044_v34 = vsub.f32 %v89_v28, %v299_v61  ;;  %v4853_v50 = vpack.c.bf16 %v447_v3, %v440_v8  ;;  %v453_v12 = vsub.f32 %v5989_v38, %v8571_v46 }
  0x65   :  { %8816 = vst [vmem:[#allocation25_spill] sm:$0xff] %v6031_v2  ;;  %v6047_v33 = vand.u32 4294901760, %v6031_v2  ;;  %v6051_v41 = vsub.f32 %v6022_v24, %v6034_v1  ;;  %v566_v17 = vand.u32 4294901760, %v565_v15  ;;  %v573_v42 = vand.u32 4294901760, %v572_v7 }
  0x66   :  { %v460_v29 = vsub.f32 %v5993_v22, %v8573_v58  ;;  %4854 = vmatpush3.bf16.msra.mxu1 %v4853_v50  ;;  %v578_v8 = vand.u32 4294901760, %v6004_v10  ;;  %v585_v3 = vand.u32 4294901760, %v6008_v35  ;;  %v454_v7 = vand.u32 4294901760, %v453_v12 }
  0x67   :  { %8817 = vst [vmem:[#allocation26_spill] sm:$0xff] %v6047_v33  ;;  %8818 = vst [vmem:[#allocation27_spill] sm:$0xff] %v6051_v41  ;;  %v6061_v28 = vsub.f32 %v6031_v2, %v6047_v33  ;;  %v8583_v61 = vand.u32 4294901760, %v6051_v41  ;;  %590 = vmatprep.mubr.f32.mxu1 %v6047_v33  ;;  %v4855_v15 = vpack.c.bf16 %v573_v42, %v566_v17  ;;  %v466_v40 = vand.u32 4294901760, %v6012_v62 }
  0x68   :  { %v461_v46 = vand.u32 4294901760, %v460_v29  ;;  %v579_v58 = vsub.f32 %v6004_v10, %v578_v8  ;;  %v586_v2 = vsub.f32 %v6008_v35, %v585_v3  ;;  %v473_v39 = vand.u32 4294901760, %v6044_v34 }
  0x69   :  { %v351_v24 = vand.u32 4294901760, %v6061_v28  ;;  %v358_v50 = vsub.f32 %v6051_v41, %v8583_v61  ;;  %4856 = vmatprep.subr.bf16.mxu1 %v4855_v15  ;;  %v467_v33 = vsub.f32 %v6012_v62, %v466_v40  ;;  %v4865_v60 = vpack.c.bf16 %v5817_v26, %v5813_v20 }
  0x6a   :  { %v4857_v16 = vpack.c.bf16 %v461_v46, %v454_v7  ;;  %v580_v17 = vand.u32 4294901760, %v579_v58  ;;  %v587_v29 = vand.u32 4294901760, %v586_v2  ;;  %v474_v61 = vsub.f32 %v6044_v34, %v473_v39 }
  0x6b   :  { %v352_v42 = vsub.f32 %v6061_v28, %v351_v24  ;;  %v359_v12 = vand.u32 4294901760, %v358_v50  ;;  %v4867_v46 = vpack.c.bf16 %v5824_v31, %v5822_v30  ;;  %v468_v7 = vand.u32 4294901760, %v467_v33 }
  0x6c   :  { %4858 = vmatpush3.bf16.msra.mxu1 %v4857_v16  ;;  %v4859_v15 = vpack.c.bf16 %v587_v29, %v580_v17  ;;  %v475_v35 = vand.u32 4294901760, %v474_v61  ;;  %v4869_v16 = vpack.c.bf16 %v5840_v44, %v5838_v43  ;;  %v4871_v58 = vpack.c.bf16 %v5847_v49, %v5845_v48 }
  0x6d   :  { %v353_v41 = vand.u32 4294901760, %v352_v42  ;;  %v8819_v50 = vand.u32 4294901760, %v5831_v36  ;;  %v8820_v42 = vand.u32 4294901760, %v5833_v37  ;;  %v8821_v33 = vand.u32 4294901760, %v5813_v20 }
  0x6e   :  { %4860 = vmatprep.subr.bf16.mxu1 %v4859_v15  ;;  %v4861_v2 = vpack.c.bf16 %v475_v35, %v468_v7  ;;  %v8823_v61 = vand.u32 4294901760, %v5822_v30  ;;  %v8824_v29 = vand.u32 4294901760, %v5824_v31  ;;  %v8825_v36 = vand.u32 4294901760, %v5838_v43 }
  0x6f   :  { %354 = vmatprep.mubr.f32.mxu0 %v353_v41  ;;  %v6091_v17 = vpack.c.bf16 %v8820_v42, %v8819_v50  ;;  %v8822_v41 = vand.u32 4294901760, %v5817_v26  ;;  %v8826_v37 = vand.u32 4294901760, %v5840_v44  ;;  %v8827_v20 = vand.u32 4294901760, %v5845_v48 }
  0x70   :  { %360 = vmatmul.mubr.f32.vlgmr.msra.gmra.mrb[0].mxu0 %v359_v12  ;;  %v6103_v12 = vpack.c.bf16 %v8824_v29, %v8823_v61  ;;  %4862 = vmatpush3.bf16.msra.mxu1 %v4861_v2  ;;  %v8828_v26 = vand.u32 4294901760, %v5847_v49  ;;  %v8829_v30 = vand.u32 4294901760, %v5868_v63  ;;  %v8830_v31 = vand.u32 4294901760, %v5870_v4 }
  0x71   :  { %4866 = vmatpush3.bf16.msra.mxu0 %v4865_v60  ;;  %727 = vmatprep.mubr.f32.mxu0 %v6061_v28  ;;  %v6097_v35 = vpack.c.bf16 %v8822_v41, %v8821_v33  ;;  %v6109_v60 = vpack.c.bf16 %v8826_v37, %v8825_v36  ;;  %v8831_v43 = vand.u32 4294901760, %v5884_v18  ;;  %v8832_v44 = vand.u32 4294901760, %v5886_v21 }
  0x72   :  { %4868 = vmatprep.subr.bf16.mxu0 %v4867_v46  ;;  %v6115_v28 = vpack.c.bf16 %v8828_v26, %v8827_v20  ;;  %v6121_v15 = vpack.c.bf16 %v8830_v31, %v8829_v30  ;;  %4896 = vmatprep.subr.bf16.mxu1 %v5811_v19  ;;  %v8833_v48 = vand.u32 4294901760, %v5899_v52  ;;  %v8834_v49 = vand.u32 4294901760, %v5903_v56 }
  0x73   :  { %v6128_v46 = vpack.c.bf16 %v8832_v44, %v8831_v43  ;;  %v8835_v2 = vand.u32 4294901760, %v5912_v6  ;;  %v8836_v50 = vand.u32 4294901760, %v5916_v9  ;;  %v8837_v33 = vand.u32 4294901760, %v5929_v54  ;;  %592 = vmatmul.mubr.f32.vlgmr.msra.gmra.mrb[0].mxu1 %v6034_v1 }
  0x74   :  { %v6134_v7 = vpack.c.bf16 %v8834_v49, %v8833_v48  ;;  %v8838_v41 = vand.u32 4294901760, %v5933_v0  ;;  %v8839_v29 = vand.u32 4294901760, %v5942_v47  ;;  %v8840_v36 = vand.u32 4294901760, %v5946_v11  ;;  %4898 = vmatpush3.bf16.msra.mxu1 %v5815_v25  ;;  %834 = vmatprep.mubr.f32.mxu1 %v351_v24  ;;  %v125_v24 = vld [vmem:[#allocation7 + $0x198] sm:$0xff] }
  0x75   :  { %v6140_v42 = vpack.c.bf16 %v8836_v50, %v8835_v2  ;;  %v8841_v20 = vand.u32 4294901760, %v5959_v13  ;;  %v8842_v26 = vand.u32 4294901760, %v5963_v59  ;;  %v8843_v31 = vand.u32 4294901760, %v5972_v53  ;;  %4870 = vmatpush3.bf16.msra.mxu0 %v4869_v16  ;;  %4900 = vmatprep.subr.bf16.mxu1 %v5819_v27 }
  0x76   :  { %v6146_v61 = vpack.c.bf16 %v8838_v41, %v8837_v33  ;;  %v6152_v37 = vpack.c.bf16 %v8840_v36, %v8839_v29  ;;  %v8844_v43 = vand.u32 4294901760, %v5976_v57  ;;  %v8845_v48 = vand.u32 4294901760, %v5989_v38  ;;  %4872 = vmatprep.subr.bf16.mxu0 %v4871_v58 }
  0x77   :  { %v6158_v30 = vpack.c.bf16 %v8842_v26, %v8841_v20  ;;  %v8846_v49 = vand.u32 4294901760, %v5993_v22  ;;  %v4873_v50 = vpack.c.bf16 %v5870_v4, %v5868_v63  ;;  %v6175_v33 = vpack.c.bf16 %v585_v3, %v578_v8  ;;  %v8850_v8 = vld [vmem:[#allocation18_spill] sm:$0xff] }
  0x78   :  { %v6164_v44 = vpack.c.bf16 %v8844_v43, %v8843_v31  ;;  %v6177_v41 = vpack.c.bf16 %v473_v39, %v466_v40  ;;  %v4875_v29 = vpack.c.bf16 %v5886_v21, %v5884_v18  ;;  %v4877_v16 = vpack.c.bf16 %v5903_v56, %v5899_v52  ;;  %4902 = vmatpush3.bf16.msra.mxu1 %v5826_v32  ;;  %v122_v21 = vld [vmem:[#allocation7 + $0x180] sm:$0xff]  ;;  %v123_v39 = vld [vmem:[#allocation7 + $0x188] sm:$0xff]  ;;  %v6217_v31 = vld [vmem:[#allocation7 + $0x110] sm:$0xff] }
  0x79   :  { %v6170_v2 = vpack.c.bf16 %v8846_v49, %v8845_v48  ;;  %4874 = vmatpush3.bf16.msra.mxu0 %v4873_v50  ;;  %v4879_v40 = vpack.c.bf16 %v5916_v9, %v5912_v6  ;;  %4904 = vmatprep.subr.bf16.mxu1 %v5842_v45  ;;  %v4881_v63 = vpack.c.bf16 %v5933_v0, %v5929_v54  ;;  %v1164_v52 = vand.u32 4294901760, %v122_v21  ;;  %v8848_v54 = vld [vmem:[#allocation16_spill] sm:$0xff]  ;;  %v8853_v48 = vld [vmem:[#allocation21_spill] sm:$0xff] }
  0x7a   :  { %4876 = vmatprep.subr.bf16.mxu0 %v4875_v29  ;;  %v4883_v4 = vpack.c.bf16 %v5946_v11, %v5942_v47  ;;  %v4885_v18 = vpack.c.bf16 %v5963_v59, %v5959_v13  ;;  %v4887_v0 = vpack.c.bf16 %v5976_v57, %v5972_v53  ;;  %v1167_v56 = vand.u32 4294901760, %v123_v39  ;;  %v8847_v59 = vld [vmem:[#allocation22_spill] sm:$0xff]  ;;  %v106_v13 = vld [vmem:[#allocation7 + $0x100] sm:$0xff] }
  0x7b   :  { %v4889_v6 = vpack.c.bf16 %v5993_v22, %v5989_v38  ;;  %v4891_v9 = vpack.c.bf16 %v8847_v59, %v6004_v10  ;;  %v6207_v47 = vsub.f32 %v122_v21, %v1164_v52  ;;  %v107_v53 = vld [vmem:[#allocation7 + $0x108] sm:$0xff]  ;;  %v4893_v57 = vpack.c.bf16 %v6044_v34, %v6012_v62  ;;  %v124_v38 = vld [vmem:[#allocation7 + $0x190] sm:$0xff]  ;;  %v6221_v34 = vld [vmem:[#allocation7 + $0x118] sm:$0xff] }
  0x7c   :  { %4906 = vmatpush3.bf16.msra.mxu1 %v5850_v51  ;;  %v6209_v11 = vsub.f32 %v123_v39, %v1167_v56  ;;  %v8849_v22 = vld [vmem:[#allocation17_spill] sm:$0xff]  ;;  %v1116_v10 = vand.u32 4294901760, %v106_v13  ;;  %v1119_v3 = vand.u32 4294901760, %v107_v53  ;;  %v1170_v20 = vand.u32 4294901760, %v124_v38  ;;  %v8851_v62 = vld [vmem:[#allocation19_spill] sm:$0xff]  ;;  %v8854_v50 = vld [vmem:[#allocation20_spill] sm:$0xff] }
  0x7d   :  { %4878 = vmatpush3.bf16.msra.mxu0 %v4877_v16  ;;  %4908 = vmatprep.subr.bf16.mxu1 %v5872_v5  ;;  %v8590_v58 = vand.u32 4294901760, %v6207_v47  ;;  %v1173_v26 = vand.u32 4294901760, %v125_v24  ;;  %v6223_v43 = vld [vmem:[#allocation7 + $0x1a0] sm:$0xff]  ;;  %v8591_v21 = vand.u32 4294901760, %v6217_v31  ;;  %v8861_v59 = vld [vmem:[#allocation26_spill] sm:$0xff]  ;;  %vm5711_vm7 = vmmov 1  }
  0x7e   :  { %4880 = vmatprep.subr.bf16.mxu0 %v4879_v40  ;;  %v8589_v36 = vand.u32 4294901760, %v6209_v11  ;;  %8852 = vst [vmem:[#allocation22_spill] sm:$0xff] %v6223_v43  ;;  %v6228_v29 = vsub.f32 %v106_v13, %v1116_v10  ;;  %v6230_v16 = vsub.f32 %v107_v53, %v1119_v3  ;;  %v6232_v40 = vld [vmem:[#allocation7 + $0x1a8] sm:$0xff]  ;;  %v6258_v53 = vld [vmem:[#allocation7 + $0x1b8] sm:$0xff]  ;;  %vm3812_vm12 = vcmask 1024  }
  0x7f   :  { %8855 = vst [vmem:[#allocation16_spill] sm:$0xff] %v6232_v40  ;;  %v1343_v39 = vsub.f32 %v6207_v47, %v8590_v58  ;;  %8862 = vst [vmem:[#allocation20_spill] sm:$0xff] %v6258_v53  ;;  %v8598_v58 = vand.u32 4294901760, %v6258_v53 }
  0x80   :  { %4910 = vmatpush3.bf16.msra.mxu1 %v5888_v23  ;;  %v8594_v49 = vand.u32 4294901760, %v6228_v29  ;;  %v8595_v13 = vand.u32 4294901760, %v6230_v16 }
  0x81   :  { %4882 = vmatpush3.bf16.msra.mxu0 %v4881_v63  ;;  %4912 = vmatprep.subr.bf16.mxu1 %v5901_v55  ;;  %v6234_v63 = vld [vmem:[#allocation7 + $0x120] sm:$0xff] }
  0x82   :  { %4884 = vmatprep.subr.bf16.mxu0 %v4883_v4  ;;  %8856 = vst [vmem:[#allocation17_spill] sm:$0xff] %v6234_v63  ;;  %v8858_v4 = vld [vmem:[#allocation27_spill] sm:$0xff] }
  0x84   :  { %4914 = vmatpush3.bf16.msra.mxu1 %v5918_v14 }
  0x85   :  { %4886 = vmatpush3.bf16.msra.mxu0 %v4885_v18  ;;  %4916 = vmatprep.subr.bf16.mxu1 %v8848_v54  ;;  %v6239_v18 = vpack.c.bf16 %v1167_v56, %v1164_v52  ;;  %v6254_v52 = vsub.f32 %v125_v24, %v1173_v26  ;;  %v8592_v56 = vand.u32 4294901760, %v6221_v34  ;;  %v6268_v24 = vpack.c.bf16 %v1173_v26, %v1170_v20 }
  0x86   :  { %4888 = vmatprep.subr.bf16.mxu0 %v4887_v0  ;;  %v1350_v0 = vsub.f32 %v6209_v11, %v8589_v36  ;;  %v6262_v36 = vpack.c.bf16 %v1119_v3, %v1116_v10  ;;  %v6276_v10 = vsub.f32 %v6217_v31, %v8591_v21  ;;  %v1344_v3 = vand.u32 4294901760, %v1343_v39  ;;  %v6294_v21 = vld [vmem:[#allocation7 + $0x130] sm:$0xff] }
  0x87   :  { %8859 = vst [vmem:[#allocation19_spill] sm:$0xff] %v6239_v18  ;;  %8865 = vst [vmem:[#allocation26_spill] sm:$0xff] %v6268_v24  ;;  %v8867_v26 = vand.u32 4294901760, %v6223_v43 }
  0x88   :  { %4918 = vmatpush3.bf16.msra.mxu1 %v8849_v22  ;;  %8864 = vst [vmem:[#allocation27_spill] sm:$0xff] %v6262_v36  ;;  %v8891_v39 = vand.u32 4294901760, %v6276_v10 }
  0x89   :  { %4890 = vmatpush3.bf16.msra.mxu0 %v4889_v6  ;;  %4920 = vmatprep.subr.bf16.mxu1 %v8850_v8  ;;  %v6248_v6 = vld [vmem:[#allocation7 + $0x1b0] sm:$0xff] }
  0x8a   :  { %4892 = vmatprep.subr.bf16.mxu0 %v4891_v9  ;;  %8860 = vst [vmem:[#allocation21_spill] sm:$0xff] %v6248_v6  ;;  %v6252_v9 = vsub.f32 %v124_v38, %v1170_v20  ;;  %v6285_v20 = vsub.f32 %v6221_v34, %v8592_v56 }
  0x8c   :  { %4922 = vmatpush3.bf16.msra.mxu1 %v8851_v62 }
  0x8d   :  { %4894 = vmatpush3.bf16.msra.mxu0 %v4893_v57  ;;  %4924 = vmatprep.subr.bf16.mxu1 %v8854_v50  ;;  %v8863_v57 = vld [vmem:[#allocation23_spill] sm:$0xff] }
  0x8e   :  { %4928 = vmatprep.subr.bf16.mxu0 %v6091_v17  ;;  %v6236_v17 = vld [vmem:[#allocation7 + $0x128] sm:$0xff]  ;;  %8868 = vst [vmem:[#allocation23_spill] sm:$0xff] %v6294_v21 }
  0x8f   :  { %8857 = vst [vmem:[#allocation18_spill] sm:$0xff] %v6236_v17  ;;  %v8593_v38 = vand.u32 4294901760, %v6236_v17 }
  0x90   :  { %730 = vmatmul.mubr.f32.vlgmr.msra.gmra.mrb[2].mxu0 %v8858_v4  ;;  %4926 = vmatpush3.bf16.msra.mxu1 %v8863_v57 }
  0x91   :  { %4930 = vmatpush3.bf16.msra.mxu0 %v6097_v35  ;;  %1004 = vmatprep.mubr.f32.mxu0 %v8861_v59  ;;  %v1351_v35 = vand.u32 4294901760, %v1350_v0  ;;  %v6313_v0 = vsub.f32 %v6236_v17, %v8593_v38  ;;  %v6332_v38 = vld [vmem:[#allocation7 + $0x1c0] sm:$0xff] }
  0x92   :  { %4932 = vmatprep.subr.bf16.mxu0 %v6103_v12  ;;  %4960 = vmatprep.subr.bf16.mxu1 %v5811_v19  ;;  %v8866_v19 = vand.u32 4294901760, %v8858_v4  ;;  %v6290_v12 = vsub.f32 %v6223_v43, %v8867_v26  ;;  %v8870_v4 = vand.u32 4294901760, %v6232_v40  ;;  %v8871_v26 = vand.u32 4294901760, %v6234_v63  ;;  %8876 = vst [vmem:[#allocation32_spill] sm:$0xff] %v6332_v38  ;;  %v6345_v17 = vld [vmem:[#allocation7 + $0x140] sm:$0xff]  ;;  %v6487_v43 = vld [vmem:[#allocation7 + $0x178] sm:$0xff] }
  0x93   :  { %8879 = vst [vmem:[#allocation35_spill] sm:$0xff] %v6345_v17 }
  0x94   :  { %838 = vmatmul.mubr.f32.vlgmr.msra.gmra.mrb[2].mxu1 %v8866_v19  ;;  %v6303_v19 = vsub.f32 %v6232_v40, %v8870_v4  ;;  %v6308_v56 = vsub.f32 %v6234_v63, %v8871_v26  ;;  %v8874_v4 = vand.u32 4294901760, %v6248_v6 }
  0x95   :  { %4934 = vmatpush3.bf16.msra.mxu0 %v6109_v60  ;;  %v6296_v60 = vld [vmem:[#allocation7 + $0x138] sm:$0xff]  ;;  %4962 = vmatpush3.bf16.msra.mxu1 %v5815_v25  ;;  %v6320_v25 = vsub.f32 %v6228_v29, %v8594_v49  ;;  %v6341_v49 = vsub.f32 %v6258_v53, %v8598_v58  ;;  %v6360_v53 = vld [vmem:[#allocation7 + $0x148] sm:$0xff]  ;;  %v8887_v58 = vcombine.high %v8853_v48, %v8853_v48 }
  0x96   :  { %8869 = vst [vmem:[#allocation28_spill] sm:$0xff] %v6296_v60  ;;  %4936 = vmatprep.subr.bf16.mxu0 %v6115_v28  ;;  %4964 = vmatprep.subr.bf16.mxu1 %v5819_v27  ;;  %v6325_v28 = vsub.f32 %v6230_v16, %v8595_v13  ;;  %v6330_v26 = vsub.f32 %v6248_v6, %v8874_v4  ;;  %v6334_v27 = vld [vmem:[#allocation7 + $0x1c8] sm:$0xff]  ;;  %v8880_v4 = vand.u32 4294901760, %v6252_v9  ;;  %8884 = vst [vmem:[#allocation38_spill] sm:$0xff] %v6360_v53  ;;  %v6362_v13 = vld [vmem:[#allocation7 + $0x1d0] sm:$0xff] }
  0x97   :  { %1108 = vmatprep.mubr.f32.mxu1 %v8861_v59  ;;  %8872 = vst [vmem:[#allocation29_spill] sm:$0xff] %v6320_v25  ;;  %8877 = vst [vmem:[#allocation33_spill] sm:$0xff] %v6334_v27  ;;  %v6336_v59 = vpack.c.bf16 %v1351_v35, %v1344_v3  ;;  %v8882_v35 = vand.u32 4294901760, %v6254_v52  ;;  %v8890_v40 = vand.u32 4294901760, %v6296_v60  ;;  %v6471_v25 = vld [vmem:[#allocation7 + $0x170] sm:$0xff] }
  0x98   :  { %8873 = vst [vmem:[#allocation30_spill] sm:$0xff] %v6325_v28  ;;  %8875 = vst [vmem:[#allocation31_spill] sm:$0xff] %v6330_v26  ;;  %v6351_v6 = vsub.f32 %v6252_v9, %v8880_v4  ;;  %v8889_v4 = vand.u32 4294901760, %v6294_v21  ;;  %v6469_v28 = vld [vmem:[#allocation7 + $0x1f8] sm:$0xff] }
  0x99   :  { %8878 = vst [vmem:[#allocation34_spill] sm:$0xff] %v6336_v59  ;;  %4938 = vmatpush3.bf16.msra.mxu0 %v6121_v15  ;;  %v6356_v3 = vsub.f32 %v6254_v52, %v8882_v35  ;;  %8885 = vst [vmem:[#allocation39_spill] sm:$0xff] %v6362_v13  ;;  %4966 = vmatpush3.bf16.msra.mxu1 %v5826_v32  ;;  %v8886_v35 = vld [vmem:[#allocation15_spill] sm:$0xff]  ;;  %v6397_v15 = vsub.f32 %v6276_v10, %v8891_v39  ;;  %v8894_v39 = vand.u32 4294901760, %v6332_v38 }
  0x9a   :  { %8881 = vst [vmem:[#allocation36_spill] sm:$0xff] %v6351_v6  ;;  %4940 = vmatprep.subr.bf16.mxu0 %v6128_v46  ;;  %v6373_v59 = vrot.slane %v8887_v58, %v8886_v35  ;;  %4968 = vmatprep.subr.bf16.mxu1 %v5842_v45  ;;  %v6383_v63 = vsub.f32 %v6294_v21, %v8889_v4  ;;  %v8892_v4 = vand.u32 4294901760, %v6285_v20  ;;  %v8896_v35 = vand.u32 4294901760, %v6290_v12  ;;  %v6448_v21 = vld [vmem:[#allocation7 + $0x160] sm:$0xff] }
  0x9b   :  { %8883 = vst [vmem:[#allocation37_spill] sm:$0xff] %v6356_v3  ;;  %v6388_v58 = vsub.f32 %v6296_v60, %v8890_v40  ;;  %v6404_v40 = vld [vmem:[#allocation7 + $0x1d8] sm:$0xff]  ;;  %v6416_v46 = vsub.f32 %v6332_v38, %v8894_v39  ;;  %v8898_v39 = vand.u32 4294901760, %v6303_v19  ;;  %v6446_v60 = vld [vmem:[#allocation7 + $0x1e8] sm:$0xff]  ;;  %8902 = vst [vmem:[#allocation45_spill] sm:$0xff] %v6448_v21  ;;  %v8905_v6 = vand.u32 4294901760, %v6360_v53 }
  0x9c   :  { %8888 = vst [vmem:[#allocation40_spill] sm:$0xff] %v6373_v59  ;;  %v6402_v32 = vsub.f32 %v6285_v20, %v8892_v4  ;;  %v6408_v45 = vcombine.high %v6373_v59, %v6373_v59  ;;  %v8895_v4 = vand.u32 4294901760, %v6334_v27  ;;  %v6426_v59 = vsub.f32 %v6290_v12, %v8896_v35  ;;  %8901 = vst [vmem:[#allocation44_spill] sm:$0xff] %v6446_v60  ;;  %v6450_v3 = vld [vmem:[#allocation7 + $0x168] sm:$0xff] }
  0x9d   :  { %4942 = vmatpush3.bf16.msra.mxu0 %v6134_v7  ;;  %4970 = vmatpush3.bf16.msra.mxu1 %v5850_v51  ;;  %v6430_v51 = vld [vmem:[#allocation7 + $0x158] sm:$0xff]  ;;  %v6432_v7 = vld [vmem:[#allocation7 + $0x1e0] sm:$0xff]  ;;  %v6438_v38 = vsub.f32 %v6303_v19, %v8898_v39  ;;  %8903 = vst [vmem:[#allocation46_spill] sm:$0xff] %v6450_v3  ;;  %v6458_v39 = vsub.f32 %v6360_v53, %v8905_v6  ;;  %v8907_v35 = vand.u32 4294901760, %v6362_v13  ;;  %8909 = vst [vmem:[#allocation50_spill] sm:$0xff] %v6469_v28 }
  0x9e   :  { %8893 = vst [vmem:[#allocation41_spill] sm:$0xff] %v6408_v45  ;;  %4944 = vmatprep.subr.bf16.mxu0 %v6140_v42  ;;  %v6421_v48 = vsub.f32 %v6334_v27, %v8895_v4  ;;  %8897 = vst [vmem:[#allocation42_spill] sm:$0xff] %v6426_v59  ;;  %v6428_v42 = vld [vmem:[#allocation7 + $0x150] sm:$0xff]  ;;  %4972 = vmatprep.subr.bf16.mxu1 %v5872_v5  ;;  %v8900_v4 = vand.u32 4294901760, %v6345_v17  ;;  %v6453_v5 = vand.u32 4294901760, %v6408_v45 }
  0x9f   :  { %8899 = vst [vmem:[#allocation43_spill] sm:$0xff] %v6438_v38  ;;  %8906 = vst [vmem:[#allocation48_spill] sm:$0xff] %v6458_v39  ;;  %v6467_v59 = vld [vmem:[#allocation7 + $0x1f0] sm:$0xff] }
  0xa0   :  { %v6443_v27 = vsub.f32 %v6345_v17, %v8900_v4  ;;  %8904 = vst [vmem:[#allocation47_spill] sm:$0xff] %v6453_v5  ;;  %v6465_v17 = vsub.f32 %v6362_v13, %v8907_v35  ;;  %8908 = vst [vmem:[#allocation49_spill] sm:$0xff] %v6467_v59  ;;  %v6479_v4 = vsub.f32 %v6408_v45, %v6453_v5  ;;  %v8912_v35 = vand.u32 4294901760, %v6404_v40 }
  0xa1   :  { %8910 = vst [vmem:[#allocation51_spill] sm:$0xff] %v6471_v25  ;;  %4946 = vmatpush3.bf16.msra.mxu0 %v6146_v61  ;;  %4974 = vmatpush3.bf16.msra.mxu1 %v5888_v23  ;;  %v8914_v23 = vand.u32 4294901760, %v6430_v51 }
  0xa2   :  { %8911 = vst [vmem:[#allocation52_spill] sm:$0xff] %v6479_v4  ;;  %4948 = vmatprep.subr.bf16.mxu0 %v6152_v37  ;;  %4976 = vmatprep.subr.bf16.mxu1 %v5901_v55  ;;  %v6497_v13 = vsub.f32 %v6404_v40, %v8912_v35  ;;  %v8913_v55 = vand.u32 4294901760, %v6428_v42  ;;  %v8915_v35 = vand.u32 4294901760, %v6432_v7 }
  0xa3   :  { %v6511_v37 = vsub.f32 %v6430_v51, %v8914_v23  ;;  %v8917_v23 = vand.u32 4294901760, %v6448_v21 }
  0xa4   :  { %v6506_v53 = vsub.f32 %v6428_v42, %v8913_v55  ;;  %v6516_v61 = vsub.f32 %v6432_v7, %v8915_v35  ;;  %v8918_v35 = vand.u32 4294901760, %v6450_v3 }
  0xa5   :  { %4950 = vmatpush3.bf16.msra.mxu0 %v6158_v30  ;;  %4978 = vmatpush3.bf16.msra.mxu1 %v5918_v14  ;;  %v8916_v30 = vand.u32 4294901760, %v6446_v60  ;;  %v6530_v38 = vsub.f32 %v6448_v21, %v8917_v23  ;;  %v8919_v14 = vand.u32 4294901760, %v6467_v59  ;;  %v8921_v23 = vand.u32 4294901760, %v6471_v25 }
  0xa6   :  { %4952 = vmatprep.subr.bf16.mxu0 %v6164_v44  ;;  %v6535_v6 = vsub.f32 %v6450_v3, %v8918_v35  ;;  %4980 = vmatprep.subr.bf16.mxu1 %v8848_v54  ;;  %v8923_v35 = vand.u32 4294901760, %v6479_v4 }
  0xa7   :  { %v6524_v55 = vsub.f32 %v6446_v60, %v8916_v30  ;;  %v6541_v44 = vsub.f32 %v6467_v59, %v8919_v14  ;;  %v8920_v30 = vand.u32 4294901760, %v6469_v28  ;;  %v6551_v21 = vsub.f32 %v6471_v25, %v8921_v23 }
  0xa8   :  { %v1214_v3 = vsub.f32 %v6479_v4, %v8923_v35  ;;  %v8929_v59 = vand.u32 4294901760, %v6228_v29  ;;  %v8935_v35 = vand.u32 4294901760, %v6276_v10  ;;  %v8936_v25 = vand.u32 4294901760, %v6285_v20 }
  0xa9   :  { %v6546_v45 = vsub.f32 %v6469_v28, %v8920_v30  ;;  %8922 = vst [vmem:[#allocation53_spill] sm:$0xff] %v6551_v21  ;;  %4954 = vmatpush3.bf16.msra.mxu0 %v6170_v2  ;;  %v8924_v28 = vand.u32 4294901760, %v6487_v43  ;;  %4982 = vmatpush3.bf16.msra.mxu1 %v8849_v22  ;;  %v8927_v22 = vand.u32 4294901760, %v6209_v11  ;;  %v8930_v2 = vand.u32 4294901760, %v6230_v16 }
  0xaa   :  { %4956 = vmatprep.subr.bf16.mxu0 %v6175_v33  ;;  %4984 = vmatprep.subr.bf16.mxu1 %v8850_v8  ;;  %v8926_v33 = vand.u32 4294901760, %v6207_v47  ;;  %v8932_v8 = vand.u32 4294901760, %v6252_v9  ;;  %v6601_v54 = vpack.c.bf16 %v8936_v25, %v8935_v35  ;;  %v8948_v35 = vand.u32 4294901760, %v6388_v58 }
  0xab   :  { %v6565_v23 = vsub.f32 %v6487_v43, %v8924_v28  ;;  %v1215_v28 = vand.u32 4294901760, %v1214_v3  ;;  %v6589_v30 = vpack.c.bf16 %v8930_v2, %v8929_v59  ;;  %v8933_v3 = vand.u32 4294901760, %v6254_v52 }
  0xac   :  { %v6583_v14 = vpack.c.bf16 %v8927_v22, %v8926_v33  ;;  %8937 = vst [vmem:[#allocation58_spill] sm:$0xff] %v6601_v54  ;;  %v8938_v33 = vand.u32 4294901760, %v6290_v12  ;;  %v8939_v22 = vand.u32 4294901760, %v6303_v19  ;;  %v8941_v2 = vand.u32 4294901760, %v6308_v56 }
  0xad   :  { %8925 = vst [vmem:[#allocation54_spill] sm:$0xff] %v6565_v23  ;;  %8931 = vst [vmem:[#allocation56_spill] sm:$0xff] %v6589_v30  ;;  %v6595_v60 = vpack.c.bf16 %v8933_v3, %v8932_v8  ;;  %4958 = vmatpush3.bf16.msra.mxu0 %v6177_v41  ;;  %v8942_v30 = vand.u32 4294901760, %v6313_v0  ;;  %v8944_v3 = vand.u32 4294901760, %v6330_v26  ;;  %v8947_v41 = vand.u32 4294901760, %v6383_v63  ;;  %4986 = vmatpush3.bf16.msra.mxu1 %v8851_v62 }
  0xae   :  { %8928 = vst [vmem:[#allocation55_spill] sm:$0xff] %v6583_v14  ;;  %v6608_v59 = vpack.c.bf16 %v8939_v22, %v8938_v33  ;;  %4992 = vmatprep.subr.bf16.mxu0 %v6239_v18  ;;  %v8951_v22 = vand.u32 4294901760, %v6421_v48  ;;  %4988 = vmatprep.subr.bf16.mxu1 %v8854_v50  ;;  %v8959_v62 = vand.u32 4294901760, %v6506_v53  ;;  %v8960_v33 = vand.u32 4294901760, %v6511_v37  ;;  %v8989_v14 = vld [vmem:[#allocation43_spill] sm:$0xff] }
  0xaf   :  { %8934 = vst [vmem:[#allocation57_spill] sm:$0xff] %v6595_v60  ;;  %v6614_v8 = vpack.c.bf16 %v8942_v30, %v8941_v2  ;;  %v8945_v60 = vand.u32 4294901760, %v6341_v49  ;;  %v6626_v54 = vpack.c.bf16 %v8948_v35, %v8947_v41  ;;  %v8950_v30 = vand.u32 4294901760, %v6416_v46 }
  0xb0   :  { %8940 = vst [vmem:[#allocation59_spill] sm:$0xff] %v6608_v59  ;;  %v8956_v41 = vand.u32 4294901760, %v6465_v17  ;;  %v8957_v35 = vand.u32 4294901760, %v6497_v13  ;;  %v8968_v50 = vand.u32 4294901760, %v6541_v44  ;;  %1006 = vmatmul.mubr.f32.vlgmr.msra.gmra.mrb[4].mxu0 %v6034_v1 }
  0xb1   :  { %8943 = vst [vmem:[#allocation60_spill] sm:$0xff] %v6614_v8  ;;  %v6620_v25 = vpack.c.bf16 %v8945_v60, %v8944_v3  ;;  %8949 = vst [vmem:[#allocation62_spill] sm:$0xff] %v6626_v54  ;;  %v6635_v2 = vpack.c.bf16 %v8951_v22, %v8950_v30  ;;  %v8953_v60 = vand.u32 4294901760, %v6443_v27  ;;  %v8954_v3 = vand.u32 4294901760, %v6458_v39  ;;  %4994 = vmatpush3.bf16.msra.mxu0 %v6262_v36  ;;  %v8988_v8 = vld [vmem:[#allocation42_spill] sm:$0xff] }
  0xb2   :  { %v6647_v54 = vpack.c.bf16 %v8957_v35, %v8956_v41  ;;  %v6654_v30 = vpack.c.bf16 %v8960_v33, %v8959_v62  ;;  %v8962_v22 = vand.u32 4294901760, %v6516_v61  ;;  %v8969_v35 = vand.u32 4294901760, %v6546_v45  ;;  %1216 = vmatprep.mubr.f32.mxu0 %v1215_v28  ;;  %4996 = vmatprep.subr.bf16.mxu0 %v6268_v24  ;;  %v8990_v28 = vld [vmem:[#allocation34_spill] sm:$0xff]  ;;  %v8991_v24 = vld [vmem:[#allocation36_spill] sm:$0xff] }
  0xb3   :  { %8946 = vst [vmem:[#allocation61_spill] sm:$0xff] %v6620_v25  ;;  %8952 = vst [vmem:[#allocation63_spill] sm:$0xff] %v6635_v2  ;;  %v6641_v25 = vpack.c.bf16 %v8954_v3, %v8953_v60  ;;  %v8963_v2 = vand.u32 4294901760, %v6524_v55  ;;  %v8965_v3 = vand.u32 4294901760, %v6530_v38  ;;  %v8971_v33 = vand.u32 4294901760, %v6217_v31  ;;  %4990 = vmatpush3.bf16.msra.mxu1 %v8863_v57  ;;  %v8993_v57 = vld [vmem:[#allocation37_spill] sm:$0xff] }
  0xb4   :  { %8958 = vst [vmem:[#allocation65_spill] sm:$0xff] %v6647_v54  ;;  %8961 = vst [vmem:[#allocation66_spill] sm:$0xff] %v6654_v30  ;;  %v6672_v54 = vpack.c.bf16 %v8969_v35, %v8968_v50  ;;  %v8972_v62 = vand.u32 4294901760, %v6221_v34  ;;  %v1253_v50 = vand.u32 4294901760, %v6402_v32  ;;  %v8977_v35 = vand.u32 4294901760, %v6308_v56  ;;  %v8984_v32 = vld [vmem:[#allocation29_spill] sm:$0xff]  ;;  %5024 = vmatprep.subr.bf16.mxu1 %v8990_v28 }
  0xb5   :  { %8955 = vst [vmem:[#allocation64_spill] sm:$0xff] %v6641_v25  ;;  %v6660_v60 = vpack.c.bf16 %v8963_v2, %v8962_v22  ;;  %v8966_v25 = vand.u32 4294901760, %v6535_v6  ;;  %v8974_v22 = vand.u32 4294901760, %v6551_v21  ;;  %v8978_v34 = vand.u32 4294901760, %v6313_v0 }
  0xb6   :  { %8970 = vst [vmem:[#allocation69_spill] sm:$0xff] %v6672_v54  ;;  %v6679_v2 = vpack.c.bf16 %v8972_v62, %v8971_v33  ;;  %v1259_v31 = vsub.f32 %v6308_v56, %v8977_v35  ;;  %v8985_v54 = vand.u32 4294901760, %v8984_v32  ;;  %v1372_v59 = vand.u32 4294901760, %v8988_v8  ;;  %v8999_v8 = vld [vmem:[#allocation18_spill] sm:$0xff]  ;;  %1110 = vmatmul.mubr.f32.vlgmr.msra.gmra.mrb[4].mxu1 %v6034_v1 }
  0xb7   :  { %8964 = vst [vmem:[#allocation67_spill] sm:$0xff] %v6660_v60  ;;  %v6666_v41 = vpack.c.bf16 %v8966_v25, %v8965_v3  ;;  %v8975_v60 = vand.u32 4294901760, %v6565_v23  ;;  %v1246_v3 = vand.u32 4294901760, %v6397_v15  ;;  %v1266_v33 = vsub.f32 %v6313_v0, %v8978_v34  ;;  %1452 = vmatprep.mubr.f32.mxu1 %v6453_v5 }
  0xb8   :  { %8973 = vst [vmem:[#allocation70_spill] sm:$0xff] %v6679_v2  ;;  %v1379_v34 = vand.u32 4294901760, %v8989_v14  ;;  %v8992_v36 = vand.u32 4294901760, %v8991_v24  ;;  %v8994_v18 = vand.u32 4294901760, %v8993_v57  ;;  %v9000_v32 = vand.u32 4294901760, %v8999_v8  ;;  %4998 = vmatpush3.bf16.msra.mxu0 %v6679_v2  ;;  %v9002_v24 = vld [vmem:[#allocation21_spill] sm:$0xff] }
  0xb9   :  { %8967 = vst [vmem:[#allocation68_spill] sm:$0xff] %v6666_v41  ;;  %v6685_v25 = vpack.c.bf16 %v8975_v60, %v8974_v22  ;;  %v8979_v60 = vld [vmem:[#allocation22_spill] sm:$0xff]  ;;  %v8981_v22 = vld [vmem:[#allocation16_spill] sm:$0xff]  ;;  %v1260_v4 = vand.u32 4294901760, %v1259_v31  ;;  %v9008_v8 = vand.u32 4294901760, %v6388_v58  ;;  %v9020_v5 = vand.u32 4294901760, %v6458_v39 }
  0xba   :  { %v8980_v62 = vand.u32 4294901760, %v8979_v60  ;;  %v8986_v41 = vld [vmem:[#allocation30_spill] sm:$0xff]  ;;  %v5027_v60 = vpack.c.bf16 %v8994_v18, %v8992_v36  ;;  %v9003_v36 = vand.u32 4294901760, %v9002_v24  ;;  %v9004_v18 = vld [vmem:[#allocation20_spill] sm:$0xff] }
  0xbb   :  { %8976 = vst [vmem:[#allocation71_spill] sm:$0xff] %v6685_v25  ;;  %v8982_v25 = vand.u32 4294901760, %v8981_v22  ;;  %v8987_v30 = vand.u32 4294901760, %v8986_v41  ;;  %v8995_v22 = vand.u32 4294901760, %v6330_v26  ;;  %v9005_v28 = vand.u32 4294901760, %v9004_v18  ;;  %v9027_v2 = vld [vmem:[#allocation38_spill] sm:$0xff] }
  0xbc   :  { %v1280_v1 = vsub.f32 %v6388_v58, %v9008_v8 }
  0xbd   :  { %v6702_v15 = vpack.c.bf16 %v8982_v25, %v8980_v62  ;;  %v5025_v35 = vpack.c.bf16 %v8987_v30, %v8985_v54  ;;  %v1385_v25 = vsub.f32 %v6330_v26, %v8995_v22  ;;  %v8996_v62 = vand.u32 4294901760, %v6341_v49  ;;  %v8997_v54 = vld [vmem:[#allocation17_spill] sm:$0xff] }
  0xbe   :  { %v8998_v30 = vand.u32 4294901760, %v8997_v54  ;;  %v6733_v57 = vpack.c.bf16 %v9005_v28, %v9003_v36  ;;  %v5029_v22 = vpack.c.bf16 %v1253_v50, %v1246_v3  ;;  %v1267_v26 = vand.u32 4294901760, %v1266_v33 }
  0xbf   :  { %8983 = vst [vmem:[#allocation22_spill] sm:$0xff] %v6702_v15  ;;  %v1392_v41 = vsub.f32 %v6341_v49, %v8996_v62  ;;  %5000 = vmatprep.subr.bf16.mxu0 %v6702_v15  ;;  %5026 = vmatpush3.bf16.msra.mxu1 %v5025_v35  ;;  %v5031_v62 = vpack.c.bf16 %v1379_v34, %v1372_v59  ;;  %v9007_v54 = vand.u32 4294901760, %v6383_v63  ;;  %v9009_v36 = vand.u32 4294901760, %v6416_v46  ;;  %v9011_v59 = vld [vmem:[#allocation23_spill] sm:$0xff]  ;;  %v9013_v35 = vld [vmem:[#allocation28_spill] sm:$0xff] }
  0xc0   :  { %v6725_v14 = vpack.c.bf16 %v9000_v32, %v8998_v30  ;;  %9006 = vst [vmem:[#allocation29_spill] sm:$0xff] %v6733_v57  ;;  %5028 = vmatprep.subr.bf16.mxu1 %v5027_v60  ;;  %v1386_v32 = vand.u32 4294901760, %v1385_v25  ;;  %v9010_v50 = vand.u32 4294901760, %v6421_v48  ;;  %v9012_v33 = vand.u32 4294901760, %v9011_v59 }
  0xc1   :  { %v1273_v30 = vsub.f32 %v6383_v63, %v9007_v54  ;;  %v1393_v24 = vand.u32 4294901760, %v1392_v41  ;;  %v1399_v3 = vsub.f32 %v6416_v46, %v9009_v36  ;;  %v9014_v34 = vand.u32 4294901760, %v9013_v35  ;;  %v9016_v41 = vld [vmem:[#allocation32_spill] sm:$0xff]  ;;  %v9018_v54 = vld [vmem:[#allocation33_spill] sm:$0xff] }
  0xc2   :  { %9001 = vst [vmem:[#allocation16_spill] sm:$0xff] %v6725_v14  ;;  %v1406_v31 = vsub.f32 %v6421_v48, %v9010_v50  ;;  %v9015_v60 = vand.u32 4294901760, %v6443_v27  ;;  %5002 = vmatpush3.bf16.msra.mxu0 %v6725_v14  ;;  %v9017_v28 = vand.u32 4294901760, %v9016_v41  ;;  %v9019_v8 = vand.u32 4294901760, %v9018_v54  ;;  %v9021_v35 = vld [vmem:[#allocation40_spill] sm:$0xff] }
  0xc3   :  { %v6753_v18 = vpack.c.bf16 %v9014_v34, %v9012_v33  ;;  %v5033_v50 = vpack.c.bf16 %v1267_v26, %v1260_v4  ;;  %v1294_v59 = vsub.f32 %v6458_v39, %v9020_v5  ;;  %v6769_v33 = vand.u32 4294901760, %v9021_v35  ;;  %5004 = vmatprep.subr.bf16.mxu0 %v6733_v57  ;;  %5030 = vmatpush3.bf16.msra.mxu1 %v5029_v22 }
  0xc4   :  { %v1287_v25 = vsub.f32 %v6443_v27, %v9015_v60  ;;  %v6763_v36 = vpack.c.bf16 %v9019_v8, %v9017_v28  ;;  %v1274_v34 = vand.u32 4294901760, %v1273_v30  ;;  %v1281_v60 = vand.u32 4294901760, %v1280_v1  ;;  %5032 = vmatprep.subr.bf16.mxu1 %v5031_v62  ;;  %v9025_v8 = vld [vmem:[#allocation35_spill] sm:$0xff] }
  0xc5   :  { %9022 = vst [vmem:[#allocation30_spill] sm:$0xff] %v6769_v33  ;;  %v9023_v14 = vand.u32 4294901760, %v6465_v17  ;;  %v9024_v28 = vand.u32 4294901760, %v6497_v13  ;;  %v5035_v4 = vpack.c.bf16 %v1393_v24, %v1386_v32  ;;  %v1400_v54 = vand.u32 4294901760, %v1399_v3 }
  0xc6   :  { %v1407_v5 = vand.u32 4294901760, %v1406_v31  ;;  %v9026_v15 = vand.u32 4294901760, %v9025_v8  ;;  %v9028_v39 = vand.u32 4294901760, %v9027_v2  ;;  %v1288_v22 = vand.u32 4294901760, %v1287_v25  ;;  %5006 = vmatpush3.bf16.msra.mxu0 %v6753_v18 }
  0xc7   :  { %v1413_v41 = vsub.f32 %v6465_v17, %v9023_v14  ;;  %v1420_v26 = vsub.f32 %v6497_v13, %v9024_v28  ;;  %v1295_v30 = vand.u32 4294901760, %v1294_v59  ;;  %v9029_v14 = vand.u32 4294901760, %v6506_v53  ;;  %5008 = vmatprep.subr.bf16.mxu0 %v6763_v36  ;;  %5034 = vmatpush3.bf16.msra.mxu1 %v5033_v50 }
  0xc8   :  { %v6782_v57 = vpack.c.bf16 %v9028_v39, %v9026_v15  ;;  %v9030_v28 = vand.u32 4294901760, %v6511_v37  ;;  %v6793_v32 = vsub.f32 %v9021_v35, %v6769_v33  ;;  %v9032_v39 = vld [vmem:[#allocation39_spill] sm:$0xff]  ;;  %v9034_v15 = vand.u32 4294901760, %v6404_v40  ;;  %5036 = vmatprep.subr.bf16.mxu1 %v5035_v4 }
  0xc9   :  { %v1301_v1 = vsub.f32 %v6506_v53, %v9029_v14  ;;  %v9033_v2 = vand.u32 4294901760, %v9032_v39  ;;  %v5037_v3 = vpack.c.bf16 %v1281_v60, %v1274_v34  ;;  %v1414_v31 = vand.u32 4294901760, %v1413_v41  ;;  %v9040_v60 = vld [vmem:[#allocation44_spill] sm:$0xff] }
  0xca   :  { %v1308_v62 = vsub.f32 %v6511_v37, %v9030_v28  ;;  %9031 = vst [vmem:[#allocation42_spill] sm:$0xff] %v6793_v32  ;;  %v1421_v25 = vand.u32 4294901760, %v1420_v26  ;;  %v5039_v59 = vpack.c.bf16 %v1407_v5, %v1400_v54  ;;  %v9035_v8 = vand.u32 4294901760, %v6516_v61  ;;  %5010 = vmatpush3.bf16.msra.mxu0 %v6782_v57 }
  0xcb   :  { %v6800_v24 = vpack.c.bf16 %v9034_v15, %v9033_v2  ;;  %v9036_v28 = vand.u32 4294901760, %v6524_v55  ;;  %v9037_v50 = vand.u32 4294901760, %v6428_v42  ;;  %v9038_v39 = vand.u32 4294901760, %v6430_v51  ;;  %5038 = vmatpush3.bf16.msra.mxu1 %v5037_v3  ;;  %v9046_v3 = vld [vmem:[#allocation45_spill] sm:$0xff] }
  0xcc   :  { %v1427_v14 = vsub.f32 %v6516_v61, %v9035_v8  ;;  %v9039_v34 = vand.u32 4294901760, %v6432_v7  ;;  %v9041_v41 = vand.u32 4294901760, %v9040_v60  ;;  %v5041_v4 = vpack.c.bf16 %v1295_v30, %v1288_v22  ;;  %5040 = vmatprep.subr.bf16.mxu1 %v5039_v59  ;;  %v9051_v60 = vld [vmem:[#allocation49_spill] sm:$0xff] }
  0xcd   :  { %v1434_v35 = vsub.f32 %v6524_v55, %v9036_v28  ;;  %v6812_v40 = vpack.c.bf16 %v9038_v39, %v9037_v50  ;;  %v1302_v54 = vand.u32 4294901760, %v1301_v1  ;;  %v1309_v5 = vand.u32 4294901760, %v1308_v62  ;;  %5012 = vmatprep.subr.bf16.mxu0 %v6800_v24 }
  0xce   :  { %v6818_v26 = vpack.c.bf16 %v9041_v41, %v9039_v34  ;;  %v8646_v2 = vand.u32 4294901760, %v6793_v32  ;;  %v5043_v42 = vpack.c.bf16 %v1421_v25, %v1414_v31  ;;  %v9042_v51 = vand.u32 4294901760, %v6530_v38  ;;  %v9048_v25 = vld [vmem:[#allocation46_spill] sm:$0xff] }
  0xcf   :  { %v9043_v7 = vand.u32 4294901760, %v6535_v6  ;;  %v1428_v28 = vand.u32 4294901760, %v1427_v14  ;;  %v1435_v50 = vand.u32 4294901760, %v1434_v35  ;;  %v9044_v22 = vand.u32 4294901760, %v6541_v44  ;;  %5014 = vmatpush3.bf16.msra.mxu0 %v6812_v40  ;;  %v9053_v14 = vld [vmem:[#allocation50_spill] sm:$0xff]  ;;  %5042 = vmatpush3.bf16.msra.mxu1 %v5041_v4 }
  0xd0   :  { %v1315_v15 = vsub.f32 %v6530_v38, %v9042_v51  ;;  %v9045_v1 = vand.u32 4294901760, %v6546_v45  ;;  %v9047_v31 = vand.u32 4294901760, %v9046_v3  ;;  %v9049_v39 = vand.u32 4294901760, %v9048_v25  ;;  %5016 = vmatprep.subr.bf16.mxu0 %v6818_v26  ;;  %5044 = vmatprep.subr.bf16.mxu1 %v5043_v42 }
  0xd1   :  { %v1322_v8 = vsub.f32 %v6535_v6, %v9043_v7  ;;  %v1441_v30 = vsub.f32 %v6541_v44, %v9044_v22  ;;  %v9052_v59 = vand.u32 4294901760, %v9051_v60  ;;  %v9054_v35 = vand.u32 4294901760, %v9053_v14 }
  0xd2   :  { %v1448_v62 = vsub.f32 %v6546_v45, %v9045_v1  ;;  %v6840_v34 = vpack.c.bf16 %v9049_v39, %v9047_v31  ;;  %v5045_v51 = vpack.c.bf16 %v1309_v5, %v1302_v54  ;;  %v1220_v7 = vsub.f32 %v6793_v32, %v8646_v2  ;;  %v6906_v2 = vld [vmem:[#allocation7 + $0x218] sm:$0xff] }
  0xd3   :  { %v6846_v41 = vpack.c.bf16 %v9054_v35, %v9052_v59  ;;  %v1316_v22 = vand.u32 4294901760, %v1315_v15  ;;  %v1323_v1 = vand.u32 4294901760, %v1322_v8  ;;  %v9056_v3 = vand.u32 4294901760, %v6551_v21  ;;  %v9058_v59 = vld [vmem:[#allocation51_spill] sm:$0xff]  ;;  %9071 = vst [vmem:[#allocation32_spill] sm:$0xff] %v6906_v2 }
  0xd4   :  { %9050 = vst [vmem:[#allocation43_spill] sm:$0xff] %v6840_v34  ;;  %v9057_v25 = vand.u32 4294901760, %v6565_v23  ;;  %v5047_v60 = vpack.c.bf16 %v1435_v50, %v1428_v28  ;;  %v1442_v54 = vand.u32 4294901760, %v1441_v30  ;;  %v1449_v5 = vand.u32 4294901760, %v1448_v62  ;;  %5018 = vmatpush3.bf16.msra.mxu0 %v6840_v34  ;;  %v6871_v28 = vld [vmem:[#allocation7 + $0x280] sm:$0xff]  ;;  %5046 = vmatpush3.bf16.msra.mxu1 %v5045_v51  ;;  %v6888_v51 = vld [vmem:[#allocation7 + $0x298] sm:$0xff] }
  0xd5   :  { %9055 = vst [vmem:[#allocation34_spill] sm:$0xff] %v6846_v41  ;;  %v1329_v31 = vsub.f32 %v6551_v21, %v9056_v3  ;;  %v9059_v14 = vand.u32 4294901760, %v9058_v59  ;;  %v9060_v4 = vand.u32 4294901760, %v6487_v43  ;;  %v5055_v8 = vpack.c.bf16 %v6209_v11, %v6207_v47  ;;  %9062 = vst [vmem:[#allocation37_spill] sm:$0xff] %v6871_v28  ;;  %5020 = vmatprep.subr.bf16.mxu0 %v6846_v41  ;;  %v6874_v3 = vld [vmem:[#allocation7 + $0x288] sm:$0xff]  ;;  %v7110_v32 = vld [vmem:[#allocation7 + $0x278] sm:$0xff] }
  0xd6   :  { %v1336_v39 = vsub.f32 %v6565_v23, %v9057_v25  ;;  %v5057_v35 = vpack.c.bf16 %v6230_v16, %v6228_v29  ;;  %v5059_v42 = vpack.c.bf16 %v6254_v52, %v6252_v9  ;;  %v1221_v50 = vand.u32 4294901760, %v1220_v7  ;;  %9063 = vst [vmem:[#allocation17_spill] sm:$0xff] %v6874_v3  ;;  %v6876_v25 = vld [vmem:[#allocation7 + $0x200] sm:$0xff]  ;;  %5048 = vmatprep.subr.bf16.mxu1 %v5047_v60  ;;  %v6884_v9 = vld [vmem:[#allocation7 + $0x208] sm:$0xff]  ;;  %v6886_v52 = vld [vmem:[#allocation7 + $0x290] sm:$0xff] }
  0xd7   :  { %v6863_v15 = vpack.c.bf16 %v9060_v4, %v9059_v14  ;;  %v5049_v30 = vpack.c.bf16 %v1323_v1, %v1316_v22  ;;  %v1330_v62 = vand.u32 4294901760, %v1329_v31  ;;  %9064 = vst [vmem:[#allocation18_spill] sm:$0xff] %v6876_v25  ;;  %v5051_v47 = vpack.c.bf16 %v1449_v5, %v1442_v54  ;;  %9065 = vst [vmem:[#allocation21_spill] sm:$0xff] %v6884_v9  ;;  %v9068_v7 = vld [vmem:[#allocation31_spill] sm:$0xff]  ;;  %v9070_v54 = vld [vmem:[#allocation48_spill] sm:$0xff] }
  0xd8   :  { %v1337_v43 = vand.u32 4294901760, %v1336_v39  ;;  %9066 = vst [vmem:[#allocation20_spill] sm:$0xff] %v6886_v52  ;;  %9067 = vst [vmem:[#allocation23_spill] sm:$0xff] %v6888_v51  ;;  %v8647_v39 = vand.u32 4294901760, %v6871_v28  ;;  %v6897_v60 = vld [vmem:[#allocation7 + $0x210] sm:$0xff]  ;;  %v8648_v14 = vand.u32 4294901760, %v6874_v3 }
  0xd9   :  { %9061 = vst [vmem:[#allocation36_spill] sm:$0xff] %v6863_v15  ;;  %9069 = vst [vmem:[#allocation28_spill] sm:$0xff] %v6897_v60  ;;  %5022 = vmatpush3.bf16.msra.mxu0 %v6863_v15  ;;  %v8649_v4 = vand.u32 4294901760, %v6876_v25  ;;  %v6908_v1 = vld [vmem:[#allocation7 + $0x2a0] sm:$0xff]  ;;  %5050 = vmatpush3.bf16.msra.mxu1 %v5049_v30  ;;  %v8651_v22 = vand.u32 4294901760, %v6884_v9  ;;  %v8653_v16 = vand.u32 4294901760, %v6886_v52  ;;  %v9098_v15 = vpack.c.bf16 %v6303_v19, %v6290_v12 }
  0xda   :  { %9072 = vst [vmem:[#allocation33_spill] sm:$0xff] %v6908_v1  ;;  %5056 = vmatprep.subr.bf16.mxu0 %v5055_v8  ;;  %v5053_v31 = vpack.c.bf16 %v1337_v43, %v1330_v62  ;;  %v6913_v29 = vld [vmem:[#allocation7 + $0x2a8] sm:$0xff]  ;;  %5052 = vmatprep.subr.bf16.mxu1 %v5051_v47  ;;  %v6927_v43 = vsub.f32 %v6871_v28, %v8647_v39  ;;  %v6931_v5 = vld [vmem:[#allocation7 + $0x220] sm:$0xff]  ;;  %v6935_v8 = vld [vmem:[#allocation7 + $0x2b0] sm:$0xff] }
  0xdb   :  { %9073 = vst [vmem:[#allocation35_spill] sm:$0xff] %v6913_v29  ;;  %9074 = vst [vmem:[#allocation38_spill] sm:$0xff] %v6931_v5  ;;  %v6933_v11 = vld [vmem:[#allocation7 + $0x228] sm:$0xff]  ;;  %v9077_v62 = vld [vmem:[#allocation52_spill] sm:$0xff]  ;;  %v6943_v39 = vsub.f32 %v6874_v3, %v8648_v14  ;;  %v6948_v59 = vsub.f32 %v6876_v25, %v8649_v4  ;;  %v6961_v14 = vsub.f32 %v6886_v52, %v8653_v16 }
  0xdc   :  { %1222 = vmatmul.mubr.f32.vlgmr.msra.gmra.mrb[6].mxu0 %v1221_v50  ;;  %9075 = vst [vmem:[#allocation39_spill] sm:$0xff] %v6933_v11  ;;  %9076 = vst [vmem:[#allocation44_spill] sm:$0xff] %v6935_v8  ;;  %v6951_v30 = vld [vmem:[#allocation7 + $0x2b8] sm:$0xff]  ;;  %v9081_v50 = vand.u32 4294901760, %v6888_v51  ;;  %v6968_v47 = vld [vmem:[#allocation7 + $0x230] sm:$0xff]  ;;  %v9095_v52 = vpack.c.bf16 %v6285_v20, %v6276_v10  ;;  %v9103_v19 = vand.u32 4294901760, %v6933_v11 }
  0xdd   :  { %5058 = vmatpush3.bf16.msra.mxu0 %v5057_v35  ;;  %1589 = vmatprep.mubr.f32.mxu0 %v9077_v62  ;;  %9078 = vst [vmem:[#allocation45_spill] sm:$0xff] %v6951_v30  ;;  %v6956_v35 = vsub.f32 %v6884_v9, %v8651_v22  ;;  %9080 = vst [vmem:[#allocation49_spill] sm:$0xff] %v6961_v14  ;;  %v6970_v25 = vld [vmem:[#allocation7 + $0x238] sm:$0xff]  ;;  %v6981_v3 = vld [vmem:[#allocation7 + $0x2c0] sm:$0xff]  ;;  %v9101_v9 = vand.u32 4294901760, %v9077_v62  ;;  %v9105_v62 = vand.u32 4294901760, %v6951_v30 }
  0xde   :  { %5060 = vmatprep.subr.bf16.mxu0 %v5059_v42  ;;  %5054 = vmatpush3.bf16.msra.mxu1 %v5053_v31  ;;  %v6966_v4 = vsub.f32 %v6888_v51, %v9081_v50  ;;  %9083 = vst [vmem:[#allocation51_spill] sm:$0xff] %v6968_v47  ;;  %9084 = vst [vmem:[#allocation31_spill] sm:$0xff] %v6970_v25  ;;  %v9085_v42 = vld [vmem:[#allocation19_spill] sm:$0xff]  ;;  %v9086_v31 = vand.u32 4294901760, %v6897_v60  ;;  %v6983_v50 = vld [vmem:[#allocation7 + $0x2c8] sm:$0xff]  ;;  %v9090_v51 = vand.u32 4294901760, %v6906_v2 }
  0xdf   :  { %9079 = vst [vmem:[#allocation46_spill] sm:$0xff] %v6956_v35  ;;  %5088 = vmatprep.subr.bf16.mxu1 %v9085_v42  ;;  %9088 = vst [vmem:[#allocation52_spill] sm:$0xff] %v6981_v3  ;;  %v9092_v42 = vand.u32 4294901760, %v6908_v1  ;;  %v7011_v16 = vld [vmem:[#allocation7 + $0x248] sm:$0xff]  ;;  %v9099_v10 = vld [vmem:[#allocation27_spill] sm:$0xff] }
  0xe0   :  { %9082 = vst [vmem:[#allocation50_spill] sm:$0xff] %v6966_v4  ;;  %v6976_v22 = vsub.f32 %v6897_v60, %v9086_v31  ;;  %9089 = vst [vmem:[#allocation72_spill] sm:$0xff] %v6983_v50  ;;  %v6988_v28 = vsub.f32 %v6906_v2, %v9090_v51  ;;  %v6997_v60 = vld [vmem:[#allocation7 + $0x240] sm:$0xff]  ;;  %v9096_v51 = vand.u32 4294901760, %v6913_v29  ;;  %v9121_v41 = vand.u32 4294901760, %v7011_v16 }
  0xe1   :  { %v6993_v31 = vsub.f32 %v6908_v1, %v9092_v42  ;;  %9094 = vst [vmem:[#allocation75_spill] sm:$0xff] %v6997_v60  ;;  %5062 = vmatpush3.bf16.msra.mxu0 %v9095_v52  ;;  %1454 = vmatmul.mubr.f32.vlgmr.msra.gmra.mrb[6].mxu1 %v6769_v33  ;;  %v9102_v1 = vand.u32 4294901760, %v6931_v5  ;;  %v9104_v52 = vand.u32 4294901760, %v6935_v8  ;;  %v7052_v33 = vld [vmem:[#allocation7 + $0x250] sm:$0xff]  ;;  %v9108_v42 = vand.u32 4294901760, %v6968_v47 }
  0xe2   :  { %9087 = vst [vmem:[#allocation48_spill] sm:$0xff] %v6976_v22  ;;  %9091 = vst [vmem:[#allocation73_spill] sm:$0xff] %v6988_v28  ;;  %v7006_v2 = vsub.f32 %v6913_v29, %v9096_v51  ;;  %5064 = vmatprep.subr.bf16.mxu0 %v9098_v15  ;;  %5090 = vmatpush3.bf16.msra.mxu1 %v9099_v10  ;;  %v9100_v29 = vld [vmem:[#allocation26_spill] sm:$0xff]  ;;  %v7032_v15 = vsub.f32 %v6933_v11, %v9103_v19  ;;  %v7050_v11 = vld [vmem:[#allocation7 + $0x2d8] sm:$0xff] }
  0xe3   :  { %9093 = vst [vmem:[#allocation74_spill] sm:$0xff] %v6993_v31  ;;  %5092 = vmatprep.subr.bf16.mxu1 %v9100_v29  ;;  %1696 = vmatprep.mubr.f32.mxu1 %v9101_v9  ;;  %v7027_v12 = vsub.f32 %v6931_v5, %v9102_v1  ;;  %v7037_v20 = vsub.f32 %v6935_v8, %v9104_v52  ;;  %v7048_v19 = vld [vmem:[#allocation7 + $0x2d0] sm:$0xff]  ;;  %9106 = vst [vmem:[#allocation77_spill] sm:$0xff] %v7052_v33  ;;  %v9109_v1 = vand.u32 4294901760, %v6970_v25  ;;  %v7069_v8 = vld [vmem:[#allocation7 + $0x258] sm:$0xff] }
  0xe4   :  { %9097 = vst [vmem:[#allocation76_spill] sm:$0xff] %v7006_v2  ;;  %v7043_v9 = vsub.f32 %v6951_v30, %v9105_v62  ;;  %v9107_v52 = vpack.c.bf16 %v6313_v0, %v6308_v56  ;;  %v7060_v62 = vsub.f32 %v6968_v47, %v9108_v42  ;;  %9110 = vst [vmem:[#allocation78_spill] sm:$0xff] %v7069_v8  ;;  %v7071_v29 = vld [vmem:[#allocation7 + $0x2e0] sm:$0xff]  ;;  %v7073_v56 = vld [vmem:[#allocation7 + $0x2e8] sm:$0xff]  ;;  %v9114_v5 = vand.u32 4294901760, %v6983_v50 }
  0xe5   :  { %v7065_v51 = vsub.f32 %v6970_v25, %v9109_v1  ;;  %v9111_v0 = vpack.c.bf16 %v6341_v49, %v9068_v7  ;;  %v9112_v42 = vld [vmem:[#allocation70_spill] sm:$0xff]  ;;  %v7091_v10 = vld [vmem:[#allocation7 + $0x260] sm:$0xff]  ;;  %v7106_v47 = vld [vmem:[#allocation7 + $0x2f8] sm:$0xff]  ;;  %v9122_v25 = vpack.c.bf16 %v6388_v58, %v6383_v63  ;;  %v9126_v21 = vand.u32 4294901760, %v7048_v19 }
  0xe6   :  { %5066 = vmatpush3.bf16.msra.mxu0 %v9107_v52  ;;  %5094 = vmatpush3.bf16.msra.mxu1 %v9112_v42  ;;  %v9113_v52 = vand.u32 4294901760, %v6981_v3  ;;  %v7087_v30 = vsub.f32 %v6983_v50, %v9114_v5  ;;  %v7093_v49 = vld [vmem:[#allocation7 + $0x268] sm:$0xff]  ;;  %v7095_v7 = vld [vmem:[#allocation7 + $0x2f0] sm:$0xff]  ;;  %9119 = vst [vmem:[#allocation81_spill] sm:$0xff] %v7106_v47  ;;  %v9129_v63 = vand.u32 4294901760, %v7052_v33  ;;  %v9131_v50 = vand.u32 4294901760, %v7071_v29 }
  0xe7   :  { %5068 = vmatprep.subr.bf16.mxu0 %v9111_v0  ;;  %9115 = vst [vmem:[#allocation79_spill] sm:$0xff] %v7093_v49  ;;  %9116 = vst [vmem:[#allocation80_spill] sm:$0xff] %v7095_v7  ;;  %v9117_v0 = vld [vmem:[#allocation22_spill] sm:$0xff]  ;;  %v7139_v23 = vsub.f32 %v7048_v19, %v9126_v21  ;;  %v9132_v5 = vpack.c.bf16 %v9070_v54, %v6443_v27  ;;  %v9135_v21 = vand.u32 4294901760, %v7093_v49 }
  0xe8   :  { %v7082_v1 = vsub.f32 %v6981_v3, %v9113_v52  ;;  %5096 = vmatprep.subr.bf16.mxu1 %v9117_v0  ;;  %v9118_v52 = vand.u32 4294901760, %v6997_v60  ;;  %v7108_v42 = vld [vmem:[#allocation7 + $0x270] sm:$0xff]  ;;  %v7115_v0 = vsub.f32 %v7011_v16, %v9121_v41  ;;  %v9123_v41 = vpack.c.bf16 %v6421_v48, %v6416_v46 }
  0xe9   :  { %9120 = vst [vmem:[#allocation82_spill] sm:$0xff] %v7108_v42  ;;  %v9128_v46 = vand.u32 4294901760, %v7050_v11  ;;  %v7151_v58 = vsub.f32 %v7052_v33, %v9129_v63  ;;  %v9134_v33 = vand.u32 4294901760, %v7091_v10  ;;  %v9138_v54 = vpack.c.bf16 %v6497_v13, %v6465_v17 }
  0xea   :  { %v7101_v3 = vsub.f32 %v6997_v60, %v9118_v52  ;;  %5070 = vmatpush3.bf16.msra.mxu0 %v9122_v25  ;;  %v9124_v52 = vld [vmem:[#allocation16_spill] sm:$0xff]  ;;  %v9125_v25 = vld [vmem:[#allocation29_spill] sm:$0xff]  ;;  %v9130_v60 = vand.u32 4294901760, %v7069_v8  ;;  %v9157_v13 = vand.u32 4294901760, %v6988_v28 }
  0xeb   :  { %5072 = vmatprep.subr.bf16.mxu0 %v9123_v41  ;;  %5098 = vmatpush3.bf16.msra.mxu1 %v9124_v52  ;;  %9127 = vst [vmem:[#allocation16_spill] sm:$0xff] %v7139_v23  ;;  %v7144_v48 = vsub.f32 %v7050_v11, %v9128_v46  ;;  %v7162_v46 = vsub.f32 %v7071_v29, %v9131_v50  ;;  %v9133_v41 = vand.u32 4294901760, %v7073_v56  ;;  %v9136_v50 = vand.u32 4294901760, %v7095_v7 }
  0xec   :  { %5100 = vmatprep.subr.bf16.mxu1 %v9125_v25  ;;  %v7156_v34 = vsub.f32 %v7069_v8, %v9130_v60  ;;  %v7175_v60 = vsub.f32 %v7091_v10, %v9134_v33  ;;  %v7180_v8 = vsub.f32 %v7093_v49, %v9135_v21  ;;  %v9139_v33 = vand.u32 4294901760, %v7106_v47 }
  0xed   :  { %v7170_v63 = vsub.f32 %v7073_v56, %v9133_v41  ;;  %v7185_v27 = vsub.f32 %v7095_v7, %v9136_v50  ;;  %v9141_v21 = vand.u32 4294901760, %v7108_v42  ;;  %v9143_v50 = vand.u32 4294901760, %v7110_v32 }
  0xee   :  { %5074 = vmatpush3.bf16.msra.mxu0 %v9132_v5  ;;  %v7195_v41 = vsub.f32 %v7106_v47, %v9139_v33  ;;  %v9146_v5 = vpack.c.bf16 %v6524_v55, %v6516_v61  ;;  %v9148_v33 = vand.u32 4294901760, %v6943_v39  ;;  %v9150_v61 = vand.u32 4294901760, %v6948_v59 }
  0xef   :  { %9137 = vst [vmem:[#allocation29_spill] sm:$0xff] %v7185_v27  ;;  %5076 = vmatprep.subr.bf16.mxu0 %v9138_v54  ;;  %5102 = vmatpush3.bf16.msra.mxu1 %v6753_v18  ;;  %v7200_v49 = vsub.f32 %v7108_v42, %v9141_v21  ;;  %v7205_v7 = vsub.f32 %v7110_v32, %v9143_v50  ;;  %v9151_v55 = vand.u32 4294901760, %v6956_v35  ;;  %v9153_v42 = vand.u32 4294901760, %v6961_v14 }
  0xf0   :  { %9140 = vst [vmem:[#allocation83_spill] sm:$0xff] %v7195_v41  ;;  %5104 = vmatprep.subr.bf16.mxu1 %v6763_v36  ;;  %v9145_v50 = vpack.c.bf16 %v6511_v37, %v6506_v53  ;;  %v9154_v53 = vand.u32 4294901760, %v6966_v4  ;;  %v9156_v37 = vand.u32 4294901760, %v6976_v22 }
  0xf1   :  { %9142 = vst [vmem:[#allocation84_spill] sm:$0xff] %v7200_v49  ;;  %9144 = vst [vmem:[#allocation85_spill] sm:$0xff] %v7205_v7 }
  0xf2   :  { %5078 = vmatpush3.bf16.msra.mxu0 %v9145_v50  ;;  %v9147_v50 = vand.u32 4294901760, %v6927_v43  ;;  %v7248_v47 = vpack.c.bf16 %v9154_v53, %v9153_v42  ;;  %v7254_v17 = vpack.c.bf16 %v9157_v13, %v9156_v37  ;;  %v9165_v42 = vand.u32 4294901760, %v7037_v20 }
  0xf3   :  { %5080 = vmatprep.subr.bf16.mxu0 %v9146_v5  ;;  %5106 = vmatpush3.bf16.msra.mxu1 %v6782_v57  ;;  %v7242_v5 = vpack.c.bf16 %v9151_v55, %v9150_v61  ;;  %v9162_v61 = vand.u32 4294901760, %v7027_v12  ;;  %v9163_v55 = vand.u32 4294901760, %v7032_v15  ;;  %v9166_v53 = vand.u32 4294901760, %v7043_v9 }
  0xf4   :  { %5108 = vmatprep.subr.bf16.mxu1 %v6800_v24  ;;  %v7236_v54 = vpack.c.bf16 %v9148_v33, %v9147_v50  ;;  %9155 = vst [vmem:[#allocation88_spill] sm:$0xff] %v7248_v47  ;;  %9158 = vst [vmem:[#allocation89_spill] sm:$0xff] %v7254_v17  ;;  %v9159_v33 = vand.u32 4294901760, %v6993_v31  ;;  %v9160_v50 = vand.u32 4294901760, %v7006_v2  ;;  %v9168_v13 = vand.u32 4294901760, %v7060_v62 }
  0xf5   :  { %9152 = vst [vmem:[#allocation87_spill] sm:$0xff] %v7242_v5  ;;  %v7266_v5 = vpack.c.bf16 %v9163_v55, %v9162_v61  ;;  %v7272_v47 = vpack.c.bf16 %v9166_v53, %v9165_v42  ;;  %v9169_v37 = vand.u32 4294901760, %v7065_v51  ;;  %v9173_v61 = vand.u32 4294901760, %v7087_v30 }
  0xf6   :  { %9149 = vst [vmem:[#allocation86_spill] sm:$0xff] %v7236_v54  ;;  %v7260_v21 = vpack.c.bf16 %v9160_v50, %v9159_v33  ;;  %v9171_v33 = vpack.c.bf16 %v6535_v6, %v6530_v38  ;;  %v9172_v50 = vand.u32 4294901760, %v7082_v1  ;;  %v9176_v42 = vand.u32 4294901760, %v7115_v0  ;;  %v9249_v54 = vld [vmem:[#allocation21_spill] sm:$0xff] }
  0xf7   :  { %9164 = vst [vmem:[#allocation91_spill] sm:$0xff] %v7266_v5  ;;  %9167 = vst [vmem:[#allocation92_spill] sm:$0xff] %v7272_v47  ;;  %v7278_v17 = vpack.c.bf16 %v9169_v37, %v9168_v13  ;;  %v9175_v5 = vand.u32 4294901760, %v7101_v3  ;;  %v9178_v47 = vand.u32 4294901760, %v7139_v23  ;;  %v9179_v13 = vand.u32 4294901760, %v7144_v48  ;;  %5110 = vmatpush3.bf16.msra.mxu1 %v6812_v40 }
  0xf8   :  { %9161 = vst [vmem:[#allocation90_spill] sm:$0xff] %v7260_v21  ;;  %5082 = vmatpush3.bf16.msra.mxu0 %v9171_v33  ;;  %v7287_v55 = vpack.c.bf16 %v9173_v61, %v9172_v50  ;;  %v9181_v38 = vand.u32 4294901760, %v7151_v58  ;;  %v9182_v6 = vand.u32 4294901760, %v7156_v34  ;;  %v9184_v50 = vpack.c.bf16 %v6546_v45, %v6541_v44  ;;  %5112 = vmatprep.subr.bf16.mxu1 %v6818_v26  ;;  %v9222_v21 = vld [vmem:[#allocation62_spill] sm:$0xff] }
  0xf9   :  { %9170 = vst [vmem:[#allocation93_spill] sm:$0xff] %v7278_v17  ;;  %v7293_v53 = vpack.c.bf16 %v9176_v42, %v9175_v5  ;;  %v7299_v37 = vpack.c.bf16 %v9179_v13, %v9178_v47  ;;  %v9185_v5 = vand.u32 4294901760, %v7162_v46  ;;  %v9186_v61 = vand.u32 4294901760, %v7170_v63  ;;  %v9217_v17 = vld [vmem:[#allocation60_spill] sm:$0xff] }
  0xfa   :  { %9174 = vst [vmem:[#allocation94_spill] sm:$0xff] %v7287_v55  ;;  %v7305_v33 = vpack.c.bf16 %v9182_v6, %v9181_v38  ;;  %5084 = vmatprep.subr.bf16.mxu0 %v9184_v50  ;;  %v9188_v47 = vand.u32 4294901760, %v7175_v60  ;;  %v9189_v13 = vand.u32 4294901760, %v7180_v8  ;;  %v9191_v38 = vand.u32 4294901760, %v7185_v27  ;;  %v9215_v55 = vld [vmem:[#allocation27_spill] sm:$0xff] }
  0xfb   :  { %9177 = vst [vmem:[#allocation95_spill] sm:$0xff] %v7293_v53  ;;  %9180 = vst [vmem:[#allocation96_spill] sm:$0xff] %v7299_v37  ;;  %v7315_v42 = vpack.c.bf16 %v9186_v61, %v9185_v5  ;;  %v9192_v6 = vand.u32 4294901760, %v7195_v41  ;;  %v9194_v44 = vand.u32 4294901760, %v7200_v49  ;;  %v9195_v50 = vand.u32 4294901760, %v7205_v7  ;;  %v9197_v61 = vld [vmem:[#allocation54_spill] sm:$0xff] }
  0xfc   :  { %9183 = vst [vmem:[#allocation97_spill] sm:$0xff] %v7305_v33  ;;  %v7321_v37 = vpack.c.bf16 %v9189_v13, %v9188_v47  ;;  %v9200_v47 = vld [vmem:[#allocation55_spill] sm:$0xff]  ;;  %v9206_v53 = vld [vmem:[#allocation57_spill] sm:$0xff]  ;;  %v9258_v7 = vld [vmem:[#allocation30_spill] sm:$0xff] }
  0xfd   :  { %9187 = vst [vmem:[#allocation98_spill] sm:$0xff] %v7315_v42  ;;  %v7327_v45 = vpack.c.bf16 %v9192_v6, %v9191_v38  ;;  %v7334_v5 = vpack.c.bf16 %v9195_v50, %v9194_v44  ;;  %v9198_v42 = vld [vmem:[#allocation53_spill] sm:$0xff]  ;;  %v9201_v13 = vld [vmem:[#allocation43_spill] sm:$0xff]  ;;  %v9203_v38 = vld [vmem:[#allocation42_spill] sm:$0xff] }
  0xfe   :  { %9190 = vst [vmem:[#allocation99_spill] sm:$0xff] %v7321_v37  ;;  %v9199_v33 = vpack.c.bf16 %v9197_v61, %v9198_v42  ;;  %5114 = vmatpush3.bf16.msra.mxu1 %v9201_v13  ;;  %v9202_v37 = vld [vmem:[#allocation34_spill] sm:$0xff]  ;;  %v9204_v6 = vld [vmem:[#allocation56_spill] sm:$0xff]  ;;  %v9209_v42 = vld [vmem:[#allocation19_spill] sm:$0xff]  ;;  %v9211_v61 = vand.u32 4294901760, %v9203_v38 }
  0xff   :  { %9193 = vst [vmem:[#allocation100_spill] sm:$0xff] %v7327_v45  ;;  %9196 = vst [vmem:[#allocation101_spill] sm:$0xff] %v7334_v5  ;;  %5116 = vmatprep.subr.bf16.mxu1 %v9202_v37  ;;  %v9205_v45 = vld [vmem:[#allocation47_spill] sm:$0xff]  ;;  %v9207_v44 = vld [vmem:[#allocation36_spill] sm:$0xff] }
 0x100   :  { %5086 = vmatpush3.bf16.msra.mxu0 %v9199_v33  ;;  %v7347_v50 = vld [vmem:[#allocation2 + $0x8] sm:$0xff] }
 0x101   :  { %5120 = vmatprep.subr.bf16.mxu0 %v9200_v47  ;;  %9208 = vst [vmem:[#allocation54_spill] sm:$0xff] %v7347_v50  ;;  %v9210_v33 = vld [vmem:[#allocation58_spill] sm:$0xff]  ;;  %v9212_v47 = vld [vmem:[#allocation15_spill] sm:$0xff] }
 0x102   :  { %5118 = vmatpush3.bf16.msra.mxu1 %v9207_v44  ;;  %v7355_v5 = vrot.slane %v7347_v50, %v9212_v47  ;;  %v9244_v47 = vand.u32 4294901760, %v6988_v28  ;;  %v9247_v50 = vld [vmem:[#allocation18_spill] sm:$0xff] }
 0x103   :  { %1592 = vmatmul.mubr.f32.vlgmr.msra.gmra.mrb[8].mxu0 %v9203_v38  ;;  %5152 = vmatprep.subr.bf16.mxu1 %v9209_v42  ;;  %v9219_v38 = vld [vmem:[#allocation61_spill] sm:$0xff] }
 0x104   :  { %5122 = vmatpush3.bf16.msra.mxu0 %v9204_v6  ;;  %1866 = vmatprep.mubr.f32.mxu0 %v9205_v45  ;;  %9213 = vst [vmem:[#allocation53_spill] sm:$0xff] %v7355_v5  ;;  %v9214_v6 = vld [vmem:[#allocation59_spill] sm:$0xff]  ;;  %v7364_v42 = vcombine.high %v7355_v5, %v7355_v5 }
 0x105   :  { %5124 = vmatprep.subr.bf16.mxu0 %v9206_v53  ;;  %1700 = vmatmul.mubr.f32.vlgmr.msra.gmra.mrb[8].mxu1 %v9211_v61  ;;  %v9216_v53 = vld [vmem:[#allocation26_spill] sm:$0xff] }
 0x106   :  { %5154 = vmatpush3.bf16.msra.mxu1 %v9215_v55  ;;  %1970 = vmatprep.mubr.f32.mxu1 %v9205_v45  ;;  %9218 = vst [vmem:[#allocation55_spill] sm:$0xff] %v7364_v42  ;;  %v9221_v61 = vld [vmem:[#allocation22_spill] sm:$0xff]  ;;  %v7371_v55 = vand.u32 4294901760, %v7364_v42 }
 0x107   :  { %5156 = vmatprep.subr.bf16.mxu1 %v9216_v53  ;;  %v9227_v53 = vld [vmem:[#allocation65_spill] sm:$0xff] }
 0x108   :  { %5126 = vmatpush3.bf16.msra.mxu0 %v9210_v33  ;;  %v9220_v33 = vld [vmem:[#allocation70_spill] sm:$0xff]  ;;  %9223 = vst [vmem:[#allocation43_spill] sm:$0xff] %v7371_v55  ;;  %v7379_v45 = vsub.f32 %v7364_v42, %v7371_v55 }
 0x109   :  { %5128 = vmatprep.subr.bf16.mxu0 %v9214_v6  ;;  %v9224_v6 = vld [vmem:[#allocation63_spill] sm:$0xff] }
 0x10a   :  { %5158 = vmatpush3.bf16.msra.mxu1 %v9220_v33  ;;  %9226 = vst [vmem:[#allocation34_spill] sm:$0xff] %v7379_v45  ;;  %v9229_v33 = vld [vmem:[#allocation67_spill] sm:$0xff] }
 0x10b   :  { %5160 = vmatprep.subr.bf16.mxu1 %v9221_v61  ;;  %v9231_v61 = vand.u32 4294901760, %v6943_v39 }
 0x10c   :  { %5130 = vmatpush3.bf16.msra.mxu0 %v9217_v17  ;;  %v9225_v17 = vld [vmem:[#allocation64_spill] sm:$0xff] }
 0x10d   :  { %5132 = vmatprep.subr.bf16.mxu0 %v9219_v38  ;;  %v8690_v38 = vand.u32 4294901760, %v7379_v45 }
 0x10e   :  { %5162 = vmatpush3.bf16.msra.mxu1 %v9124_v52  ;;  %v9230_v52 = vand.u32 4294901760, %v6927_v43 }
 0x10f   :  { %5164 = vmatprep.subr.bf16.mxu1 %v9125_v25 }
 0x110   :  { %5134 = vmatpush3.bf16.msra.mxu0 %v9222_v21  ;;  %v9228_v21 = vld [vmem:[#allocation66_spill] sm:$0xff]  ;;  %v2205_v25 = vsub.f32 %v6927_v43, %v9230_v52  ;;  %v9239_v52 = vand.u32 4294901760, %v6948_v59 }
 0x111   :  { %5136 = vmatprep.subr.bf16.mxu0 %v9224_v6  ;;  %v9232_v6 = vld [vmem:[#allocation68_spill] sm:$0xff] }
 0x112   :  { %5166 = vmatpush3.bf16.msra.mxu1 %v6753_v18  ;;  %v2212_v18 = vsub.f32 %v6943_v39, %v9231_v61  ;;  %v2093_v61 = vsub.f32 %v6948_v59, %v9239_v52 }
 0x113   :  { %5168 = vmatprep.subr.bf16.mxu1 %v6763_v36  ;;  %v2076_v36 = vsub.f32 %v7379_v45, %v8690_v38  ;;  %v2206_v38 = vand.u32 4294901760, %v2205_v25  ;;  %v9250_v45 = vand.u32 4294901760, %v9249_v54 }
 0x114   :  { %5138 = vmatpush3.bf16.msra.mxu0 %v9225_v17  ;;  %v9233_v17 = vld [vmem:[#allocation69_spill] sm:$0xff] }
 0x115   :  { %5140 = vmatprep.subr.bf16.mxu0 %v9227_v53  ;;  %v9236_v53 = vld [vmem:[#allocation17_spill] sm:$0xff] }
 0x116   :  { %5170 = vmatpush3.bf16.msra.mxu1 %v6782_v57  ;;  %v9234_v57 = vld [vmem:[#allocation37_spill] sm:$0xff] }
 0x117   :  { %5172 = vmatprep.subr.bf16.mxu1 %v6800_v24  ;;  %v9235_v24 = vand.u32 4294901760, %v9234_v57 }
 0x118   :  { %5142 = vmatpush3.bf16.msra.mxu0 %v9228_v21  ;;  %v9237_v21 = vand.u32 4294901760, %v9236_v53  ;;  %v9242_v53 = vand.u32 4294901760, %v6966_v4 }
 0x119   :  { %5144 = vmatprep.subr.bf16.mxu0 %v9229_v33 }
 0x11a   :  { %5174 = vmatpush3.bf16.msra.mxu1 %v6812_v40  ;;  %v7405_v33 = vpack.c.bf16 %v9237_v21, %v9235_v24  ;;  %v9241_v40 = vand.u32 4294901760, %v6961_v14  ;;  %v2226_v24 = vsub.f32 %v6966_v4, %v9242_v53  ;;  %v9243_v21 = vand.u32 4294901760, %v6976_v22 }
 0x11b   :  { %5176 = vmatprep.subr.bf16.mxu1 %v6818_v26  ;;  %v9245_v26 = vand.u32 4294901760, %v6993_v31  ;;  %v9252_v53 = vand.u32 4294901760, %v7006_v2 }
 0x11c   :  { %5146 = vmatpush3.bf16.msra.mxu0 %v9232_v6  ;;  %9238 = vst [vmem:[#allocation42_spill] sm:$0xff] %v7405_v33  ;;  %v9240_v6 = vand.u32 4294901760, %v6956_v35  ;;  %v2219_v57 = vsub.f32 %v6961_v14, %v9241_v40  ;;  %v2107_v52 = vsub.f32 %v6976_v22, %v9243_v21  ;;  %v9248_v40 = vand.u32 4294901760, %v9247_v50 }
 0x11d   :  { %5148 = vmatprep.subr.bf16.mxu0 %v9233_v17  ;;  %v2213_v17 = vand.u32 4294901760, %v2212_v18  ;;  %v2233_v25 = vsub.f32 %v6993_v31, %v9245_v26  ;;  %v9246_v18 = vld [vmem:[#allocation71_spill] sm:$0xff]  ;;  %v2240_v21 = vsub.f32 %v7006_v2, %v9252_v53  ;;  %v2077_v22 = vand.u32 4294901760, %v2076_v36  ;;  %v9259_v36 = vld [vmem:[#allocation28_spill] sm:$0xff] }
 0x11e   :  { %v2100_v42 = vsub.f32 %v6956_v35, %v9240_v6  ;;  %v2114_v6 = vsub.f32 %v6988_v28, %v9244_v47  ;;  %v7434_v14 = vpack.c.bf16 %v9250_v45, %v9248_v40  ;;  %5178 = vmatpush3.bf16.msra.mxu1 %v9201_v13  ;;  %v9253_v47 = vld [vmem:[#allocation20_spill] sm:$0xff]  ;;  %v9255_v26 = vld [vmem:[#allocation23_spill] sm:$0xff]  ;;  %v2094_v50 = vand.u32 4294901760, %v2093_v61 }
 0x11f   :  { %v9254_v28 = vand.u32 4294901760, %v9253_v47  ;;  %v9256_v31 = vand.u32 4294901760, %v9255_v26  ;;  %5180 = vmatprep.subr.bf16.mxu1 %v9202_v37  ;;  %v5215_v54 = vpack.c.bf16 %v2213_v17, %v2206_v38  ;;  %v2220_v45 = vand.u32 4294901760, %v2219_v57  ;;  %v9268_v57 = vld [vmem:[#allocation35_spill] sm:$0xff] }
 0x120   :  { %5150 = vmatpush3.bf16.msra.mxu0 %v9246_v18  ;;  %9251 = vst [vmem:[#allocation56_spill] sm:$0xff] %v7434_v14  ;;  %v2101_v4 = vand.u32 4294901760, %v2100_v42  ;;  %v2227_v40 = vand.u32 4294901760, %v2226_v24  ;;  %v9260_v53 = vand.u32 4294901760, %v9259_v36  ;;  %v2108_v47 = vand.u32 4294901760, %v2107_v52 }
 0x121   :  { %5184 = vmatprep.subr.bf16.mxu0 %v7405_v33  ;;  %v7445_v18 = vpack.c.bf16 %v9256_v31, %v9254_v28  ;;  %v9261_v33 = vld [vmem:[#allocation32_spill] sm:$0xff]  ;;  %v2115_v35 = vand.u32 4294901760, %v2114_v6  ;;  %v2234_v26 = vand.u32 4294901760, %v2233_v25  ;;  %v2241_v28 = vand.u32 4294901760, %v2240_v21 }
 0x122   :  { %v9262_v2 = vand.u32 4294901760, %v9261_v33  ;;  %v9263_v31 = vand.u32 4294901760, %v7027_v12  ;;  %v9264_v42 = vand.u32 4294901760, %v7032_v15  ;;  %v9265_v61 = vand.u32 4294901760, %v7037_v20  ;;  %5182 = vmatpush3.bf16.msra.mxu1 %v9207_v44  ;;  %v9275_v44 = vld [vmem:[#allocation44_spill] sm:$0xff] }
 0x123   :  { %9257 = vst [vmem:[#allocation47_spill] sm:$0xff] %v7445_v18  ;;  %1868 = vmatmul.mubr.f32.vlgmr.msra.gmra.mrb[10].mxu0 %v9258_v7  ;;  %v9269_v24 = vand.u32 4294901760, %v9268_v57  ;;  %v5217_v6 = vpack.c.bf16 %v2101_v4, %v2094_v50  ;;  %v9270_v25 = vand.u32 4294901760, %v7043_v9  ;;  %5216 = vmatprep.subr.bf16.mxu1 %v5215_v54  ;;  %v5219_v36 = vpack.c.bf16 %v2227_v40, %v2220_v45 }
 0x124   :  { %v7453_v13 = vpack.c.bf16 %v9262_v2, %v9260_v53  ;;  %5186 = vmatpush3.bf16.msra.mxu0 %v7434_v14  ;;  %v2121_v37 = vsub.f32 %v7027_v12, %v9263_v31  ;;  %v2128_v38 = vsub.f32 %v7032_v15, %v9264_v42  ;;  %v2247_v33 = vsub.f32 %v7037_v20, %v9265_v61  ;;  %v9266_v2 = vld [vmem:[#allocation33_spill] sm:$0xff]  ;;  %v9271_v53 = vld [vmem:[#allocation38_spill] sm:$0xff] }
 0x125   :  { %2078 = vmatprep.mubr.f32.mxu0 %v2077_v22  ;;  %5188 = vmatprep.subr.bf16.mxu0 %v7445_v18  ;;  %v9267_v17 = vand.u32 4294901760, %v9266_v2  ;;  %v2254_v21 = vsub.f32 %v7043_v9, %v9270_v25  ;;  %v9272_v31 = vand.u32 4294901760, %v9271_v53  ;;  %v9273_v22 = vld [vmem:[#allocation39_spill] sm:$0xff]  ;;  %v9276_v18 = vand.u32 4294901760, %v9275_v44  ;;  %v9277_v2 = vld [vmem:[#allocation45_spill] sm:$0xff] }
 0x126   :  { %v9274_v42 = vand.u32 4294901760, %v9273_v22  ;;  %v9278_v14 = vand.u32 4294901760, %v9277_v2  ;;  %1972 = vmatmul.mubr.f32.vlgmr.msra.gmra.mrb[10].mxu1 %v9258_v7  ;;  %v5223_v4 = vpack.c.bf16 %v2241_v28, %v2234_v26  ;;  %v2122_v50 = vand.u32 4294901760, %v2121_v37  ;;  %v9288_v53 = vld [vmem:[#allocation31_spill] sm:$0xff]  ;;  %v9292_v2 = vld [vmem:[#allocation72_spill] sm:$0xff] }
 0x127   :  { %v7471_v52 = vpack.c.bf16 %v9269_v24, %v9267_v17  ;;  %v5221_v17 = vpack.c.bf16 %v2115_v35, %v2108_v47  ;;  %v2129_v54 = vand.u32 4294901760, %v2128_v38  ;;  %v2248_v45 = vand.u32 4294901760, %v2247_v33  ;;  %5218 = vmatpush3.bf16.msra.mxu1 %v5217_v6  ;;  %2314 = vmatprep.mubr.f32.mxu1 %v7371_v55  ;;  %v9286_v6 = vld [vmem:[#allocation51_spill] sm:$0xff] }
 0x128   :  { %v7480_v61 = vpack.c.bf16 %v9274_v42, %v9272_v31  ;;  %v7486_v57 = vpack.c.bf16 %v9278_v14, %v9276_v18  ;;  %5190 = vmatpush3.bf16.msra.mxu0 %v7453_v13  ;;  %v2255_v40 = vand.u32 4294901760, %v2254_v21  ;;  %v9280_v24 = vand.u32 4294901760, %v7060_v62  ;;  %5220 = vmatprep.subr.bf16.mxu1 %v5219_v36  ;;  %v9290_v42 = vld [vmem:[#allocation52_spill] sm:$0xff] }
 0x129   :  { %5192 = vmatprep.subr.bf16.mxu0 %v7471_v52  ;;  %v9281_v14 = vand.u32 4294901760, %v7065_v51  ;;  %v9282_v18 = vand.u32 4294901760, %v7082_v1  ;;  %v9283_v47 = vand.u32 4294901760, %v7087_v30  ;;  %v9284_v28 = vand.u32 4294901760, %v7101_v3 }
 0x12a   :  { %9279 = vst [vmem:[#allocation57_spill] sm:$0xff] %v7486_v57  ;;  %v2135_v25 = vsub.f32 %v7060_v62, %v9280_v24  ;;  %v9285_v38 = vand.u32 4294901760, %v7115_v0  ;;  %v9287_v21 = vand.u32 4294901760, %v9286_v6  ;;  %v9289_v31 = vand.u32 4294901760, %v9288_v53 }
 0x12b   :  { %v2142_v35 = vsub.f32 %v7065_v51, %v9281_v14  ;;  %v2261_v7 = vsub.f32 %v7082_v1, %v9282_v18  ;;  %v2268_v26 = vsub.f32 %v7087_v30, %v9283_v47  ;;  %v2149_v37 = vsub.f32 %v7101_v3, %v9284_v28  ;;  %v9294_v18 = vld [vmem:[#allocation75_spill] sm:$0xff]  ;;  %5222 = vmatpush3.bf16.msra.mxu1 %v5221_v17 }
 0x12c   :  { %v2156_v33 = vsub.f32 %v7115_v0, %v9285_v38  ;;  %v7514_v22 = vpack.c.bf16 %v9289_v31, %v9287_v21  ;;  %v7517_v36 = vand.u32 4294901760, %v7355_v5  ;;  %5194 = vmatpush3.bf16.msra.mxu0 %v7480_v61  ;;  %v9291_v44 = vand.u32 4294901760, %v9290_v42  ;;  %5224 = vmatprep.subr.bf16.mxu1 %v5223_v4 }
 0x12d   :  { %v9293_v24 = vand.u32 4294901760, %v9292_v2  ;;  %v9295_v47 = vand.u32 4294901760, %v9294_v18  ;;  %v9296_v28 = vand.u32 4294901760, %v7011_v16  ;;  %v9298_v6 = vand.u32 4294901760, %v7139_v23  ;;  %5196 = vmatprep.subr.bf16.mxu0 %v7486_v57 }
 0x12e   :  { %v9299_v53 = vand.u32 4294901760, %v7144_v48  ;;  %v5225_v42 = vpack.c.bf16 %v2129_v54, %v2122_v50  ;;  %v2136_v2 = vand.u32 4294901760, %v2135_v25  ;;  %v2262_v18 = vand.u32 4294901760, %v2261_v7  ;;  %v9306_v54 = vld [vmem:[#allocation77_spill] sm:$0xff] }
 0x12f   :  { %v7524_v14 = vpack.c.bf16 %v9293_v24, %v9291_v44  ;;  %v7530_v38 = vpack.c.bf16 %v9296_v28, %v9295_v47  ;;  %v2275_v21 = vsub.f32 %v7139_v23, %v9298_v6  ;;  %v5227_v44 = vpack.c.bf16 %v2255_v40, %v2248_v45  ;;  %v9308_v45 = vld [vmem:[#allocation78_spill] sm:$0xff] }
 0x130   :  { %v2282_v31 = vsub.f32 %v7144_v48, %v9299_v53  ;;  %v2143_v24 = vand.u32 4294901760, %v2142_v35  ;;  %v2269_v16 = vand.u32 4294901760, %v2268_v26  ;;  %v2150_v47 = vand.u32 4294901760, %v2149_v37  ;;  %5198 = vmatpush3.bf16.msra.mxu0 %v7514_v22  ;;  %5226 = vmatpush3.bf16.msra.mxu1 %v5225_v42 }
 0x131   :  { %9297 = vst [vmem:[#allocation36_spill] sm:$0xff] %v7530_v38  ;;  %v2157_v28 = vand.u32 4294901760, %v2156_v33  ;;  %v9300_v55 = vand.u32 4294901760, %v7048_v19  ;;  %v9301_v6 = vand.u32 4294901760, %v7050_v11  ;;  %v9303_v53 = vand.u32 4294901760, %v7151_v58  ;;  %5200 = vmatprep.subr.bf16.mxu0 %v7524_v14  ;;  %5228 = vmatprep.subr.bf16.mxu1 %v5227_v44 }
 0x132   :  { %v9304_v17 = vand.u32 4294901760, %v7156_v34  ;;  %v7553_v4 = vsub.f32 %v7355_v5, %v7517_v36  ;;  %v9307_v19 = vand.u32 4294901760, %v9306_v54  ;;  %v9309_v11 = vand.u32 4294901760, %v9308_v45  ;;  %v9316_v54 = vld [vmem:[#allocation79_spill] sm:$0xff] }
 0x133   :  { %v7543_v23 = vpack.c.bf16 %v9301_v6, %v9300_v55  ;;  %v2163_v57 = vsub.f32 %v7151_v58, %v9303_v53  ;;  %v2276_v40 = vand.u32 4294901760, %v2275_v21  ;;  %v2283_v25 = vand.u32 4294901760, %v2282_v31 }
 0x134   :  { %v2170_v50 = vsub.f32 %v7156_v34, %v9304_v17  ;;  %9305 = vst [vmem:[#allocation58_spill] sm:$0xff] %v7553_v4  ;;  %v7560_v55 = vpack.c.bf16 %v9309_v11, %v9307_v19  ;;  %v9311_v35 = vand.u32 4294901760, %v7162_v46  ;;  %v5229_v26 = vpack.c.bf16 %v2143_v24, %v2136_v2  ;;  %v9318_v2 = vld [vmem:[#allocation80_spill] sm:$0xff]  ;;  %5202 = vmatpush3.bf16.msra.mxu0 %v7530_v38  ;;  %v7656_v38 = vld [vmem:[#allocation7 + $0x3a8] sm:$0xff] }
 0x135   :  { %9302 = vst [vmem:[#allocation19_spill] sm:$0xff] %v7543_v23  ;;  %v9312_v37 = vand.u32 4294901760, %v7071_v29  ;;  %v9313_v33 = vand.u32 4294901760, %v7073_v56  ;;  %v9314_v53 = vand.u32 4294901760, %v7170_v63  ;;  %v5231_v21 = vpack.c.bf16 %v2269_v16, %v2262_v18  ;;  %v9320_v29 = vld [vmem:[#allocation81_spill] sm:$0xff]  ;;  %5204 = vmatprep.subr.bf16.mxu0 %v7543_v23  ;;  %9344 = vst [vmem:[#allocation64_spill] sm:$0xff] %v7656_v38 }
 0x136   :  { %9310 = vst [vmem:[#allocation59_spill] sm:$0xff] %v7560_v55  ;;  %v2289_v7 = vsub.f32 %v7162_v46, %v9311_v35  ;;  %v9315_v31 = vand.u32 4294901760, %v7091_v10  ;;  %v9317_v19 = vand.u32 4294901760, %v9316_v54  ;;  %v5233_v42 = vpack.c.bf16 %v2157_v28, %v2150_v47  ;;  %v7591_v10 = vld [vmem:[#allocation7 + $0x380] sm:$0xff]  ;;  %v9324_v47 = vld [vmem:[#allocation82_spill] sm:$0xff]  ;;  %5230 = vmatpush3.bf16.msra.mxu1 %v5229_v26  ;;  %v7635_v26 = vld [vmem:[#allocation7 + $0x398] sm:$0xff] }
 0x137   :  { %v7570_v6 = vpack.c.bf16 %v9313_v33, %v9312_v37  ;;  %v2296_v17 = vsub.f32 %v7170_v63, %v9314_v53  ;;  %v9319_v24 = vand.u32 4294901760, %v9318_v2  ;;  %v9321_v11 = vand.u32 4294901760, %v9320_v29  ;;  %9323 = vst [vmem:[#allocation27_spill] sm:$0xff] %v7591_v10  ;;  %5232 = vmatprep.subr.bf16.mxu1 %v5231_v21  ;;  %9337 = vst [vmem:[#allocation70_spill] sm:$0xff] %v7635_v26  ;;  %v9338_v23 = vld [vmem:[#allocation49_spill] sm:$0xff] }
 0x138   :  { %v7579_v45 = vpack.c.bf16 %v9317_v19, %v9315_v31  ;;  %v2164_v35 = vand.u32 4294901760, %v2163_v57  ;;  %v2171_v37 = vand.u32 4294901760, %v2170_v50  ;;  %v8722_v33 = vand.u32 4294901760, %v7553_v4  ;;  %v7603_v19 = vld [vmem:[#allocation7 + $0x388] sm:$0xff]  ;;  %5206 = vmatpush3.bf16.msra.mxu0 %v7560_v55  ;;  %v7647_v55 = vld [vmem:[#allocation7 + $0x3a0] sm:$0xff] }
 0x139   :  { %v7585_v56 = vpack.c.bf16 %v9321_v11, %v9319_v24  ;;  %v9322_v44 = vand.u32 4294901760, %v7175_v60  ;;  %v5235_v16 = vpack.c.bf16 %v2283_v25, %v2276_v40  ;;  %v9325_v28 = vand.u32 4294901760, %v9324_v47  ;;  %9328 = vst [vmem:[#allocation26_spill] sm:$0xff] %v7603_v19  ;;  %v7615_v11 = vld [vmem:[#allocation7 + $0x300] sm:$0xff]  ;;  %5208 = vmatprep.subr.bf16.mxu0 %v7570_v6  ;;  %9342 = vst [vmem:[#allocation63_spill] sm:$0xff] %v7647_v55 }
 0x13a   :  { %v9326_v53 = vand.u32 4294901760, %v7110_v32  ;;  %v2290_v54 = vand.u32 4294901760, %v2289_v7  ;;  %v9327_v57 = vand.u32 4294901760, %v7180_v8  ;;  %v2297_v2 = vand.u32 4294901760, %v2296_v17  ;;  %9332 = vst [vmem:[#allocation60_spill] sm:$0xff] %v7615_v11  ;;  %v9334_v17 = vld [vmem:[#allocation46_spill] sm:$0xff]  ;;  %5234 = vmatpush3.bf16.msra.mxu1 %v5233_v42 }
 0x13b   :  { %v2177_v18 = vsub.f32 %v7175_v60, %v9322_v44  ;;  %v9329_v24 = vand.u32 4294901760, %v7185_v27  ;;  %v9330_v25 = vand.u32 4294901760, %v7195_v41  ;;  %v9331_v7 = vand.u32 4294901760, %v7200_v49  ;;  %v7617_v44 = vld [vmem:[#allocation7 + $0x308] sm:$0xff]  ;;  %5236 = vmatprep.subr.bf16.mxu1 %v5235_v16  ;;  %v7658_v42 = vld [vmem:[#allocation7 + $0x320] sm:$0xff] }
 0x13c   :  { %v7598_v31 = vpack.c.bf16 %v9326_v53, %v9325_v28  ;;  %v2184_v50 = vsub.f32 %v7180_v8, %v9327_v57  ;;  %9333 = vst [vmem:[#allocation61_spill] sm:$0xff] %v7617_v44  ;;  %v9335_v28 = vld [vmem:[#allocation85_spill] sm:$0xff]  ;;  %9345 = vst [vmem:[#allocation65_spill] sm:$0xff] %v7658_v42  ;;  %5210 = vmatpush3.bf16.msra.mxu0 %v7579_v45 }
 0x13d   :  { %v2303_v40 = vsub.f32 %v7185_v27, %v9329_v24  ;;  %v2310_v32 = vsub.f32 %v7195_v41, %v9330_v25  ;;  %v2191_v29 = vsub.f32 %v7200_v49, %v9331_v7  ;;  %v9336_v53 = vand.u32 4294901760, %v9335_v28  ;;  %v7633_v49 = vld [vmem:[#allocation7 + $0x390] sm:$0xff]  ;;  %5212 = vmatprep.subr.bf16.mxu0 %v7585_v56 }
 0x13e   :  { %v5237_v25 = vpack.c.bf16 %v2171_v37, %v2164_v35  ;;  %v7630_v7 = vsub.f32 %v7553_v4, %v8722_v33  ;;  %v2178_v5 = vand.u32 4294901760, %v2177_v18  ;;  %v2185_v47 = vand.u32 4294901760, %v2184_v50  ;;  %v7642_v24 = vld [vmem:[#allocation7 + $0x310] sm:$0xff]  ;;  %v7644_v33 = vld [vmem:[#allocation7 + $0x318] sm:$0xff]  ;;  %v7680_v37 = vld [vmem:[#allocation7 + $0x328] sm:$0xff] }
 0x13f   :  { %v2198_v57 = vsub.f32 %v9335_v28, %v9336_v53  ;;  %v9339_v53 = vld [vmem:[#allocation50_spill] sm:$0xff]  ;;  %9340 = vst [vmem:[#allocation22_spill] sm:$0xff] %v7642_v24  ;;  %9341 = vst [vmem:[#allocation62_spill] sm:$0xff] %v7644_v33  ;;  %v5239_v18 = vpack.c.bf16 %v2297_v2, %v2290_v54  ;;  %v2304_v21 = vand.u32 4294901760, %v2303_v40  ;;  %v2311_v4 = vand.u32 4294901760, %v2310_v32  ;;  %v9350_v40 = vld [vmem:[#allocation48_spill] sm:$0xff] }
 0x140   :  { %v2192_v41 = vand.u32 4294901760, %v2191_v29  ;;  %v9343_v28 = vand.u32 4294901760, %v7591_v10  ;;  %v2083_v54 = vand.u32 4294901760, %v7630_v7  ;;  %v9346_v2 = vand.u32 4294901760, %v7603_v19  ;;  %9349 = vst [vmem:[#allocation66_spill] sm:$0xff] %v7680_v37  ;;  %5238 = vmatpush3.bf16.msra.mxu1 %v5237_v25  ;;  %5214 = vmatpush3.bf16.msra.mxu0 %v7598_v31 }
 0x141   :  { %v2199_v50 = vand.u32 4294901760, %v2198_v57  ;;  %v5241_v29 = vpack.c.bf16 %v2185_v47, %v2178_v5  ;;  %v9348_v27 = vand.u32 4294901760, %v7617_v44  ;;  %v5243_v32 = vpack.c.bf16 %v2311_v4, %v2304_v21  ;;  %v9351_v5 = vld [vmem:[#allocation73_spill] sm:$0xff]  ;;  %5240 = vmatprep.subr.bf16.mxu1 %v5239_v18  ;;  %v7700_v21 = vld [vmem:[#allocation7 + $0x3b8] sm:$0xff] }
 0x142   :  { %v7652_v35 = vsub.f32 %v7591_v10, %v9343_v28  ;;  %v7664_v16 = vsub.f32 %v7603_v19, %v9346_v2  ;;  %v9347_v28 = vand.u32 4294901760, %v7615_v11  ;;  %v5253_v47 = vpack.c.bf16 %v9351_v5, %v9350_v40  ;;  %9355 = vst [vmem:[#allocation68_spill] sm:$0xff] %v7700_v21 }
 0x143   :  { %v7677_v7 = vsub.f32 %v7617_v44, %v9348_v27  ;;  %v5245_v27 = vpack.c.bf16 %v2199_v50, %v2192_v41  ;;  %v9353_v44 = vand.u32 4294901760, %v7633_v49  ;;  %v9354_v10 = vand.u32 4294901760, %v7635_v26  ;;  %2084 = vmatmul.mubr.f32.vlgmr.msra.gmra.mrb[12].mxu0 %v2083_v54 }
 0x144   :  { %v7672_v57 = vsub.f32 %v7615_v11, %v9347_v28  ;;  %v7687_v11 = vld [vmem:[#allocation7 + $0x3b0] sm:$0xff]  ;;  %v9356_v40 = vand.u32 4294901760, %v7642_v24  ;;  %v9357_v41 = vand.u32 4294901760, %v7644_v33  ;;  %v9359_v25 = vand.u32 4294901760, %v7647_v55  ;;  %5242 = vmatpush3.bf16.msra.mxu1 %v5241_v29 }
 0x145   :  { %9352 = vst [vmem:[#allocation67_spill] sm:$0xff] %v7687_v11  ;;  %v7692_v2 = vsub.f32 %v7633_v49, %v9353_v44  ;;  %v7697_v4 = vsub.f32 %v7635_v26, %v9354_v10  ;;  %v7714_v10 = vld [vmem:[#allocation7 + $0x330] sm:$0xff]  ;;  %v9361_v50 = vpack.c.bf16 %v6943_v39, %v6927_v43  ;;  %v9362_v44 = vand.u32 4294901760, %v7656_v38  ;;  %5244 = vmatprep.subr.bf16.mxu1 %v5243_v32  ;;  %v7768_v39 = vld [vmem:[#allocation7 + $0x340] sm:$0xff] }
 0x146   :  { %v7705_v5 = vsub.f32 %v7642_v24, %v9356_v40  ;;  %v7710_v18 = vsub.f32 %v7644_v33, %v9357_v41  ;;  %9358 = vst [vmem:[#allocation69_spill] sm:$0xff] %v7714_v10  ;;  %v7720_v28 = vsub.f32 %v7647_v55, %v9359_v25  ;;  %v7725_v33 = vld [vmem:[#allocation7 + $0x338] sm:$0xff]  ;;  %v9363_v25 = vand.u32 4294901760, %v7658_v42  ;;  %9373 = vst [vmem:[#allocation20_spill] sm:$0xff] %v7768_v39 }
 0x147   :  { %9360 = vst [vmem:[#allocation37_spill] sm:$0xff] %v7725_v33  ;;  %5248 = vmatprep.subr.bf16.mxu0 %v9361_v50  ;;  %v7733_v24 = vsub.f32 %v7656_v38, %v9362_v44  ;;  %v9364_v41 = vand.u32 4294901760, %v7652_v35  ;;  %v9365_v55 = vand.u32 4294901760, %v7664_v16  ;;  %v7750_v44 = vld [vmem:[#allocation7 + $0x3c0] sm:$0xff]  ;;  %v7752_v50 = vld [vmem:[#allocation7 + $0x3c8] sm:$0xff]  ;;  %v9370_v19 = vand.u32 4294901760, %v7677_v7 }
 0x148   :  { %v7738_v40 = vsub.f32 %v7658_v42, %v9363_v25  ;;  %9367 = vst [vmem:[#allocation71_spill] sm:$0xff] %v7750_v44  ;;  %9368 = vst [vmem:[#allocation18_spill] sm:$0xff] %v7752_v50  ;;  %v9369_v25 = vand.u32 4294901760, %v7672_v57  ;;  %v9380_v43 = vand.u32 4294901760, %v7692_v2  ;;  %v9381_v29 = vand.u32 4294901760, %v7697_v4  ;;  %5246 = vmatpush3.bf16.msra.mxu1 %v5245_v27 }
 0x149   :  { %v7745_v26 = vpack.c.bf16 %v9365_v55, %v9364_v41  ;;  %v9372_v55 = vand.u32 4294901760, %v7680_v37  ;;  %v7781_v41 = vld [vmem:[#allocation7 + $0x348] sm:$0xff]  ;;  %v8743_v27 = vand.u32 4294901760, %v7720_v28 }
 0x14a   :  { %v7758_v42 = vpack.c.bf16 %v9370_v19, %v9369_v25  ;;  %v9375_v19 = vld [vmem:[#allocation74_spill] sm:$0xff]  ;;  %v9376_v25 = vld [vmem:[#allocation76_spill] sm:$0xff]  ;;  %9379 = vst [vmem:[#allocation23_spill] sm:$0xff] %v7781_v41  ;;  %v7787_v38 = vpack.c.bf16 %v9381_v29, %v9380_v43 }
 0x14b   :  { %9366 = vst [vmem:[#allocation17_spill] sm:$0xff] %v7745_v26  ;;  %v7763_v32 = vsub.f32 %v7680_v37, %v9372_v55  ;;  %v9374_v26 = vpack.c.bf16 %v9334_v17, %v6948_v59  ;;  %v5255_v54 = vpack.c.bf16 %v9376_v25, %v9375_v19  ;;  %v9378_v55 = vand.u32 4294901760, %v7687_v11  ;;  %v9388_v29 = vld [vmem:[#allocation42_spill] sm:$0xff]  ;;  %2316 = vmatmul.mubr.f32.vlgmr.msra.gmra.mrb[12].mxu1 %v7517_v36 }
 0x14c   :  { %9371 = vst [vmem:[#allocation21_spill] sm:$0xff] %v7758_v42  ;;  %v9377_v42 = vld [vmem:[#allocation34_spill] sm:$0xff]  ;;  %9382 = vst [vmem:[#allocation30_spill] sm:$0xff] %v7787_v38  ;;  %v9383_v59 = vpack.c.bf16 %v9339_v53, %v9338_v23  ;;  %5280 = vmatprep.subr.bf16.mxu1 %v9388_v29  ;;  %v9389_v23 = vand.u32 4294901760, %v7714_v10  ;;  %v9390_v25 = vand.u32 4294901760, %v7725_v33 }
 0x14d   :  { %5250 = vmatpush3.bf16.msra.mxu0 %v9374_v26  ;;  %2451 = vmatprep.mubr.f32.mxu0 %v9377_v42  ;;  %v7779_v37 = vsub.f32 %v7687_v11, %v9378_v55  ;;  %v9384_v26 = vand.u32 4294901760, %v7700_v21  ;;  %v9385_v55 = vand.u32 4294901760, %v7705_v5  ;;  %v9386_v11 = vand.u32 4294901760, %v7710_v18  ;;  %v7822_v38 = vld [vmem:[#allocation7 + $0x3d0] sm:$0xff] }
 0x14e   :  { %5252 = vmatprep.subr.bf16.mxu0 %v9383_v59  ;;  %v7809_v53 = vsub.f32 %v7714_v10, %v9389_v23  ;;  %v7817_v19 = vsub.f32 %v7725_v33, %v9390_v25  ;;  %9391 = vst [vmem:[#allocation32_spill] sm:$0xff] %v7822_v38  ;;  %v5257_v23 = vpack.c.bf16 %v7032_v15, %v7027_v12  ;;  %v7829_v59 = vld [vmem:[#allocation7 + $0x3d8] sm:$0xff]  ;;  %v9393_v25 = vand.u32 4294901760, %v7733_v24  ;;  %v7848_v15 = vld [vmem:[#allocation7 + $0x350] sm:$0xff] }
 0x14f   :  { %v7795_v17 = vsub.f32 %v7700_v21, %v9384_v26  ;;  %v7803_v43 = vpack.c.bf16 %v9386_v11, %v9385_v55  ;;  %v5259_v26 = vpack.c.bf16 %v7043_v9, %v7037_v20  ;;  %9392 = vst [vmem:[#allocation33_spill] sm:$0xff] %v7829_v59  ;;  %v9397_v12 = vand.u32 4294901760, %v7752_v50  ;;  %9399 = vst [vmem:[#allocation39_spill] sm:$0xff] %v7848_v15  ;;  %v7850_v9 = vld [vmem:[#allocation7 + $0x358] sm:$0xff]  ;;  %v7869_v21 = vld [vmem:[#allocation7 + $0x3e0] sm:$0xff] }
 0x150   :  { %v7835_v11 = vpack.c.bf16 %v9393_v25, %v8743_v27  ;;  %9400 = vst [vmem:[#allocation44_spill] sm:$0xff] %v7850_v9  ;;  %v9401_v25 = vand.u32 4294901760, %v7738_v40  ;;  %9407 = vst [vmem:[#allocation51_spill] sm:$0xff] %v7869_v21  ;;  %v5261_v10 = vpack.c.bf16 %v7065_v51, %v7060_v62  ;;  %v7899_v62 = vld [vmem:[#allocation7 + $0x368] sm:$0xff]  ;;  %v7924_v51 = vld [vmem:[#allocation7 + $0x3f0] sm:$0xff] }
 0x151   :  { %9387 = vst [vmem:[#allocation28_spill] sm:$0xff] %v7803_v43  ;;  %5254 = vmatpush3.bf16.msra.mxu0 %v5253_v47  ;;  %v9395_v43 = vld [vmem:[#allocation56_spill] sm:$0xff]  ;;  %v9396_v47 = vand.u32 4294901760, %v7750_v44  ;;  %v7846_v20 = vsub.f32 %v7752_v50, %v9397_v12  ;;  %9414 = vst [vmem:[#allocation75_spill] sm:$0xff] %v7899_v62 }
 0x152   :  { %9394 = vst [vmem:[#allocation35_spill] sm:$0xff] %v7835_v11  ;;  %5256 = vmatprep.subr.bf16.mxu0 %v5255_v54  ;;  %5282 = vmatpush3.bf16.msra.mxu1 %v9395_v43  ;;  %v9402_v54 = vand.u32 4294901760, %v7763_v32  ;;  %v9404_v11 = vld [vmem:[#allocation47_spill] sm:$0xff]  ;;  %v7881_v50 = vld [vmem:[#allocation7 + $0x360] sm:$0xff]  ;;  %9420 = vst [vmem:[#allocation79_spill] sm:$0xff] %v7924_v51 }
 0x153   :  { %v7841_v55 = vsub.f32 %v7750_v44, %v9396_v47  ;;  %9398 = vst [vmem:[#allocation38_spill] sm:$0xff] %v7846_v20  ;;  %5284 = vmatprep.subr.bf16.mxu1 %v9404_v11  ;;  %v9405_v47 = vand.u32 4294901760, %v9377_v42  ;;  %v9406_v44 = vand.u32 4294901760, %v7768_v39  ;;  %9410 = vst [vmem:[#allocation52_spill] sm:$0xff] %v7881_v50  ;;  %v9412_v42 = vand.u32 4294901760, %v7795_v17 }
 0x154   :  { %v7856_v27 = vpack.c.bf16 %v9402_v54, %v9401_v25  ;;  %v9408_v25 = vand.u32 4294901760, %v7781_v41 }
 0x155   :  { %2558 = vmatprep.mubr.f32.mxu1 %v9405_v47  ;;  %v7864_v12 = vsub.f32 %v7768_v39, %v9406_v44  ;;  %v8751_v47 = vand.u32 4294901760, %v7809_v53  ;;  %5258 = vmatpush3.bf16.msra.mxu0 %v5257_v23  ;;  %v5263_v44 = vpack.c.bf16 %v7087_v30, %v7082_v1  ;;  %v5265_v23 = vpack.c.bf16 %v7115_v0, %v7101_v3 }
 0x156   :  { %9403 = vst [vmem:[#allocation45_spill] sm:$0xff] %v7856_v27  ;;  %v7874_v54 = vsub.f32 %v7781_v41, %v9408_v25  ;;  %v7879_v27 = vld [vmem:[#allocation7 + $0x3e8] sm:$0xff]  ;;  %v9411_v25 = vand.u32 4294901760, %v7779_v37  ;;  %5260 = vmatprep.subr.bf16.mxu0 %v5259_v26  ;;  %5286 = vmatpush3.bf16.msra.mxu1 %v7453_v13  ;;  %v9415_v39 = vand.u32 4294901760, %v7817_v19  ;;  %v9417_v1 = vand.u32 4294901760, %v7822_v38 }
 0x157   :  { %9409 = vst [vmem:[#allocation31_spill] sm:$0xff] %v7879_v27  ;;  %5288 = vmatprep.subr.bf16.mxu1 %v7471_v52  ;;  %v9421_v30 = vand.u32 4294901760, %v7848_v15  ;;  %v9427_v26 = vand.u32 4294901760, %v7841_v55 }
 0x158   :  { %v7891_v41 = vpack.c.bf16 %v9412_v42, %v9411_v25  ;;  %v7905_v33 = vpack.c.bf16 %v9415_v39, %v8751_v47  ;;  %v7915_v0 = vsub.f32 %v7822_v38, %v9417_v1  ;;  %v9418_v25 = vand.u32 4294901760, %v7829_v59  ;;  %v7939_v47 = vld [vmem:[#allocation7 + $0x370] sm:$0xff] }
 0x159   :  { %5262 = vmatpush3.bf16.msra.mxu0 %v5261_v10  ;;  %v7929_v3 = vsub.f32 %v7848_v15, %v9421_v30  ;;  %v9423_v1 = vand.u32 4294901760, %v7850_v9  ;;  %9426 = vst [vmem:[#allocation46_spill] sm:$0xff] %v7939_v47  ;;  %v9428_v10 = vand.u32 4294901760, %v7846_v20  ;;  %v9430_v30 = vld [vmem:[#allocation16_spill] sm:$0xff]  ;;  %v9435_v20 = vld [vmem:[#allocation57_spill] sm:$0xff] }
 0x15a   :  { %9413 = vst [vmem:[#allocation72_spill] sm:$0xff] %v7891_v41  ;;  %9416 = vst [vmem:[#allocation77_spill] sm:$0xff] %v7905_v33  ;;  %v7920_v39 = vsub.f32 %v7829_v59, %v9418_v25  ;;  %v7937_v33 = vld [vmem:[#allocation7 + $0x3f8] sm:$0xff]  ;;  %5264 = vmatprep.subr.bf16.mxu0 %v5263_v44  ;;  %5290 = vmatpush3.bf16.msra.mxu1 %v7480_v61  ;;  %v5267_v15 = vpack.c.bf16 %v7144_v48, %v9430_v30  ;;  %v9433_v59 = vand.u32 4294901760, %v7874_v54 }
 0x15b   :  { %9422 = vst [vmem:[#allocation80_spill] sm:$0xff] %v7929_v3  ;;  %v7934_v42 = vsub.f32 %v7850_v9, %v9423_v1  ;;  %9425 = vst [vmem:[#allocation82_spill] sm:$0xff] %v7937_v33  ;;  %v7945_v41 = vpack.c.bf16 %v9428_v10, %v9427_v26  ;;  %v5269_v1 = vpack.c.bf16 %v7156_v34, %v7151_v58  ;;  %v7952_v25 = vld [vmem:[#allocation7 + $0x378] sm:$0xff]  ;;  %v9432_v9 = vand.u32 4294901760, %v7864_v12 }
 0x15c   :  { %9419 = vst [vmem:[#allocation78_spill] sm:$0xff] %v7920_v39  ;;  %9431 = vst [vmem:[#allocation50_spill] sm:$0xff] %v7952_v25  ;;  %5292 = vmatprep.subr.bf16.mxu1 %v9435_v20  ;;  %v9436_v44 = vand.u32 4294901760, %v7869_v21  ;;  %v9437_v48 = vand.u32 4294901760, %v7879_v27  ;;  %v9439_v34 = vand.u32 4294901760, %v7881_v50  ;;  %v8760_v30 = vand.u32 4294901760, %v7915_v0 }
 0x15d   :  { %9424 = vst [vmem:[#allocation81_spill] sm:$0xff] %v7934_v42  ;;  %9429 = vst [vmem:[#allocation49_spill] sm:$0xff] %v7945_v41  ;;  %v7958_v38 = vpack.c.bf16 %v9433_v59, %v9432_v9  ;;  %5266 = vmatpush3.bf16.msra.mxu0 %v5265_v23  ;;  %v9441_v41 = vand.u32 4294901760, %v7899_v62  ;;  %v8761_v59 = vand.u32 4294901760, %v7934_v42  ;;  %v5271_v9 = vpack.c.bf16 %v7170_v63, %v7162_v46 }
 0x15e   :  { %v7964_v26 = vsub.f32 %v7869_v21, %v9436_v44  ;;  %v7969_v10 = vsub.f32 %v7879_v27, %v9437_v48  ;;  %v7974_v58 = vsub.f32 %v7881_v50, %v9439_v34  ;;  %v8762_v34 = vand.u32 4294901760, %v7929_v3  ;;  %5268 = vmatprep.subr.bf16.mxu0 %v5267_v15  ;;  %5294 = vmatpush3.bf16.msra.mxu1 %v7514_v22  ;;  %v9458_v21 = vld [vmem:[#allocation84_spill] sm:$0xff] }
 0x15f   :  { %9434 = vst [vmem:[#allocation48_spill] sm:$0xff] %v7958_v38  ;;  %v8759_v38 = vand.u32 4294901760, %v7920_v39  ;;  %v7984_v48 = vsub.f32 %v7899_v62, %v9441_v41  ;;  %5296 = vmatprep.subr.bf16.mxu1 %v7524_v14  ;;  %v3991_v41 = vpop.f32.mrb[0].mxu0  ;;  %v5273_v27 = vpack.c.bf16 %v7180_v8, %v7175_v60  ;;  %v9444_v44 = vand.u32 4294901760, %v7924_v51  ;;  %v9451_v60 = vld [vmem:[#allocation29_spill] sm:$0xff] }
 0x160   :  { %9438 = vst [vmem:[#allocation73_spill] sm:$0xff] %v7969_v10  ;;  %9440 = vst [vmem:[#allocation74_spill] sm:$0xff] %v7974_v58  ;;  %v8010_v46 = vpack.c.bf16 %v8761_v59, %v8762_v34  ;;  %v3992_v63 = vpop.f32.mrb[1].mxu0  ;;  %v3958_v59 = vld [vmem:[%s8528_s4] ss:$0 sm:$0xff]  ;;  %v9454_v62 = vand.u32 4294901760, %v7969_v10 }
 0x161   :  { %9442 = vst [vmem:[#allocation76_spill] sm:$0xff] %v7984_v48  ;;  %v7996_v23 = vpack.c.bf16 %v8759_v38, %v8760_v30  ;;  %v8004_v15 = vsub.f32 %v7924_v51, %v9444_v44  ;;  %v9447_v38 = vand.u32 4294901760, %v7937_v33  ;;  %5270 = vmatpush3.bf16.msra.mxu0 %v5269_v1  ;;  %v3993_v34 = vadd.f32 %v3992_v63, %v3991_v41  ;;  %v9452_v44 = vld [vmem:[#allocation83_spill] sm:$0xff]  ;;  %v9459_v10 = vld [vmem:[#allocation85_spill] sm:$0xff] }
 0x162   :  { %9446 = vst [vmem:[#allocation56_spill] sm:$0xff] %v8010_v46  ;;  %v9449_v46 = vand.u32 4294901760, %v7952_v25  ;;  %5272 = vmatprep.subr.bf16.mxu0 %v5271_v9  ;;  %v5275_v1 = vpack.c.bf16 %v9452_v44, %v9451_v60  ;;  %v9453_v51 = vand.u32 4294901760, %v7964_v26  ;;  %v9456_v63 = vld [vmem:[#allocation19_spill] sm:$0xff] }
 0x163   :  { %9443 = vst [vmem:[#allocation34_spill] sm:$0xff] %v7996_v23  ;;  %9445 = vst [vmem:[#allocation42_spill] sm:$0xff] %v8004_v15  ;;  %v8015_v30 = vsub.f32 %v7937_v33, %v9447_v38  ;;  %v9448_v23 = vand.u32 4294901760, %v7939_v47  ;;  %v8782_v33 = vand.u32 4294901760, %v7974_v58  ;;  %v362_v9 = vadd.f32 %v3993_v34, %v3958_v59  ;;  %v9465_v34 = vld [vmem:[#allocation87_spill] sm:$0xff] }
 0x164   :  { %v8030_v38 = vsub.f32 %v7952_v25, %v9449_v46  ;;  %v8041_v41 = vpack.c.bf16 %v9454_v62, %v9453_v51  ;;  %v4026_v25 = vpop.f32.mrb[0].mxu1  ;;  %v8777_v50 = vand.u32 4294901760, %v8004_v15  ;;  %v5277_v51 = vpack.c.bf16 %v9459_v10, %v9458_v21  ;;  %v9464_v10 = vld [vmem:[#allocation58_spill] sm:$0xff] }
 0x165   :  { %v8020_v8 = vsub.f32 %v7939_v47, %v9448_v23  ;;  %v8781_v23 = vand.u32 4294901760, %v7984_v48  ;;  %v9450_v47 = vld [vmem:[#allocation36_spill] sm:$0xff]  ;;  %v8776_v60 = vand.u32 4294901760, %v8015_v30  ;;  %5274 = vmatpush3.bf16.msra.mxu0 %v5273_v27  ;;  %v4027_v44 = vpop.f32.mrb[1].mxu1  ;;  %v9460_v48 = vld [vmem:[#allocation59_spill] sm:$0xff] }
 0x166   :  { %5298 = vmatpush3.bf16.msra.mxu1 %v9450_v47  ;;  %9455 = vst [vmem:[#allocation47_spill] sm:$0xff] %v8041_v41  ;;  %v8779_v41 = vand.u32 4294901760, %v8030_v38  ;;  %v4028_v58 = vadd.f32 %v4027_v44, %v4026_v25  ;;  %5276 = vmatprep.subr.bf16.mxu0 %v5275_v1  ;;  %v9463_v25 = vld [vmem:[#allocation86_spill] sm:$0xff]  ;;  %v9466_v1 = vld [vmem:[#allocation43_spill] sm:$0xff] }
 0x167   :  { %5300 = vmatprep.subr.bf16.mxu1 %v9456_v63  ;;  %v8048_v46 = vpack.c.bf16 %v8781_v23, %v8782_v33  ;;  %v8780_v62 = vand.u32 4294901760, %v8020_v8  ;;  %v8061_v59 = vpack.c.bf16 %v8776_v60, %v8777_v50  ;;  %v9467_v44 = vld [vmem:[#allocation54_spill] sm:$0xff]  ;;  %v9468_v50 = vld [vmem:[#allocation88_spill] sm:$0xff] }
 0x168   :  { %v594_v27 = vadd.f32 %v4028_v58, %v362_v9  ;;  %v228_v60 = vcombine.high %v9467_v44, %v9467_v44  ;;  %v9469_v58 = vld [vmem:[#allocation89_spill] sm:$0xff]  ;;  %v9470_v9 = vand.u32 4294901760, %v9464_v10  ;;  %v9476_v44 = vld [vmem:[#allocation92_spill] sm:$0xff] }
 0x169   :  { %9457 = vst [vmem:[#allocation16_spill] sm:$0xff] %v8048_v46  ;;  %9461 = vst [vmem:[#allocation57_spill] sm:$0xff] %v8061_v59  ;;  %v8068_v21 = vpack.c.bf16 %v8779_v41, %v8780_v62  ;;  %5278 = vmatpush3.bf16.msra.mxu0 %v5277_v51  ;;  %v9471_v51 = vld [vmem:[#allocation15_spill] sm:$0xff]  ;;  %v9498_v41 = vld [vmem:[#allocation61_spill] sm:$0xff] }
 0x16a   :  { %5302 = vmatpush3.bf16.msra.mxu1 %v9460_v48  ;;  %5312 = vmatprep.subr.bf16.mxu0 %v9463_v25  ;;  %v8085_v25 = vrot.slane %v228_v60, %v9471_v51  ;;  %v9477_v60 = vld [vmem:[#allocation93_spill] sm:$0xff]  ;;  %v9499_v62 = vand.u32 4294901760, %v9498_v41  ;;  %v9512_v51 = vand.u32 4294901760, %v7738_v40 }
 0x16b   :  { %5304 = vmatprep.subr.bf16.mxu1 %v7570_v6  ;;  %9462 = vst [vmem:[#allocation36_spill] sm:$0xff] %v8068_v21 }
 0x16c   :  { %2454 = vmatmul.mubr.f32.vlgmr.msra.gmra.mrb[14].mxu0 %v9464_v10  ;;  %9472 = vst [vmem:[#allocation29_spill] sm:$0xff] %v8085_v25  ;;  %v9480_v10 = vld [vmem:[#allocation95_spill] sm:$0xff] }
 0x16d   :  { %5314 = vmatpush3.bf16.msra.mxu0 %v9465_v34  ;;  %2728 = vmatprep.mubr.f32.mxu0 %v9466_v1  ;;  %v9473_v34 = vld [vmem:[#allocation90_spill] sm:$0xff] }
 0x16e   :  { %5306 = vmatpush3.bf16.msra.mxu1 %v7579_v45  ;;  %5316 = vmatprep.subr.bf16.mxu0 %v9468_v50  ;;  %v9474_v50 = vld [vmem:[#allocation91_spill] sm:$0xff] }
 0x16f   :  { %5308 = vmatprep.subr.bf16.mxu1 %v7585_v56 }
 0x171   :  { %5318 = vmatpush3.bf16.msra.mxu0 %v9469_v58 }
 0x172   :  { %5310 = vmatpush3.bf16.msra.mxu1 %v7598_v31  ;;  %5320 = vmatprep.subr.bf16.mxu0 %v9473_v34  ;;  %v9482_v34 = vld [vmem:[#allocation97_spill] sm:$0xff] }
 0x173   :  { %5344 = vmatprep.subr.bf16.mxu1 %v9388_v29  ;;  %v8094_v29 = vcombine.high %v8085_v25, %v8085_v25 }
 0x175   :  { %2562 = vmatmul.mubr.f32.vlgmr.msra.gmra.mrb[14].mxu1 %v9470_v9  ;;  %5322 = vmatpush3.bf16.msra.mxu0 %v9474_v50  ;;  %9475 = vst [vmem:[#allocation83_spill] sm:$0xff] %v8094_v29 }
 0x176   :  { %5346 = vmatpush3.bf16.msra.mxu1 %v9395_v43  ;;  %2832 = vmatprep.mubr.f32.mxu1 %v9466_v1  ;;  %v8101_v43 = vand.u32 4294901760, %v8094_v29 }
 0x177   :  { %5348 = vmatprep.subr.bf16.mxu1 %v9404_v11  ;;  %5324 = vmatprep.subr.bf16.mxu0 %v9476_v44  ;;  %v9479_v11 = vld [vmem:[#allocation94_spill] sm:$0xff]  ;;  %v9484_v44 = vand.u32 4294901760, %v7652_v35 }
 0x178   :  { %9478 = vst [vmem:[#allocation19_spill] sm:$0xff] %v8101_v43  ;;  %v8109_v1 = vsub.f32 %v8094_v29, %v8101_v43 }
 0x179   :  { %5326 = vmatpush3.bf16.msra.mxu0 %v9477_v60  ;;  %v9485_v60 = vand.u32 4294901760, %v7664_v16 }
 0x17a   :  { %5350 = vmatpush3.bf16.msra.mxu1 %v7453_v13  ;;  %5328 = vmatprep.subr.bf16.mxu0 %v9479_v11  ;;  %v9481_v13 = vld [vmem:[#allocation96_spill] sm:$0xff]  ;;  %v4096_v11 = vpop.f32.mrb[2].mxu1 }
 0x17b   :  { %5352 = vmatprep.subr.bf16.mxu1 %v7471_v52  ;;  %v4061_v52 = vpop.f32.mrb[2].mxu0 }
 0x17c   :  { %v4062_v58 = vpop.f32.mrb[3].mxu0 }
 0x17d   :  { %5330 = vmatpush3.bf16.msra.mxu0 %v9480_v10  ;;  %v4063_v9 = vadd.f32 %v4062_v58, %v4061_v52  ;;  %v9486_v10 = vld [vmem:[#allocation99_spill] sm:$0xff] }
 0x17e   :  { %5354 = vmatpush3.bf16.msra.mxu1 %v7480_v61  ;;  %5332 = vmatprep.subr.bf16.mxu0 %v9481_v13  ;;  %v8778_v61 = vand.u32 4294901760, %v8109_v1  ;;  %v4097_v13 = vpop.f32.mrb[3].mxu1  ;;  %v9487_v52 = vld [vmem:[#allocation27_spill] sm:$0xff] }
 0x17f   :  { %5356 = vmatprep.subr.bf16.mxu1 %v9435_v20  ;;  %v9483_v20 = vld [vmem:[#allocation98_spill] sm:$0xff]  ;;  %v732_v50 = vadd.f32 %v4063_v9, %v594_v27  ;;  %v9488_v58 = vand.u32 4294901760, %v9487_v52  ;;  %v4098_v27 = vadd.f32 %v4097_v13, %v4096_v11  ;;  %v9491_v9 = vld [vmem:[#allocation100_spill] sm:$0xff]  ;;  %v9495_v13 = vand.u32 4294901760, %v7697_v4 }
 0x181   :  { %5334 = vmatpush3.bf16.msra.mxu0 %v9482_v34  ;;  %v9489_v34 = vld [vmem:[#allocation26_spill] sm:$0xff] }
 0x182   :  { %5358 = vmatpush3.bf16.msra.mxu1 %v7514_v22  ;;  %5336 = vmatprep.subr.bf16.mxu0 %v9483_v20  ;;  %v3067_v22 = vsub.f32 %v7652_v35, %v9484_v44  ;;  %v9490_v20 = vand.u32 4294901760, %v9489_v34  ;;  %v9492_v44 = vand.u32 4294901760, %v7672_v57 }
 0x183   :  { %5360 = vmatprep.subr.bf16.mxu1 %v7524_v14  ;;  %v3074_v14 = vsub.f32 %v7664_v16, %v9485_v60 }
 0x184   :  { %v2955_v60 = vsub.f32 %v7672_v57, %v9492_v44 }
 0x185   :  { %5338 = vmatpush3.bf16.msra.mxu0 %v9486_v10  ;;  %v9493_v10 = vand.u32 4294901760, %v7677_v7  ;;  %v3075_v34 = vand.u32 4294901760, %v3074_v14 }
 0x186   :  { %5362 = vmatpush3.bf16.msra.mxu1 %v9450_v47  ;;  %v8130_v47 = vpack.c.bf16 %v9490_v20, %v9488_v58  ;;  %5340 = vmatprep.subr.bf16.mxu0 %v9491_v9  ;;  %v3068_v58 = vand.u32 4294901760, %v3067_v22  ;;  %v9494_v20 = vand.u32 4294901760, %v7692_v2  ;;  %v8150_v9 = vadd.f32 %v4098_v27, %v732_v50  ;;  %v9502_v22 = vld [vmem:[#allocation70_spill] sm:$0xff] }
 0x187   :  { %5364 = vmatprep.subr.bf16.mxu1 %v9456_v63  ;;  %v2938_v63 = vsub.f32 %v8109_v1, %v8778_v61  ;;  %v2962_v52 = vsub.f32 %v7677_v7, %v9493_v10  ;;  %v9496_v61 = vld [vmem:[#allocation60_spill] sm:$0xff]  ;;  %v9500_v10 = vld [vmem:[#allocation101_spill] sm:$0xff]  ;;  %v9503_v14 = vand.u32 4294901760, %v9502_v22  ;;  %v9505_v50 = vand.u32 4294901760, %v7710_v18 }
 0x188   :  { %v3081_v11 = vsub.f32 %v7692_v2, %v9494_v20  ;;  %v9497_v44 = vand.u32 4294901760, %v9496_v61  ;;  %v9504_v20 = vand.u32 4294901760, %v7705_v5  ;;  %v2956_v41 = vand.u32 4294901760, %v2955_v60 }
 0x189   :  { %5342 = vmatpush3.bf16.msra.mxu0 %v9500_v10  ;;  %v2976_v61 = vsub.f32 %v7710_v18, %v9505_v50  ;;  %v2939_v27 = vand.u32 4294901760, %v2938_v63  ;;  %v9507_v10 = vand.u32 4294901760, %v7733_v24  ;;  %v5407_v22 = vpack.c.bf16 %v3075_v34, %v3068_v58  ;;  %v9508_v63 = vld [vmem:[#allocation22_spill] sm:$0xff]  ;;  %v9514_v34 = vld [vmem:[#allocation63_spill] sm:$0xff] }
 0x18a   :  { %5366 = vmatpush3.bf16.msra.mxu1 %v9460_v48  ;;  %v3088_v48 = vsub.f32 %v7697_v4, %v9495_v13  ;;  %v8156_v23 = vpack.c.bf16 %v9499_v62, %v9497_v44  ;;  %v2969_v13 = vsub.f32 %v7705_v5, %v9504_v20  ;;  %5376 = vmatprep.subr.bf16.mxu0 %v8130_v47  ;;  %v2963_v62 = vand.u32 4294901760, %v2962_v52 }
 0x18b   :  { %5368 = vmatprep.subr.bf16.mxu1 %v7570_v6  ;;  %v9501_v6 = vand.u32 4294901760, %v7633_v49  ;;  %v9506_v49 = vand.u32 4294901760, %v7720_v28  ;;  %v9509_v50 = vand.u32 4294901760, %v9508_v63  ;;  %v2977_v29 = vand.u32 4294901760, %v2976_v61 }
 0x18c   :  { %v3089_v20 = vand.u32 4294901760, %v3088_v48  ;;  %2730 = vmatmul.mubr.f32.vlgmr.msra.gmra.mrb[16].mxu0 %v7517_v36  ;;  %v9516_v48 = vld [vmem:[#allocation64_spill] sm:$0xff] }
 0x18d   :  { %v8163_v33 = vpack.c.bf16 %v9503_v14, %v9501_v6  ;;  %v3095_v44 = vsub.f32 %v7720_v28, %v9506_v49  ;;  %v3102_v6 = vsub.f32 %v7733_v24, %v9507_v10  ;;  %v3082_v14 = vand.u32 4294901760, %v3081_v11  ;;  %5378 = vmatpush3.bf16.msra.mxu0 %v8156_v23  ;;  %2940 = vmatprep.mubr.f32.mxu0 %v2939_v27 }
 0x18e   :  { %5370 = vmatpush3.bf16.msra.mxu1 %v7579_v45  ;;  %v9510_v45 = vld [vmem:[#allocation62_spill] sm:$0xff]  ;;  %v2970_v49 = vand.u32 4294901760, %v2969_v13  ;;  %v2983_v10 = vsub.f32 %v7738_v40, %v9512_v51  ;;  %v9515_v11 = vand.u32 4294901760, %v9514_v34  ;;  %v9517_v63 = vand.u32 4294901760, %v9516_v48 }
 0x18f   :  { %5372 = vmatprep.subr.bf16.mxu1 %v7585_v56  ;;  %v9511_v60 = vand.u32 4294901760, %v9510_v45  ;;  %v9513_v56 = vand.u32 4294901760, %v7763_v32  ;;  %5380 = vmatprep.subr.bf16.mxu0 %v8163_v33  ;;  %v5409_v13 = vpack.c.bf16 %v2963_v62, %v2956_v41  ;;  %v3096_v61 = vand.u32 4294901760, %v3095_v44  ;;  %v9522_v34 = vld [vmem:[#allocation66_spill] sm:$0xff]  ;;  %v9525_v41 = vld [vmem:[#allocation67_spill] sm:$0xff]  ;;  %v9527_v44 = vld [vmem:[#allocation68_spill] sm:$0xff] }
 0x190   :  { %v3103_v45 = vand.u32 4294901760, %v3102_v6  ;;  %v5411_v51 = vpack.c.bf16 %v3089_v20, %v3082_v14  ;;  %v9519_v27 = vand.u32 4294901760, %v7795_v17  ;;  %v9523_v46 = vand.u32 4294901760, %v9522_v34 }
 0x191   :  { %v8185_v52 = vpack.c.bf16 %v9511_v60, %v9509_v50  ;;  %v2990_v58 = vsub.f32 %v7763_v32, %v9513_v56  ;;  %v8200_v50 = vpack.c.bf16 %v9517_v63, %v9515_v11  ;;  %v9518_v60 = vand.u32 4294901760, %v7779_v37 }
 0x192   :  { %5374 = vmatpush3.bf16.msra.mxu1 %v7598_v31  ;;  %v3116_v21 = vsub.f32 %v7795_v17, %v9519_v27  ;;  %v9520_v31 = vld [vmem:[#allocation65_spill] sm:$0xff]  ;;  %v9526_v62 = vand.u32 4294901760, %v9525_v41  ;;  %v9528_v6 = vand.u32 4294901760, %v9527_v44  ;;  %v5413_v14 = vpack.c.bf16 %v2977_v29, %v2970_v49  ;;  %v9533_v49 = vld [vmem:[#allocation38_spill] sm:$0xff] }
 0x193   :  { %5408 = vmatprep.subr.bf16.mxu1 %v5407_v22  ;;  %v3109_v56 = vsub.f32 %v7779_v37, %v9518_v60  ;;  %v9521_v59 = vand.u32 4294901760, %v9520_v31  ;;  %5382 = vmatpush3.bf16.msra.mxu0 %v8185_v52  ;;  %v2984_v20 = vand.u32 4294901760, %v2983_v10  ;;  %v2991_v11 = vand.u32 4294901760, %v2990_v58 }
 0x194   :  { %v8220_v22 = vpack.c.bf16 %v9528_v6, %v9526_v62  ;;  %5384 = vmatprep.subr.bf16.mxu0 %v8200_v50  ;;  %v5415_v63 = vpack.c.bf16 %v3103_v45, %v3096_v61  ;;  %v9531_v60 = vand.u32 4294901760, %v7817_v19  ;;  %v3117_v31 = vand.u32 4294901760, %v3116_v21  ;;  %v9537_v45 = vld [vmem:[#allocation37_spill] sm:$0xff] }
 0x195   :  { %v8212_v48 = vpack.c.bf16 %v9523_v46, %v9521_v59  ;;  %2834 = vmatmul.mubr.f32.vlgmr.msra.gmra.mrb[16].mxu1 %v7517_v36  ;;  %v9530_v46 = vand.u32 4294901760, %v7809_v53  ;;  %v3110_v27 = vand.u32 4294901760, %v3109_v56  ;;  %v9532_v34 = vand.u32 4294901760, %v7841_v55  ;;  %v9542_v56 = vld [vmem:[#allocation18_spill] sm:$0xff] }
 0x196   :  { %9529 = vst [vmem:[#allocation85_spill] sm:$0xff] %v8220_v22  ;;  %5410 = vmatpush3.bf16.msra.mxu1 %v5409_v13  ;;  %v3004_v36 = vsub.f32 %v7817_v19, %v9531_v60  ;;  %v9534_v10 = vand.u32 4294901760, %v9533_v49  ;;  %3176 = vmatprep.mubr.f32.mxu1 %v8101_v43  ;;  %v9535_v13 = vld [vmem:[#allocation69_spill] sm:$0xff]  ;;  %v9538_v41 = vand.u32 4294901760, %v9537_v45  ;;  %v9543_v44 = vand.u32 4294901760, %v9542_v56 }
 0x197   :  { %9524 = vst [vmem:[#allocation84_spill] sm:$0xff] %v8212_v48  ;;  %v2997_v59 = vsub.f32 %v7809_v53, %v9530_v46  ;;  %5412 = vmatprep.subr.bf16.mxu1 %v5411_v51  ;;  %v3123_v29 = vsub.f32 %v7841_v55, %v9532_v34  ;;  %v9536_v61 = vand.u32 4294901760, %v9535_v13  ;;  %5386 = vmatpush3.bf16.msra.mxu0 %v8212_v48  ;;  %v9540_v51 = vld [vmem:[#allocation71_spill] sm:$0xff]  ;;  %v9545_v60 = vand.u32 4294901760, %v7864_v12 }
 0x198   :  { %v3130_v58 = vsub.f32 %v9533_v49, %v9534_v10  ;;  %v9541_v21 = vand.u32 4294901760, %v9540_v51  ;;  %v5417_v46 = vpack.c.bf16 %v2991_v11, %v2984_v20  ;;  %v9546_v10 = vand.u32 4294901760, %v7874_v54  ;;  %5388 = vmatprep.subr.bf16.mxu0 %v8220_v22 }
 0x199   :  { %v8240_v62 = vpack.c.bf16 %v9538_v41, %v9536_v61  ;;  %v3011_v34 = vsub.f32 %v7864_v12, %v9545_v60  ;;  %v2998_v61 = vand.u32 4294901760, %v2997_v59  ;;  %v3005_v45 = vand.u32 4294901760, %v3004_v36  ;;  %v9549_v60 = vld [vmem:[#allocation20_spill] sm:$0xff] }
 0x19a   :  { %v8247_v6 = vpack.c.bf16 %v9543_v44, %v9541_v21  ;;  %v3018_v13 = vsub.f32 %v7874_v54, %v9546_v10  ;;  %5414 = vmatpush3.bf16.msra.mxu1 %v5413_v14  ;;  %v9547_v41 = vand.u32 4294901760, %v7915_v0  ;;  %v9548_v21 = vand.u32 4294901760, %v7920_v39  ;;  %v9551_v10 = vld [vmem:[#allocation23_spill] sm:$0xff] }
 0x19b   :  { %9539 = vst [vmem:[#allocation59_spill] sm:$0xff] %v8240_v62  ;;  %5416 = vmatprep.subr.bf16.mxu1 %v5415_v63  ;;  %v5419_v11 = vpack.c.bf16 %v3117_v31, %v3110_v27  ;;  %v3124_v56 = vand.u32 4294901760, %v3123_v29  ;;  %v3131_v44 = vand.u32 4294901760, %v3130_v58  ;;  %v9550_v43 = vand.u32 4294901760, %v9549_v60  ;;  %5390 = vmatpush3.bf16.msra.mxu0 %v8240_v62  ;;  %v9558_v29 = vld [vmem:[#allocation33_spill] sm:$0xff] }
 0x19c   :  { %9544 = vst [vmem:[#allocation86_spill] sm:$0xff] %v8247_v6  ;;  %v3137_v51 = vsub.f32 %v7915_v0, %v9547_v41  ;;  %v3144_v20 = vsub.f32 %v7920_v39, %v9548_v21  ;;  %v9552_v48 = vand.u32 4294901760, %v9551_v10  ;;  %v8269_v14 = vand.u32 4294901760, %v8085_v25  ;;  %5392 = vmatprep.subr.bf16.mxu0 %v8247_v6 }
 0x19d   :  { %v3012_v59 = vand.u32 4294901760, %v3011_v34  ;;  %v3019_v36 = vand.u32 4294901760, %v3018_v13  ;;  %v9554_v41 = vand.u32 4294901760, %v7929_v3  ;;  %v9555_v27 = vand.u32 4294901760, %v7934_v42 }
 0x19e   :  { %v8266_v22 = vpack.c.bf16 %v9552_v48, %v9550_v43  ;;  %5418 = vmatpush3.bf16.msra.mxu1 %v5417_v46  ;;  %v9556_v43 = vld [vmem:[#allocation32_spill] sm:$0xff]  ;;  %v9559_v58 = vand.u32 4294901760, %v9558_v29  ;;  %v5421_v60 = vpack.c.bf16 %v3005_v45, %v2998_v61  ;;  %v3138_v34 = vand.u32 4294901760, %v3137_v51  ;;  %v9564_v46 = vld [vmem:[#allocation39_spill] sm:$0xff] }
 0x19f   :  { %v3025_v63 = vsub.f32 %v7929_v3, %v9554_v41  ;;  %v3032_v31 = vsub.f32 %v7934_v42, %v9555_v27  ;;  %v9557_v48 = vand.u32 4294901760, %v9556_v43  ;;  %v3145_v13 = vand.u32 4294901760, %v3144_v20  ;;  %5420 = vmatprep.subr.bf16.mxu1 %v5419_v11  ;;  %v9562_v3 = vld [vmem:[#allocation73_spill] sm:$0xff]  ;;  %v9566_v43 = vld [vmem:[#allocation44_spill] sm:$0xff]  ;;  %v9568_v45 = vld [vmem:[#allocation51_spill] sm:$0xff] }
 0x1a0   :  { %9553 = vst [vmem:[#allocation58_spill] sm:$0xff] %v8266_v22  ;;  %v5423_v10 = vpack.c.bf16 %v3131_v44, %v3124_v56  ;;  %v9561_v41 = vand.u32 4294901760, %v7964_v26  ;;  %v9563_v27 = vand.u32 4294901760, %v9562_v3  ;;  %v9565_v42 = vand.u32 4294901760, %v9564_v46  ;;  %5394 = vmatpush3.bf16.msra.mxu0 %v8266_v22  ;;  %v9570_v20 = vld [vmem:[#allocation31_spill] sm:$0xff]  ;;  %v9575_v46 = vld [vmem:[#allocation76_spill] sm:$0xff] }
 0x1a1   :  { %v8283_v21 = vpack.c.bf16 %v9559_v58, %v9557_v48  ;;  %v9567_v39 = vand.u32 4294901760, %v9566_v43  ;;  %v8299_v61 = vsub.f32 %v8085_v25, %v8269_v14  ;;  %v9569_v51 = vand.u32 4294901760, %v9568_v45  ;;  %v4131_v45 = vpop.f32.mrb[4].mxu0  ;;  %v9585_v22 = vld [vmem:[#allocation82_spill] sm:$0xff] }
 0x1a2   :  { %v3151_v62 = vsub.f32 %v7964_v26, %v9561_v41  ;;  %v3158_v6 = vsub.f32 %v9562_v3, %v9563_v27  ;;  %v9571_v11 = vand.u32 4294901760, %v9570_v20  ;;  %v5425_v44 = vpack.c.bf16 %v3019_v36, %v3012_v59  ;;  %5422 = vmatpush3.bf16.msra.mxu1 %v5421_v60  ;;  %v4132_v60 = vpop.f32.mrb[5].mxu0 }
 0x1a3   :  { %9560 = vst [vmem:[#allocation87_spill] sm:$0xff] %v8283_v21  ;;  %v8295_v29 = vpack.c.bf16 %v9567_v39, %v9565_v42  ;;  %v3026_v48 = vand.u32 4294901760, %v3025_v63  ;;  %v3033_v58 = vand.u32 4294901760, %v3032_v31  ;;  %5396 = vmatprep.subr.bf16.mxu0 %v8283_v21  ;;  %v5427_v42 = vpack.c.bf16 %v3145_v13, %v3138_v34  ;;  %v9573_v39 = vld [vmem:[#allocation74_spill] sm:$0xff]  ;;  %5424 = vmatprep.subr.bf16.mxu1 %v5423_v10 }
 0x1a4   :  { %v8306_v56 = vpack.c.bf16 %v9571_v11, %v9569_v51  ;;  %v9574_v41 = vand.u32 4294901760, %v9573_v39  ;;  %v9576_v43 = vand.u32 4294901760, %v9575_v46  ;;  %v3152_v20 = vand.u32 4294901760, %v3151_v62  ;;  %v9579_v11 = vld [vmem:[#allocation52_spill] sm:$0xff] }
 0x1a5   :  { %v3159_v51 = vand.u32 4294901760, %v3158_v6  ;;  %v9577_v59 = vand.u32 4294901760, %v8004_v15  ;;  %v9578_v63 = vand.u32 4294901760, %v8015_v30  ;;  %v2943_v34 = vand.u32 4294901760, %v8299_v61  ;;  %5398 = vmatpush3.bf16.msra.mxu0 %v8295_v29  ;;  %v9583_v6 = vld [vmem:[#allocation79_spill] sm:$0xff] }
 0x1a6   :  { %9572 = vst [vmem:[#allocation43_spill] sm:$0xff] %v8306_v56  ;;  %v3039_v27 = vsub.f32 %v9573_v39, %v9574_v41  ;;  %v3046_v25 = vsub.f32 %v9575_v46, %v9576_v43  ;;  %v4133_v13 = vadd.f32 %v4132_v60, %v4131_v45  ;;  %v9580_v41 = vand.u32 4294901760, %v9579_v11  ;;  %v9581_v43 = vld [vmem:[#allocation75_spill] sm:$0xff]  ;;  %5400 = vmatprep.subr.bf16.mxu0 %v8306_v56 }
 0x1a7   :  { %v3165_v36 = vsub.f32 %v8004_v15, %v9577_v59  ;;  %v3172_v31 = vsub.f32 %v8015_v30, %v9578_v63  ;;  %v9582_v10 = vand.u32 4294901760, %v9581_v43  ;;  %v9584_v21 = vand.u32 4294901760, %v9583_v6  ;;  %5426 = vmatpush3.bf16.msra.mxu1 %v5425_v44 }
 0x1a8   :  { %v9586_v59 = vand.u32 4294901760, %v9585_v22  ;;  %v5429_v46 = vpack.c.bf16 %v3033_v58, %v3026_v48  ;;  %v3040_v63 = vand.u32 4294901760, %v3039_v27  ;;  %v3047_v45 = vand.u32 4294901760, %v3046_v25  ;;  %5428 = vmatprep.subr.bf16.mxu1 %v5427_v42  ;;  %v4166_v48 = vpop.f32.mrb[4].mxu1  ;;  %v9589_v58 = vld [vmem:[#allocation46_spill] sm:$0xff] }
 0x1a9   :  { %v8327_v62 = vpack.c.bf16 %v9582_v10, %v9580_v41  ;;  %v9587_v60 = vand.u32 4294901760, %v8020_v8  ;;  %v9588_v43 = vand.u32 4294901760, %v8030_v38  ;;  %v1008_v10 = vadd.f32 %v4133_v13, %v8150_v9  ;;  %v4167_v25 = vpop.f32.mrb[5].mxu1 }
 0x1aa   :  { %v8333_v15 = vpack.c.bf16 %v9586_v59, %v9584_v21  ;;  %v5431_v22 = vpack.c.bf16 %v3159_v51, %v3152_v20  ;;  %v3166_v21 = vand.u32 4294901760, %v3165_v36  ;;  %v3173_v6 = vand.u32 4294901760, %v3172_v31  ;;  %v9591_v59 = vld [vmem:[#allocation50_spill] sm:$0xff] }
 0x1ab   :  { %v3053_v11 = vsub.f32 %v8020_v8, %v9587_v60  ;;  %v3060_v41 = vsub.f32 %v8030_v38, %v9588_v43  ;;  %v2944_v44 = vsub.f32 %v8299_v61, %v2943_v34  ;;  %5402 = vmatpush3.bf16.msra.mxu0 %v8327_v62  ;;  %v9590_v27 = vand.u32 4294901760, %v9589_v58  ;;  %5430 = vmatpush3.bf16.msra.mxu1 %v5429_v46 }
 0x1ac   :  { %v9592_v60 = vand.u32 4294901760, %v9591_v59  ;;  %v5439_v9 = vpack.c.bf16 %v7664_v16, %v7652_v35  ;;  %v4168_v42 = vadd.f32 %v4167_v25, %v4166_v48  ;;  %5404 = vmatprep.subr.bf16.mxu0 %v8333_v15  ;;  %v5433_v20 = vpack.c.bf16 %v3047_v45, %v3040_v63  ;;  %5432 = vmatprep.subr.bf16.mxu1 %v5431_v22  ;;  %v9606_v25 = vld [vmem:[#allocation17_spill] sm:$0xff]  ;;  %v9611_v59 = vld [vmem:[#allocation35_spill] sm:$0xff] }
 0x1ad   :  { %v3054_v51 = vand.u32 4294901760, %v3053_v11  ;;  %v3061_v36 = vand.u32 4294901760, %v3060_v41  ;;  %v5435_v31 = vpack.c.bf16 %v3173_v6, %v3166_v21  ;;  %v2945_v43 = vand.u32 4294901760, %v2944_v44  ;;  %v9602_v11 = vld [vmem:[#allocation58_spill] sm:$0xff]  ;;  %v9604_v21 = vld [vmem:[#allocation87_spill] sm:$0xff] }
 0x1ae   :  { %v8351_v56 = vpack.c.bf16 %v9592_v60, %v9590_v27  ;;  %v1112_v13 = vadd.f32 %v4168_v42, %v1008_v10  ;;  %v5441_v58 = vpack.c.bf16 %v7677_v7, %v7672_v57  ;;  %v5443_v35 = vpack.c.bf16 %v7697_v4, %v7692_v2  ;;  %v9594_v4 = vld [vmem:[#allocation84_spill] sm:$0xff]  ;;  %v9603_v41 = vld [vmem:[#allocation42_spill] sm:$0xff]  ;;  %v9608_v27 = vld [vmem:[#allocation19_spill] sm:$0xff] }
 0x1af   :  { %5434 = vmatpush3.bf16.msra.mxu1 %v5433_v20  ;;  %v5437_v16 = vpack.c.bf16 %v3061_v36, %v3054_v51  ;;  %v5445_v46 = vpack.c.bf16 %v7710_v18, %v7705_v5  ;;  %v5447_v63 = vpack.c.bf16 %v7733_v24, %v7720_v28  ;;  %v5449_v57 = vpack.c.bf16 %v7763_v32, %v7738_v40  ;;  %v9595_v5 = vld [vmem:[#allocation78_spill] sm:$0xff]  ;;  %v9596_v40 = vld [vmem:[#allocation85_spill] sm:$0xff]  ;;  %v9597_v32 = vld [vmem:[#allocation80_spill] sm:$0xff] }
 0x1b0   :  { %5406 = vmatpush3.bf16.msra.mxu0 %v8351_v56  ;;  %5436 = vmatprep.subr.bf16.mxu1 %v5435_v31  ;;  %v5451_v7 = vpack.c.bf16 %v7795_v17, %v7779_v37  ;;  %v9593_v2 = vand.u32 4294901760, %v8109_v1  ;;  %v5453_v24 = vpack.c.bf16 %v7817_v19, %v7809_v53  ;;  %v5455_v28 = vpack.c.bf16 %v9533_v49, %v7841_v55  ;;  %v9598_v17 = vld [vmem:[#allocation81_spill] sm:$0xff]  ;;  %v9599_v53 = vld [vmem:[#allocation59_spill] sm:$0xff]  ;;  %v9620_v31 = vld [vmem:[#allocation16_spill] sm:$0xff] }
 0x1b1   :  { %5440 = vmatprep.subr.bf16.mxu0 %v5439_v9  ;;  %v5457_v37 = vpack.c.bf16 %v7874_v54, %v7864_v12  ;;  %v5459_v18 = vpack.c.bf16 %v9595_v5, %v7915_v0  ;;  %v5461_v19 = vpack.c.bf16 %v9598_v17, %v9597_v32  ;;  %v5463_v55 = vpack.c.bf16 %v9562_v3, %v7964_v26  ;;  %v9600_v12 = vld [vmem:[#allocation86_spill] sm:$0xff]  ;;  %v9601_v0 = vld [vmem:[#allocation76_spill] sm:$0xff]  ;;  %v9612_v60 = vld [vmem:[#allocation45_spill] sm:$0xff] }
 0x1b2   :  { %v5465_v45 = vpack.c.bf16 %v9601_v0, %v9573_v39  ;;  %v5467_v10 = vpack.c.bf16 %v8015_v30, %v9603_v41  ;;  %v5469_v26 = vpack.c.bf16 %v8030_v38, %v8020_v8  ;;  %v9605_v39 = vld [vmem:[#allocation43_spill] sm:$0xff]  ;;  %v9607_v30 = vld [vmem:[#allocation21_spill] sm:$0xff]  ;;  %v9609_v8 = vld [vmem:[#allocation30_spill] sm:$0xff] }
 0x1b3   :  { %2946 = vmatmul.mubr.f32.vlgmr.msra.gmra.mrb[18].mxu0 %v2945_v43  ;;  %5438 = vmatpush3.bf16.msra.mxu1 %v5437_v16  ;;  %v9610_v38 = vld [vmem:[#allocation28_spill] sm:$0xff]  ;;  %v9619_v20 = vld [vmem:[#allocation47_spill] sm:$0xff] }
 0x1b4   :  { %5442 = vmatpush3.bf16.msra.mxu0 %v5441_v58  ;;  %3313 = vmatprep.mubr.f32.mxu0 %v8109_v1  ;;  %v4201_v1 = vpop.f32.mrb[6].mxu0  ;;  %v4236_v6 = vpop.f32.mrb[6].mxu1  ;;  %v9613_v9 = vld [vmem:[#allocation72_spill] sm:$0xff]  ;;  %v9621_v58 = vld [vmem:[#allocation57_spill] sm:$0xff] }
 0x1b5   :  { %5444 = vmatprep.subr.bf16.mxu0 %v5443_v35  ;;  %5472 = vmatprep.subr.bf16.mxu1 %v8130_v47  ;;  %v4202_v54 = vpop.f32.mrb[7].mxu0  ;;  %v4237_v3 = vpop.f32.mrb[7].mxu1  ;;  %v9622_v16 = vld [vmem:[#allocation36_spill] sm:$0xff] }
 0x1b6   :  { %3178 = vmatmul.mubr.f32.vlgmr.msra.gmra.mrb[18].mxu1 %v8269_v14  ;;  %v4203_v49 = vadd.f32 %v4202_v54, %v4201_v1  ;;  %v4238_v48 = vadd.f32 %v4237_v3, %v4236_v6 }
 0x1b7   :  { %5474 = vmatpush3.bf16.msra.mxu1 %v8156_v23  ;;  %3420 = vmatprep.mubr.f32.mxu1 %v9593_v2 }
 0x1b8   :  { %5446 = vmatpush3.bf16.msra.mxu0 %v5445_v46  ;;  %5476 = vmatprep.subr.bf16.mxu1 %v8163_v33  ;;  %v1224_v22 = vadd.f32 %v4203_v49, %v1112_v13 }
 0x1b9   :  { %5448 = vmatprep.subr.bf16.mxu0 %v5447_v63 }
 0x1ba   :  { %v1456_v44 = vadd.f32 %v4238_v48, %v1224_v22 }
 0x1bb   :  { %5478 = vmatpush3.bf16.msra.mxu1 %v8185_v52 }
 0x1bc   :  { %5450 = vmatpush3.bf16.msra.mxu0 %v5449_v57  ;;  %5480 = vmatprep.subr.bf16.mxu1 %v8200_v50 }
 0x1bd   :  { %5452 = vmatprep.subr.bf16.mxu0 %v5451_v7 }
 0x1bf   :  { %5482 = vmatpush3.bf16.msra.mxu1 %v9594_v4 }
 0x1c0   :  { %5454 = vmatpush3.bf16.msra.mxu0 %v5453_v24  ;;  %5484 = vmatprep.subr.bf16.mxu1 %v9596_v40 }
 0x1c1   :  { %5456 = vmatprep.subr.bf16.mxu0 %v5455_v28 }
 0x1c3   :  { %5486 = vmatpush3.bf16.msra.mxu1 %v9599_v53 }
 0x1c4   :  { %5458 = vmatpush3.bf16.msra.mxu0 %v5457_v37  ;;  %5488 = vmatprep.subr.bf16.mxu1 %v9600_v12 }
 0x1c5   :  { %5460 = vmatprep.subr.bf16.mxu0 %v5459_v18 }
 0x1c7   :  { %5490 = vmatpush3.bf16.msra.mxu1 %v9602_v11 }
 0x1c8   :  { %5462 = vmatpush3.bf16.msra.mxu0 %v5461_v19  ;;  %5492 = vmatprep.subr.bf16.mxu1 %v9604_v21 }
 0x1c9   :  { %5464 = vmatprep.subr.bf16.mxu0 %v5463_v55 }
 0x1cb   :  { %5494 = vmatpush3.bf16.msra.mxu1 %v8295_v29 }
 0x1cc   :  { %5466 = vmatpush3.bf16.msra.mxu0 %v5465_v45  ;;  %5496 = vmatprep.subr.bf16.mxu1 %v9605_v39 }
 0x1cd   :  { %5468 = vmatprep.subr.bf16.mxu0 %v5467_v10 }
 0x1cf   :  { %5498 = vmatpush3.bf16.msra.mxu1 %v8327_v62 }
 0x1d0   :  { %5470 = vmatpush3.bf16.msra.mxu0 %v5469_v26  ;;  %5500 = vmatprep.subr.bf16.mxu1 %v8333_v15 }
 0x1d1   :  { %5504 = vmatprep.subr.bf16.mxu0 %v9606_v25 }
 0x1d3   :  { %3316 = vmatmul.mubr.f32.vlgmr.msra.gmra.mrb[20].mxu0 %v8299_v61  ;;  %5502 = vmatpush3.bf16.msra.mxu1 %v8351_v56  ;;  %v9615_v61 = vld [vmem:[#allocation49_spill] sm:$0xff] }
 0x1d4   :  { %5506 = vmatpush3.bf16.msra.mxu0 %v9607_v30  ;;  %3590 = vmatprep.mubr.f32.mxu0 %v9608_v27 }
 0x1d5   :  { %5508 = vmatprep.subr.bf16.mxu0 %v9609_v8  ;;  %5536 = vmatprep.subr.bf16.mxu1 %v8130_v47  ;;  %v9614_v47 = vld [vmem:[#allocation77_spill] sm:$0xff] }
 0x1d6   :  { %3424 = vmatmul.mubr.f32.vlgmr.msra.gmra.mrb[20].mxu1 %v2943_v34  ;;  %v4271_v34 = vpop.f32.mrb[8].mxu0 }
 0x1d7   :  { %5538 = vmatpush3.bf16.msra.mxu1 %v8156_v23  ;;  %3694 = vmatprep.mubr.f32.mxu1 %v9608_v27  ;;  %v9616_v23 = vld [vmem:[#allocation48_spill] sm:$0xff] }
 0x1d8   :  { %5510 = vmatpush3.bf16.msra.mxu0 %v9610_v38  ;;  %5540 = vmatprep.subr.bf16.mxu1 %v8163_v33  ;;  %v9617_v33 = vld [vmem:[#allocation34_spill] sm:$0xff]  ;;  %v4306_v36 = vpop.f32.mrb[8].mxu1 }
 0x1d9   :  { %5512 = vmatprep.subr.bf16.mxu0 %v9611_v59  ;;  %v4307_v13 = vpop.f32.mrb[9].mxu1 }
 0x1da   :  { %v4308_v43 = vadd.f32 %v4307_v13, %v4306_v36  ;;  %v3702_v36 = vld [vmem:[#allocation5] sm:$0xff]  ;;  %v5584_v13 = vld [vmem:[#allocation2] sm:$0xff] }
 0x1db   :  { %5542 = vmatpush3.bf16.msra.mxu1 %v8185_v52  ;;  %v4272_v52 = vpop.f32.mrb[9].mxu0 }
 0x1dc   :  { %5514 = vmatpush3.bf16.msra.mxu0 %v9612_v60  ;;  %5544 = vmatprep.subr.bf16.mxu1 %v8200_v50  ;;  %v4273_v42 = vadd.f32 %v4272_v52, %v4271_v34  ;;  %v9618_v50 = vld [vmem:[#allocation56_spill] sm:$0xff] }
 0x1dd   :  { %5516 = vmatprep.subr.bf16.mxu0 %v9613_v9 }
 0x1de   :  { %v1594_v51 = vadd.f32 %v4273_v42, %v1456_v44 }
 0x1df   :  { %5546 = vmatpush3.bf16.msra.mxu1 %v9594_v4 }
 0x1e0   :  { %5518 = vmatpush3.bf16.msra.mxu0 %v9614_v47  ;;  %5548 = vmatprep.subr.bf16.mxu1 %v9596_v40  ;;  %v1702_v35 = vadd.f32 %v4308_v43, %v1594_v51  ;;  %v3704_v43 = vsub.f32 %v3702_v36, %v5584_v13 }
 0x1e1   :  { %5520 = vmatprep.subr.bf16.mxu0 %v9615_v61 }
 0x1e3   :  { %5550 = vmatpush3.bf16.msra.mxu1 %v9599_v53 }
 0x1e4   :  { %5522 = vmatpush3.bf16.msra.mxu0 %v9616_v23  ;;  %5552 = vmatprep.subr.bf16.mxu1 %v9600_v12 }
 0x1e5   :  { %5524 = vmatprep.subr.bf16.mxu0 %v9617_v33 }
 0x1e7   :  { %5554 = vmatpush3.bf16.msra.mxu1 %v9602_v11 }
 0x1e8   :  { %5526 = vmatpush3.bf16.msra.mxu0 %v9618_v50  ;;  %5556 = vmatprep.subr.bf16.mxu1 %v9604_v21 }
 0x1e9   :  { %5528 = vmatprep.subr.bf16.mxu0 %v9619_v20 }
 0x1eb   :  { %5558 = vmatpush3.bf16.msra.mxu1 %v8295_v29 }
 0x1ec   :  { %5530 = vmatpush3.bf16.msra.mxu0 %v9620_v31  ;;  %5560 = vmatprep.subr.bf16.mxu1 %v9605_v39  ;;  %v3703_v31 = vld [vmem:[#allocation5 + $0x8] sm:$0xff] }
 0x1ed   :  { %5532 = vmatprep.subr.bf16.mxu0 %v9621_v58  ;;  %v5585_v58 = vld [vmem:[#allocation2 + $0x8] sm:$0xff] }
 0x1ef   :  { %5562 = vmatpush3.bf16.msra.mxu1 %v8327_v62 }
 0x1f0   :  { %5534 = vmatpush3.bf16.msra.mxu0 %v9622_v16  ;;  %5564 = vmatprep.subr.bf16.mxu1 %v8333_v15  ;;  %v3706_v16 = vmul.f32 %v3704_v43, %v3704_v43 }
 0x1f3   :  { %3592 = vmatmul.mubr.f32.vlgmr.msra.gmra.mrb[22].mxu0 %v8269_v14  ;;  %5566 = vmatpush3.bf16.msra.mxu1 %v8351_v56 }
 0x1f6   :  { %3696 = vmatmul.mubr.f32.vlgmr.msra.gmra.mrb[22].mxu1 %v8269_v14  ;;  %v4341_v46 = vpop.f32.mrb[10].mxu0 }
 0x1f7   :  { %v4342_v63 = vpop.f32.mrb[11].mxu0 }
 0x1f8   :  { %v4343_v57 = vadd.f32 %v4342_v63, %v4341_v46  ;;  %v3710_v63 = vcombine.high %v3706_v16, %v3706_v16 }
 0x1f9   :  { %v4376_v29 = vpop.f32.mrb[10].mxu1 }
 0x1fa   :  { %v1870_v7 = vadd.f32 %v4343_v57, %v1702_v35  ;;  %v4377_v2 = vpop.f32.mrb[11].mxu1  ;;  %v3705_v35 = vsub.f32 %v3703_v31, %v5585_v58  ;;  %v9623_v57 = vld [vmem:[#allocation15_spill] sm:$0xff] }
 0x1fb   :  { %v4378_v24 = vadd.f32 %v4377_v2, %v4376_v29  ;;  %v3724_v29 = vrot.slane %v3710_v63, %v9623_v57 }
 0x1fc   :  { %v3707_v46 = vmul.f32 %v3705_v35, %v3705_v35 }
 0x1fd   :  { %v1974_v28 = vadd.f32 %v4378_v24, %v1870_v7  ;;  %v3717_v7 = vrot.slane %v3706_v16, %v9623_v57 }
 0x1fe   :  { %v3727_v24 = vcombine.high %v3707_v46, %v3707_v46 }
 0x1ff   :  { %v3725_v2 = vcombine.high %v3717_v7, %v3717_v7 }
 0x216   :  { %v4411_v37 = vpop.f32.mrb[12].mxu0 }
 0x217   :  { %v4412_v4 = vpop.f32.mrb[13].mxu0 }
 0x218   :  { %v4413_v5 = vadd.f32 %v4412_v4, %v4411_v37  ;;  %v3753_v37 = vsel %vm3752_vm0, %v3717_v7, 0.0  ;;  %v3726_v4 = vcombine.high %v3724_v29, %v3724_v29 }
 0x21a   :  { %v2086_v62 = vadd.f32 %v4413_v5, %v1974_v28  ;;  %v3734_v28 = vrot.slane %v3707_v46, %v9623_v57  ;;  %v3754_v5 = vsel %vm3752_vm0, %v3725_v2, 0.0 }
 0x21e   :  { %v4446_v18 = vpop.f32.mrb[12].mxu1 }
 0x21f   :  { %v4447_v15 = vpop.f32.mrb[13].mxu1 }
 0x220   :  { %v4448_v40 = vadd.f32 %v4447_v15, %v4446_v18  ;;  %v3755_v18 = vadd.f32 %v3754_v5, %v3753_v37  ;;  %v3741_v15 = vrot.slane %v3727_v24, %v9623_v57 }
 0x222   :  { %v2318_v32 = vadd.f32 %v4448_v40, %v2086_v62  ;;  %v3756_v62 = vsel %vm3752_vm0, %v3724_v29, 0.0  ;;  %v3742_v40 = vcombine.high %v3734_v28, %v3734_v28 }
 0x23f   :  { %v4481_v17 = vpop.f32.mrb[14].mxu0 }
 0x240   :  { %v4482_v56 = vpop.f32.mrb[15].mxu0 }
 0x241   :  { %v4483_v19 = vadd.f32 %v4482_v56, %v4481_v17  ;;  %v3757_v17 = vadd.f32 %v3756_v62, %v3755_v18  ;;  %v3760_v56 = vsel %vm3752_vm0, %v3734_v28, 0.0 }
 0x243   :  { %v2456_v14 = vadd.f32 %v4483_v19, %v2318_v32  ;;  %v3758_v32 = vsel %vm3752_vm0, %v3726_v4, 0.0 }
 0x244   :  { %v3759_v19 = vadd.f32 %v3758_v32, %v3757_v17 }
 0x248   :  { %v4516_v53 = vpop.f32.mrb[14].mxu1 }
 0x249   :  { %v4517_v55 = vpop.f32.mrb[15].mxu1 }
 0x24a   :  { %v4518_v1 = vadd.f32 %v4517_v55, %v4516_v53  ;;  %v3762_v53 = vsel %vm3752_vm0, %v3742_v40, 0.0  ;;  %v3761_v55 = vadd.f32 %v3760_v56, %v3759_v19 }
 0x24c   :  { %v2564_v12 = vadd.f32 %v4518_v1, %v2456_v14  ;;  %v3743_v14 = vcombine.high %v3741_v15, %v3741_v15  ;;  %v3764_v1 = vsel %vm3752_vm0, %v3741_v15, 0.0 }
 0x25f   :  { %v4551_v54 = vpop.f32.mrb[16].mxu0 }
 0x260   :  { %v4552_v49 = vpop.f32.mrb[17].mxu0 }
 0x261   :  { %v4553_v0 = vadd.f32 %v4552_v49, %v4551_v54  ;;  %v3766_v54 = vsel %vm3752_vm0, %v3743_v14, 0.0 }
 0x263   :  { %v2732_v45 = vadd.f32 %v4553_v0, %v2564_v12  ;;  %v3763_v12 = vadd.f32 %v3762_v53, %v3761_v55 }
 0x265   :  { %v3765_v49 = vadd.f32 %v3764_v1, %v3763_v12 }
 0x267   :  { %v3767_v0 = vadd.f32 %v3766_v54, %v3765_v49 }
 0x268   :  { %v4586_v11 = vpop.f32.mrb[16].mxu1 }
 0x269   :  { %v4587_v41 = vpop.f32.mrb[17].mxu1  ;;  %3768 = vadd.xlane.f32.xlu1 %v3767_v0 }
 0x26a   :  { %v4588_v10 = vadd.f32 %v4587_v41, %v4586_v11 }
 0x26c   :  { %v2836_v22 = vadd.f32 %v4588_v10, %v2732_v45  ;;  %v9624_v45 = vlaneseq }
 0x26e   :  { %v3781_v11 = vand.u32 127, %v9624_v45 }
 0x286   :  { %v4621_v21 = vpop.f32.mrb[18].mxu0 }
 0x287   :  { %v4622_v6 = vpop.f32.mrb[19].mxu0 }
 0x288   :  { %v4623_v3 = vadd.f32 %v4622_v6, %v4621_v21 }
 0x289   :  { %v4656_v48 = vpop.f32.mrb[18].mxu1 }
 0x28a   :  { %v2948_v26 = vadd.f32 %v4623_v3, %v2836_v22  ;;  %v4657_v39 = vpop.f32.mrb[19].mxu1 }
 0x28b   :  { %v4658_v44 = vadd.f32 %v4657_v39, %v4656_v48 }
 0x28d   :  { %v3180_v25 = vadd.f32 %v4658_v44, %v2948_v26  ;;  %v5710_v44 = vmov 0  }
 0x28e   :  { %5577 = vset.pattern.permute.xlu0 %v5710_v44 }
 0x2a6   :  { %v4691_v30 = vpop.f32.mrb[20].mxu0 }
 0x2a7   :  { %v4692_v27 = vpop.f32.mrb[21].mxu0 }
 0x2a8   :  { %v4693_v8 = vadd.f32 %v4692_v27, %v4691_v30 }
 0x2a9   :  { %v4726_v59 = vpop.f32.mrb[20].mxu1 }
 0x2aa   :  { %v3318_v38 = vadd.f32 %v4693_v8, %v3180_v25  ;;  %v4727_v60 = vpop.f32.mrb[21].mxu1 }
 0x2ab   :  { %v4728_v9 = vadd.f32 %v4727_v60, %v4726_v59  ;;  %v3779_v59 = vld [vmem:[%s8531_s7] sm:$0x3] }
 0x2ac   :  { %vm3804_vm5 = vcmp.ne.s32.totalorder %v3779_v59, 0 }
 0x2ad   :  { %v3426_v47 = vadd.f32 %v4728_v9, %v3318_v38  ;;  %vm3806_vm8 = vmxor %vm3804_vm5, %vm5711_vm7 }
 0x2c6   :  { %v4761_v61 = vpop.f32.mrb[22].mxu0 }
 0x2c7   :  { %v4762_v23 = vpop.f32.mrb[23].mxu0 }
 0x2c8   :  { %v4763_v33 = vadd.f32 %v4762_v23, %v4761_v61 }
 0x2c9   :  { %v4796_v52 = vpop.f32.mrb[22].mxu1 }
 0x2ca   :  { %v3594_v34 = vadd.f32 %v4763_v33, %v3426_v47  ;;  %v4797_v42 = vpop.f32.mrb[23].mxu1  ;;  %v3778_v47 = vld [vmem:[%s8530_s6] sm:$0x3] }
 0x2cb   :  { %v4798_v50 = vadd.f32 %v4797_v42, %v4796_v52 }
 0x2cd   :  { %v3698_v20 = vadd.f32 %v4798_v50, %v3594_v34  ;;  %v3777_v34 = vld [vmem:[%s8529_s5] sm:$0x3] }
 0x2cf   :  { %3701 = vst [vmem:[#allocation8] sm:$0x3] %v3698_v20  ;;  %v3782_v51 = vsel %vm3752_vm0, %v3698_v20, -inf }
 0x2d0   :  { %3783 = vmax.xlane.f32.xlu0 %v3782_v51 }
 0x2f6   :  { %v3769_v25 = vpop.xlane.xlu1 %3768 }
 0x2f7   :  { %5582 = vrsqrt.f32 %v3769_v25  ;;  %vm3772_vm3 = vcmp.eq.f32.partialorder %v3769_v25, inf  ;;  %v3775_v8 = vand.u32 2147483648, %v3769_v25  ;;  %vm3774_vm4 = vcmp.eq.f32.partialorder %v3769_v25, 0.0 }
 0x301   :  { %v5583_v30 = vpop.eup %5582 }
 0x302   :  { %v3771_v27 = vmul.f32 %v5583_v30, %v3769_v25 }
 0x304   :  { %v3773_v38 = vsel %vm3772_vm3, %v3769_v25, %v3771_v27 }
 0x305   :  { %v3776_v9 = vsel %vm3774_vm4, %v3775_v8, %v3773_v38 }
 0x306   :  { %vm3805_vm6 = vcmp.lt.f32.partialorder %v3776_v9, %v3778_v47 }
 0x307   :  { %vm3807_vm9 = vmor %vm3805_vm6, %vm3806_vm8 }
 0x35d   :  { %v3784_v41 = vpop.xlane.xlu0 %3783 }
 0x35e   :  { %vm3785_vm1 = vcmp.eq.f32.partialorder %v3698_v20, %v3784_v41 }
 0x35f   :  { %v3786_v10 = vsel %vm3785_vm1, %v3781_v11, 128 }
 0x360   :  { %v3787_v22 = vsel %vm3752_vm0, %v3786_v10, 2147483647 }
 0x361   :  { %v3789_v21 = vshra.s32 %v3787_v22, 16  ;;  %v3788_v3 = vand.u32 65535, %v3787_v22 }
 0x363   :  { %v3791_v6 = vcvt.s32.f32 %v3789_v21  ;;  %v3790_v48 = vcvt.s32.f32 %v3788_v3 }
 0x365   :  { %3792 = vmin.xlane.f32.xlu0 %v3791_v6 }
 0x3f2   :  { %v3793_v26 = vpop.xlane.xlu0 %3792 }
 0x3f3   :  { %vm3794_vm2 = vcmp.eq.f32.partialorder %v3791_v6, %v3793_v26  ;;  %v3799_v60 = vcvt.f32.s32 %v3793_v26 }
 0x3f4   :  { %v3795_v39 = vsel %vm3794_vm2, %v3790_v48, inf }
 0x3f5   :  { %3796 = vmin.xlane.f32.xlu1 %v3795_v39  ;;  %v3800_v23 = vshll.u32 %v3799_v60, 16 }
 0x482   :  { %v3797_v61 = vpop.xlane.xlu1 %3796 }
 0x483   :  { %v3798_v33 = vcvt.f32.s32 %v3797_v61 }
 0x485   :  { %v3801_v52 = vadd.s32 %v3800_v23, %v3798_v33 }
 0x487   :  { %vm3802_vm10 = vcmp.eq.s32.totalorder %v3801_v52, %v3777_v34 }
 0x488   :  { %vm3803_vm11 = vmxor %vm3802_vm10, %vm5711_vm7 }
 0x489   :  { %vm3808_vm13 = vmand %vm3803_vm11, %vm3807_vm9 }
 0x48a   :  { %v3809_v42 = vsel %vm3808_vm13, %v3776_v9, %v3778_v47  ;;  %vm3810_vm14 = vmor %vm3804_vm5, %vm3808_vm13  ;;  %v3817_v50 = vsel %vm3808_vm13, 1, %v5710_v44 }
 0x48b   :  { %v3811_v20 = vsel %vm3810_vm14, 1, %v5710_v44  ;;  %3813 = vst.msk [vmem:[%s8534_s10] sm:$0x3] %vm3812_vm12, %v3809_v42  ;;  %3819 = vperm.xlu0 %5577, %v3817_v50  }
 0x48c   :  { %3814 = vst.msk [vmem:[%s8535_s11] sm:$0x3] %vm3812_vm12, %v3811_v20 }
 0x48d   :  { %5663 = shalt.err (!%p5660_p0)
}
 0x48e   :  { %s5664_s27 = scalar_lea.hbm %s8532_s8, 32 }
 0x48f   :  { %p5665_p1 = scmp.ne.s32.totalorder %s8532_s8, %s5664_s27  ;;  %p5668_p2 = scmp.lt.u32.totalorder %s5664_s27, %s8532_s8 }
 0x491   :  { %p5670_p3 = pnand %p5668_p2, %p5665_p1 }
 0x493   :  { %5673 = shalt.err (!%p5670_p3)
}
 0x494   :  { %3929 = dma.vmem_to_hbm [thread:$0]  %s3927_s23, 32, %s8532_s8, [#allocation4]   ;;  %v3815_v51 = vld [vmem:[%s8526_s2] sm:$0xff]  ;;  %v3816_v36 = vld [vmem:[%s8526_s2 + $0x8] sm:$0xff]  ;;  %v9630_v17 = vld [vmem:[#allocation55_spill] sm:$0xff] }
 0x495   :  { %v3824_v31 = vcombine.high %v3815_v51, %v3815_v51  ;;  %v3841_v13 = vcombine.high %v3816_v36, %v3816_v36  ;;  %v3831_v43 = vrot.slane %v3815_v51, %v9623_v57  ;;  %v3848_v35 = vrot.slane %v3816_v36, %v9623_v57  ;;  %v9625_v24 = vld [vmem:[#allocation24_spill] sm:$0xff]  ;;  %v9626_v37 = vld [vmem:[#allocation25_spill] sm:$0xff]  ;;  %v9632_v53 = vld [vmem:[#allocation83_spill] sm:$0xff]  ;;  %s5713_s2 = smov [#allocation9]  }
 0x496   :  { %v9627_v5 = vld [vmem:[#allocation40_spill] sm:$0xff]  ;;  %v9628_v18 = vld [vmem:[#allocation41_spill] sm:$0xff]  ;;  %s3936_s8 = sshll.u32 %s5713_s2, 4  ;;  %s3937_s8 = int_to_ptr.vmem [resolvable:$true] %s3936_s8 }
 0x497   :  { %v3838_v58 = vrot.slane %v3824_v31, %v9623_v57  ;;  %v3855_v16 = vrot.slane %v3841_v13, %v9623_v57  ;;  %v3839_v46 = vcombine.high %v3831_v43, %v3831_v43  ;;  %v3856_v7 = vcombine.high %v3848_v35, %v3848_v35  ;;  %v9629_v40 = vld [vmem:[#allocation53_spill] sm:$0xff]  ;;  %s5674_s3 = scalar_lea.vmem %s3937_s8, 256  ;;  %p5679_p5 = scmp.lt.s32.totalorder %s3937_s8, %s3937_s8 }
 0x498   :  { %v9631_v19 = vld [vmem:[#allocation29_spill] sm:$0xff]  ;;  %p5675_p4 = scmp.ne.s32.totalorder %s3937_s8, %s5674_s3  ;;  %p5680_p6 = scmp.lt.s32.totalorder %s5674_s3, %s5674_s3 }
 0x499   :  { %v3840_v63 = vcombine.high %v3838_v58, %v3838_v58  ;;  %v3857_v29 = vcombine.high %v3855_v16, %v3855_v16 }
 0x49a   :  { %p5681_p7 = por %p5680_p6, %p5679_p5 }
 0x49c   :  { %p5682_p8 = pnand %p5681_p7, %p5675_p4 }
 0x50a   :  { %v3820_v2 = vpop.permute.xlu0 %3819 }
 0x50b   :  { %vm3821_vm15 = vcmp.eq.s32.totalorder %v3820_v2, 1 }
 0x50c   :  { %v3866_v28 = vsel %vm3821_vm15, %v9625_v24, %v3831_v43  ;;  %v3867_v4 = vsel %vm3821_vm15, %v9626_v37, %v3839_v46  ;;  %v3868_v62 = vsel %vm3821_vm15, %v9627_v5, %v3838_v58  ;;  %v3869_v15 = vsel %vm3821_vm15, %v9628_v18, %v3840_v63 }
 0x50d   :  { %v3870_v32 = vsel %vm3821_vm15, %v9629_v40, %v3848_v35  ;;  %v3871_v56 = vsel %vm3821_vm15, %v9630_v17, %v3856_v7  ;;  %v3872_v14 = vsel %vm3821_vm15, %v9631_v19, %v3855_v16  ;;  %v3873_v55 = vsel %vm3821_vm15, %v9632_v53, %v3857_v29 }
 0x50e   :  { %v3882_v1 = vcombine.low %v3866_v28, %v3867_v4  ;;  %v3883_v12 = vcombine.low %v3868_v62, %v3869_v15  ;;  %v3899_v54 = vcombine.low %v3870_v32, %v3871_v56  ;;  %v3900_v49 = vcombine.low %v3872_v14, %v3873_v55 }
 0x510   :  { %v3890_v0 = vrot.slane %v3882_v1, %v9623_v57  ;;  %v3897_v45 = vrot.slane %v3883_v12, %v9623_v57  ;;  %v3907_v11 = vrot.slane %v3899_v54, %v9623_v57  ;;  %v3914_v41 = vrot.slane %v3900_v49, %v9623_v57 }
 0x512   :  { %v3898_v10 = vcombine.low %v3890_v0, %v3897_v45  ;;  %v3915_v22 = vcombine.low %v3907_v11, %v3914_v41 }
 0x514   :  { %3918 = vst [vmem:[#allocation9] sm:$0xff] %v3898_v10  ;;  %3919 = vst [vmem:[#allocation9 + $0x8] sm:$0xff] %v3915_v22 }
 0x515   :  { %5685 = shalt.err (!%p5682_p8)
}
 0x516   :  { %s5686_s16 = scalar_lea.hbm %s8533_s9, 256 }
 0x517   :  { %p5687_p9 = scmp.ne.s32.totalorder %s8533_s9, %s5686_s16  ;;  %p5690_p10 = scmp.lt.u32.totalorder %s5686_s16, %s8533_s9 }
 0x519   :  { %p5692_p11 = pnand %p5690_p10, %p5687_p9 }
 0x51b   :  { %5695 = shalt.err (!%p5692_p11)
}
 0x51c   :  { %3939 = dma.vmem_to_hbm [thread:$0]  %s3937_s8, 256, %s8533_s9, [#allocation10]  }
 0x51d   :  { %5700 = dma.done.wait [#allocation4], 32  }
 0x51e   :  { %5701 = vsyncadd [#allocation4], 4294967264 }
 0x51f   :  { %5702 = dma.done.wait [#allocation10], 256  }
 0x520   :  { %5703 = vsyncadd [#allocation10], 4294967040 }
 0x521   :  { %3954 = vsyncpa [#allocation3], 1 }
 0x522   :  { %3955 = vsyncpa [#allocation6], 1 }
 0x523   :  { %3956 = vsyncpa [#allocation4], 1 }
 0x524   :  { %3957 = vsyncpa [#allocation10], 1 }

</bundles_post_ra>
